<compile_context>
chip_gen: v5e
topology: v5e:2x2
jax: 0.10.0
libtpu: 0.0.40
codegen_flags: <defaults>
</compile_context>

<pallas_src>
import jax
import jax.numpy as jnp
from jax.experimental import pallas as pl
from jax.experimental.pallas import tpu as pltpu


_LANES = 128                      # lane width of one vreg (fast axis)
_TARGET_BLOCK_BYTES = 2 << 20     # ~2 MiB per block buffer
_MIN_PALLAS_BYTES = 1 << 20       # below this, plain jnp (fused by XLA) wins


def _h_swish_kernel(x_ref, o_ref):
    x = x_ref[...]
    # h_sigmoid(x) = relu6(x + 3) / 6 ; h_swish(x) = x * h_sigmoid(x)
    hsig = jnp.clip(x + 3.0, 0.0, 6.0) * (1.0 / 6.0)
    o_ref[...] = (x * hsig).astype(o_ref.dtype)


def _h_swish_jnp(x: jax.Array) -> jax.Array:
    return x * (jnp.clip(x + 3.0, 0.0, 6.0) * (1.0 / 6.0))


def _round_up(a: int, b: int) -> int:
    return -(-a // b) * b


def h_swish(x: jax.Array, *, min_pallas_bytes: int = _MIN_PALLAS_BYTES) -> jax.Array:
    """Elementwise h_swish over an arbitrary-shaped array (e.g. NCHW)."""
    orig_shape = x.shape
    dtype = x.dtype
    itemsize = jnp.dtype(dtype).itemsize
    n = x.size

    # Small-input fallback: fixed pallas_call / reshape overhead dominates and
    # the jnp version fuses into neighboring XLA ops for free.
    if n == 0 or n * itemsize < min_pallas_bytes:
        return _h_swish_jnp(x)

    flat = x.reshape(-1)

    # Pad only to a multiple of 128 lanes, and only when actually necessary
    # (zero-padding is safe: h_swish(0) == 0).  Typical CNN activations are
    # already multiples of 128, so this path usually costs nothing.
    pad = (-n) % _LANES
    if pad:
        flat = jnp.pad(flat, (0, pad))

    rows = flat.shape[0] // _LANES
    x2d = flat.reshape(rows, _LANES)

    # ~2 MiB blocks; keep block_rows a multiple of 8 sublanes.
    block_rows = max(8, (_TARGET_BLOCK_BYTES // (_LANES * itemsize)) // 8 * 8)
    if rows <= 8:
        block_rows = rows                              # single full-extent block
    elif rows <= 2 * block_rows:
        # Split into two roughly equal blocks so both v7x TensorCores get work
        # (and avoid a badly unbalanced 2-block split just above block_rows).
        block_rows = min(block_rows, _round_up(-(-rows // 2), 8))

    grid = (pl.cdiv(rows, block_rows),)                # ragged last block is masked

    out2d = pl.pallas_call(
        _h_swish_kernel,
        out_shape=jax.ShapeDtypeStruct((rows, _LANES), dtype),
        grid_spec=pltpu.PrefetchScalarGridSpec(
            num_scalar_prefetch=0,
            grid=grid,
            in_specs=[pl.BlockSpec((block_rows, _LANES), lambda i: (i, 0))],
            out_specs=pl.BlockSpec((block_rows, _LANES), lambda i: (i, 0)),
        ),
        compiler_params=pltpu.CompilerParams(
            dimension_semantics=("parallel",),
        ),
        # x2d is a fresh intermediate (result of reshape/pad), so aliasing it
        # into the output avoids a second full-size HBM allocation.
        input_output_aliases={0: 0},
        cost_estimate=pl.CostEstimate(
            flops=5 * rows * _LANES,
            transcendentals=0,
            bytes_accessed=2 * rows * _LANES * itemsize,
        ),
    )(x2d)

    out_flat = out2d.reshape(-1)
    if pad:
        out_flat = out_flat[:n]
    return out_flat.reshape(orig_shape)


def h_swish_ref(x: jax.Array) -> jax.Array:
    return x * (jnp.clip(x + 3.0, 0.0, 6.0) / 6.0)


if __name__ == "__main__":
    key = jax.random.PRNGKey(0)
    k1, k2, k3 = jax.random.split(key, 3)

    # 1) Small NCHW activation at the spec shape -> fused-jnp fallback path.
    x_small = jax.random.normal(k1, (2, 4, 16, 16), dtype=jnp.float32) * 4.0
    out_small = jax.block_until_ready(h_swish(x_small))
    assert out_small.shape == x_small.shape and out_small.dtype == x_small.dtype
    assert jnp.allclose(out_small, h_swish_ref(x_small), atol=1e-6, rtol=1e-5)

    # 2) Larger NCHW activation (4 MiB) -> Pallas kernel path, multi-block grid.
    x_big = jax.random.normal(k2, (4, 64, 64, 64), dtype=jnp.float32) * 4.0
    out_big = jax.block_until_ready(h_swish(x_big))
    assert out_big.shape == x_big.shape and out_big.dtype == x_big.dtype
    assert jnp.allclose(out_big, h_swish_ref(x_big), atol=1e-6, rtol=1e-5)

    # 3) Ragged element count forced through the kernel -> exercises the
    #    pad-to-128 + cdiv (masked last block) path.
    x_rag = jax.random.normal(k3, (3, 7, 13, 11), dtype=jnp.float32) * 4.0
    out_rag = jax.block_until_ready(h_swish(x_rag, min_pallas_bytes=0))
    assert out_rag.shape == x_rag.shape and out_rag.dtype == x_rag.dtype
    assert jnp.allclose(out_rag, h_swish_ref(x_rag), atol=1e-6, rtol=1e-5)

    print("KERNEL_OK")
</pallas_src>

<mosaic_0001>
module attributes {stable_mosaic.version = 11 : i64} {
  func.func @_h_swish_kernel(%arg0: i32, %arg1: memref<4096x128xf32, #tpu.memory_space<vmem>>, %arg2: memref<4096x128xf32, #tpu.memory_space<vmem>>) attributes {dimension_semantics = [#tpu.dimension_semantics<parallel>], iteration_bounds = array<i64: 2>, scalar_prefetch = 0 : i64, scratch_operands = 0 : i64, tpu.core_type = #tpu.core_type<tc>, window_params = [{transform_indices = @transform_0, window_bounds = array<i64: 4096, 128>}, {transform_indices = @transform_1, window_bounds = array<i64: 4096, 128>}]} {
    %c0 = arith.constant 0 : index
    %c0_0 = arith.constant 0 : index
    %0 = vector.load %arg1[%c0, %c0_0] : memref<4096x128xf32, #tpu.memory_space<vmem>>, vector<4096x128xf32>
    %cst = arith.constant 3.000000e+00 : f32
    %1 = vector.broadcast %cst : f32 to vector<4096x128xf32>
    %2 = arith.addf %0, %1 : vector<4096x128xf32>
    %cst_1 = arith.constant 0.000000e+00 : f32
    %cst_2 = arith.constant 6.000000e+00 : f32
    %3 = vector.broadcast %cst_1 : f32 to vector<4096x128xf32>
    %4 = arith.maximumf %3, %2 : vector<4096x128xf32>
    %5 = vector.broadcast %cst_2 : f32 to vector<4096x128xf32>
    %6 = arith.minimumf %5, %4 : vector<4096x128xf32>
    %cst_3 = arith.constant 0.166666672 : f32
    %7 = vector.broadcast %cst_3 : f32 to vector<4096x128xf32>
    %8 = arith.mulf %6, %7 : vector<4096x128xf32>
    %9 = arith.mulf %0, %8 : vector<4096x128xf32>
    %c0_4 = arith.constant 0 : index
    %c0_5 = arith.constant 0 : index
    %10 = vector.load %arg2[%c0_4, %c0_5] : memref<4096x128xf32, #tpu.memory_space<vmem>>, vector<4096x128xf32>
    tpu.vector_store %arg2[%c0_4, %c0_5], %9 {strides = array<i32>} : memref<4096x128xf32, #tpu.memory_space<vmem>>, vector<4096x128xf32>,
    return
  }
  func.func @transform_0(%arg0: i32) -> (i32, i32) {
    %c0_i32 = arith.constant 0 : i32
    %c0_i32_0 = arith.constant 0 : i32
    return %arg0, %c0_i32 : i32, i32
  }
  func.func @transform_1(%arg0: i32) -> (i32, i32) {
    %c0_i32 = arith.constant 0 : i32
    %c0_i32_0 = arith.constant 0 : i32
    return %arg0, %c0_i32 : i32, i32
  }
}

</mosaic_0001>

<bundles_post_ra>
// kernel: tpu_custom_call.1
= control target key start
LH: loop header
LB: loop body
LE: loop exit
PB: predicated region body
PF: predicated region fallthrough
CT: control target
= control target key end

     0   :  { %6 = vsyncpa [#allocation3], 0  ;;  %s5676_s0 = inlined_call_operand.hbm [shape: f32[8192,128], index: 0, kind: input, shape index: {}, may-alias: {0,1}]   ;;  %s5677_s1 = inlined_call_operand.hbm [shape: f32[8192,128], index: 1, kind: output, shape index: {}, may-alias: {0,1}]  }
   0x1   :  { %8 = vsyncpa [#allocation3 + $0x1], 0 }
   0x2   :  { %9 = vsyncpa [#allocation4], 0 }
   0x3   :  { %11 = vsyncpa [#allocation4 + $0x1], 0  ;;  %s3990_s6 = smov 0   ;;  %s3992_s7 = smov 0  }
   0x4   :  { %s3994_s8 = smov 0   ;;  %s3996_s9 = smov 0  }
   0x5 LB: > { %s4011_s10 = sadd.s32 4294967295, %s3974_s9   ;;  %s3812_s11 = sadd.s32 4294967294, %s3974_s9   ;;  %s3974_s9 = sphi %s3996_s9, %s5687_s9   ;;  %s3970_s8 = sphi %s3994_s8, %s5686_s8   ;;  %s3966_s7 = sphi %s3992_s7, %s5685_s7   ;;  %s3962_s6 = sphi %s3990_s6, %s5684_s6  }
   0x6   : > { %s4015_s12 = sadd.s32 1, %s3974_s9   ;;  %s24_s13 = sadd.s32 1, %s3970_s8 }
   0x7   : > { %s21_s14 = ssub.s32 %s3974_s9, %s4015_s12  ;;  %p31_p0 = scmp.ne.s32.totalorder %s3970_s8, %s3966_s7 }
   0x8   : > { %p22_p1 = scmp.eq.s32.totalorder %s21_s14, 0  ;;  %p32_p2 = scmp.eq.s32.totalorder %s3974_s9, 0 }
   0x9   : > { %p37_p3 = scmp.ne.s32.totalorder %s3966_s7, %s3962_s6  ;;  %p38_p4 = scmp.eq.s32.totalorder %s4011_s10, 0 }
   0xa   : > { %s4027_s15 = scalar_select %p22_p1, %s3970_s8, %s24_s13  }
   0xb   : > { %p4029_p5 = por %p32_p2, %p31_p0  ;;  %p4033_p6 = por %p38_p4, %p37_p3 }
   0xc   : > { %p61_p7 = scmp.eq.s32.totalorder %s4011_s10, 1  ;;  %p67_p8 = scmp.eq.s32.totalorder %s3812_s11, 1 }
   0xd   : > { %p3840_p10 = scmp.lt.s32.totalorder %s3974_s9, 2  ;;  %s87_s20 = sand.u32 1, %s3970_s8  }
   0xe   : > { %p4040_p11 = por %p61_p7, %p31_p0  ;;  %p4044_p12 = por %p67_p8, %p37_p3 }
   0xf   : > { %s3826_s21 = sshll.u32 %s3974_s9, 12  ;;  %s3815_s22 = sshll.u32 %s87_s20, 12 }
  0x10   : > { %s96_s25 = scalar_lea.hbm %s5676_s0, %s3826_s21  ;;  %s91_s27 = scalar_lea.vmem [#allocation2], %s3815_s22 }
  0x11   : > { %s97_s26 = sshll.u32 %s96_s25, 4  ;;  %s99_s28 = sshll.u32 %s91_s27, 4  ;;  %s98_s26 = int_to_ptr.hbm [resolvable:$true] %s97_s26  ;;  %s100_s28 = int_to_ptr.vmem [resolvable:$true] %s99_s28 }
  0x12   : > { %p4055_p13 = pnand %p3840_p10, %p4029_p5  ;;  %p3818_p0 = scmp.ge.s32.totalorder %s3974_s9, 1 }
  0x13   : > { %p107_p1 = scmp.lt.s32.totalorder %s3974_s9, 3  ;;  %s88_s30 = scalar_lea.sflag [#allocation3], %s87_s20 }
  0x14   : > { %s3878_s2 = sshra.s32 %s98_s26, 4  ;;  %p3882_p3 = pneg %p4055_p13  ;;  %s3879_s2 = int_to_ptr.hbm [resolvable:$true] %s3878_s2 }
  0x15   : > { %s3880_s3 = scalar_lea.hbm %s3879_s2, 4096  ;;  %s3885_s11 = scalar_lea.hbm %s5676_s0, 8192 }
  0x16   : > { %p3881_p2 = scmp.ne.s32.totalorder %s3879_s2, %s3880_s3  ;;  %p3886_p5 = scmp.lt.s32.totalorder %s3879_s2, %s5676_s0 }
  0x17   : > { %p3887_p8 = scmp.lt.s32.totalorder %s3885_s11, %s3880_s3 }
  0x18   : > { %p3883_p4 = pnand %p3882_p3, %p3881_p2 }
  0x19   : > { %p3888_p10 = por %p3887_p8, %p3886_p5 }
  0x1a   : > { %p3884_p7 = pneg %p3883_p4 }
  0x1c   : > { %p3889_p9 = pnand %p3888_p10, %p3884_p7 }
  0x1e   : > { %3892 = shalt.err (!%p3889_p9)
}
  0x1f   : > { %s3976_s16 = smov 128   ;;  %s3977_s20 = smov 8  }
  0x20   : > { %3835 = dma.hbm_to_vmem [thread:$0]  (!%p4055_p13), %s98_s26, 65536, %s100_s28, %s88_s30, %s3976_s16, %s3976_s16, %s3977_s20  }
  0x21   : > { %p108_p2 = pnand %p3818_p0, %p107_p1 }
  0x22   : > { %s4076_s21 = sand.u32 (!%p108_p2), 1, %s3966_s7  }
  0x23   : > { %111 = sbr.rel (%p108_p2) target bundleno = 694 (0x2b6), region = 24  ;;  %s3819_s22 = sshll.u32 (!%p108_p2), %s4076_s21, 12 }
  0x24   : > { %s114_s23 = scalar_lea.sflag (!%p108_p2), [#allocation3], %s4076_s21  ;;  %s4082_s24 = scalar_lea.vmem (!%p108_p2), [#allocation2], %s3819_s22 }
  0x28   : > { %3953 = dma.done.wait (%p4033_p6), %s114_s23, 65536  }
  0x29   : > { %3955 = vsyncadd (%p4033_p6), %s114_s23, 4294901760  ;;  %v139_v0 = vld [vmem:[%s4082_s24] sm:$0xff]  ;;  %v140_v1 = vld [vmem:[%s4082_s24 + $0x8] sm:$0xff]  ;;  %s4112_s17 = scalar_lea.vmem [#allocation5], %s3819_s22  ;;  %s3827_s25 = sshll.u32 %s4011_s10, 12 }
  0x2a   : > { %v141_v2 = vld [vmem:[%s4082_s24 + $0x10] sm:$0xff]  ;;  %v651_v3 = vadd.f32 3.0, %v139_v0  ;;  %v652_v4 = vadd.f32 3.0, %v140_v1  ;;  %v142_v6 = vld [vmem:[%s4082_s24 + $0x18] sm:$0xff]  ;;  %v143_v7 = vld [vmem:[%s4082_s24 + $0x20] sm:$0xff]  ;;  %s3735_s28 = scalar_lea.hbm %s5677_s1, %s3827_s25  ;;  %s3736_s29 = sshll.u32 %s4112_s17, 4  ;;  %s3737_s29 = int_to_ptr.vmem [resolvable:$true] %s3736_s29 }
  0x2b   : > { %v653_v5 = vadd.f32 3.0, %v141_v2  ;;  %v144_v8 = vld [vmem:[%s4082_s24 + $0x28] sm:$0xff]  ;;  %v654_v9 = vadd.f32 3.0, %v142_v6  ;;  %v655_v10 = vadd.f32 3.0, %v143_v7  ;;  %v145_v12 = vld [vmem:[%s4082_s24 + $0x30] sm:$0xff]  ;;  %v146_v13 = vld [vmem:[%s4082_s24 + $0x38] sm:$0xff] }
  0x2c   : > { %v656_v11 = vadd.f32 3.0, %v144_v8  ;;  %v1163_v14 = vmax.f32 %v651_v3, 0.0  ;;  %v1164_v15 = vmax.f32 %v652_v4, 0.0  ;;  %v657_v17 = vadd.f32 3.0, %v145_v12  ;;  %v4097_v30 = vld [vmem:[%s4082_s24 + $0x40] sm:$0xff]  ;;  %v4100_v31 = vld [vmem:[%s4082_s24 + $0x48] sm:$0xff] }
  0x2d   : > { %v1165_v16 = vmax.f32 %v653_v5, 0.0  ;;  %v1166_v18 = vmax.f32 %v654_v9, 0.0  ;;  %v1167_v19 = vmax.f32 %v655_v10, 0.0  ;;  %v658_v21 = vadd.f32 3.0, %v146_v13  ;;  %v4103_v32 = vld [vmem:[%s4082_s24 + $0x50] sm:$0xff]  ;;  %v150_v43 = vld [vmem:[%s4082_s24 + $0x58] sm:$0xff] }
  0x2e   : > { %v1168_v20 = vmax.f32 %v656_v11, 0.0  ;;  %v1675_v22 = vmin.f32 %v1163_v14, 6.0  ;;  %v1676_v23 = vmin.f32 %v1164_v15, 6.0  ;;  %v1169_v25 = vmax.f32 %v657_v17, 0.0  ;;  %v151_v44 = vld [vmem:[%s4082_s24 + $0x60] sm:$0xff]  ;;  %v4108_v45 = vld [vmem:[%s4082_s24 + $0x68] sm:$0xff] }
  0x2f   : > { %v1677_v24 = vmin.f32 %v1165_v16, 6.0  ;;  %v1678_v26 = vmin.f32 %v1166_v18, 6.0  ;;  %v1679_v27 = vmin.f32 %v1167_v19, 6.0  ;;  %v1170_v29 = vmax.f32 %v658_v21, 0.0  ;;  %v4119_v54 = vld [vmem:[%s4082_s24 + $0x70] sm:$0xff]  ;;  %v154_v63 = vld [vmem:[%s4082_s24 + $0x78] sm:$0xff] }
  0x30   : > { %v1680_v28 = vmin.f32 %v1168_v20, 6.0  ;;  %v2187_v33 = vmul.f32 0.16666667, %v1675_v22  ;;  %v2188_v34 = vmul.f32 0.16666667, %v1676_v23  ;;  %v1681_v42 = vmin.f32 %v1169_v25, 6.0 }
  0x31   : > { %v2189_v35 = vmul.f32 0.16666667, %v1677_v24  ;;  %v2190_v36 = vmul.f32 0.16666667, %v1678_v26  ;;  %v2191_v37 = vmul.f32 0.16666667, %v1679_v27 }
  0x32   : > { %v2192_v38 = vmul.f32 0.16666667, %v1680_v28  ;;  %v2699_v39 = vmul.f32 %v2187_v33, %v139_v0  ;;  %v2700_v40 = vmul.f32 %v2188_v34, %v140_v1  ;;  %v1682_v49 = vmin.f32 %v1170_v29, 6.0  ;;  %v157_v24 = vld [vmem:[%s4082_s24 + $0x90] sm:$0xff]  ;;  %v158_v29 = vld [vmem:[%s4082_s24 + $0x98] sm:$0xff]  ;;  %v159_v33 = vld [vmem:[%s4082_s24 + $0xa0] sm:$0xff] }
  0x33   : > { %v2701_v41 = vmul.f32 %v2189_v35, %v141_v2  ;;  %v2702_v46 = vmul.f32 %v2190_v36, %v142_v6  ;;  %v2703_v47 = vmul.f32 %v2191_v37, %v143_v7  ;;  %v2193_v50 = vmul.f32 0.16666667, %v1681_v42  ;;  %v160_v35 = vld [vmem:[%s4082_s24 + $0xa8] sm:$0xff]  ;;  %v4148_v36 = vld [vmem:[%s4082_s24 + $0xb0] sm:$0xff]  ;;  %s3738_s30 = sshll.u32 %s3735_s28, 4  ;;  %s3724_s10 = scalar_lea.sflag [#allocation4], %s4076_s21  ;;  %s3739_s30 = int_to_ptr.hbm [resolvable:$true] %s3738_s30 }
  0x34   : > { %v2704_v48 = vmul.f32 %v2192_v38, %v144_v8  ;;  %3211 = vst [vmem:[%s4112_s17] sm:$0xff] %v2699_v39  ;;  %v659_v51 = vadd.f32 3.0, %v4097_v30  ;;  %v660_v52 = vadd.f32 3.0, %v4100_v31  ;;  %v661_v53 = vadd.f32 3.0, %v4103_v32  ;;  %s3922_s2 = sshra.s32 %s3739_s30, 4  ;;  %s3928_s11 = scalar_lea.hbm %s5677_s1, 8192  ;;  %s3923_s2 = int_to_ptr.hbm [resolvable:$true] %s3922_s2 }
  0x35   : > { %3212 = vst [vmem:[%s4112_s17 + $0x8] sm:$0xff] %v2700_v40  ;;  %v2194_v55 = vmul.f32 0.16666667, %v1682_v49  ;;  %v662_v56 = vadd.f32 3.0, %v150_v43  ;;  %v663_v57 = vadd.f32 3.0, %v151_v44  ;;  %v664_v58 = vadd.f32 3.0, %v4108_v45  ;;  %p3929_p0 = scmp.lt.s32.totalorder %s3923_s2, %s5677_s1 }
  0x36   : > { %3213 = vst [vmem:[%s4112_s17 + $0x10] sm:$0xff] %v2701_v41  ;;  %v2705_v59 = vmul.f32 %v2193_v50, %v145_v12  ;;  %v1171_v60 = vmax.f32 %v659_v51, 0.0  ;;  %v1172_v61 = vmax.f32 %v660_v52, 0.0  ;;  %v1173_v62 = vmax.f32 %v661_v53, 0.0  ;;  %v4130_v12 = vld [vmem:[%s4082_s24 + $0x80] sm:$0xff]  ;;  %s3924_s3 = scalar_lea.hbm %s3923_s2, 4096 }
  0x37   : > { %3214 = vst [vmem:[%s4112_s17 + $0x18] sm:$0xff] %v2702_v46  ;;  %v2706_v0 = vmul.f32 %v2194_v55, %v146_v13  ;;  %v1174_v1 = vmax.f32 %v662_v56, 0.0  ;;  %v1175_v2 = vmax.f32 %v663_v57, 0.0  ;;  %v1176_v3 = vmax.f32 %v664_v58, 0.0  ;;  %v4133_v13 = vld [vmem:[%s4082_s24 + $0x88] sm:$0xff]  ;;  %v4160_v58 = vld [vmem:[%s4082_s24 + $0xc0] sm:$0xff]  ;;  %p3925_p6 = scmp.ne.s32.totalorder %s3923_s2, %s3924_s3  ;;  %p3930_p1 = scmp.lt.s32.totalorder %s3928_s11, %s3924_s3 }
  0x38   : > { %3215 = vst [vmem:[%s4112_s17 + $0x20] sm:$0xff] %v2703_v47  ;;  %v1683_v4 = vmin.f32 %v1171_v60, 6.0  ;;  %v1684_v5 = vmin.f32 %v1172_v61, 6.0  ;;  %v1685_v6 = vmin.f32 %v1173_v62, 6.0  ;;  %v665_v7 = vadd.f32 3.0, %v4119_v54 }
  0x39   : > { %3216 = vst [vmem:[%s4112_s17 + $0x28] sm:$0xff] %v2704_v48  ;;  %v1686_v8 = vmin.f32 %v1174_v1, 6.0  ;;  %v1687_v9 = vmin.f32 %v1175_v2, 6.0  ;;  %v1688_v10 = vmin.f32 %v1176_v3, 6.0  ;;  %v666_v11 = vadd.f32 3.0, %v154_v63  ;;  %p3926_p9 = pnand %p3925_p6, %p4040_p11  ;;  %p3931_p3 = por %p3930_p1, %p3929_p0 }
  0x3a   : > { %3217 = vst [vmem:[%s4112_s17 + $0x30] sm:$0xff] %v2705_v59  ;;  %v2195_v14 = vmul.f32 0.16666667, %v1683_v4  ;;  %v2196_v15 = vmul.f32 0.16666667, %v1684_v5  ;;  %v1177_v16 = vmax.f32 %v665_v7, 0.0 }
  0x3b   : > { %3218 = vst [vmem:[%s4112_s17 + $0x38] sm:$0xff] %v2706_v0  ;;  %v2197_v17 = vmul.f32 0.16666667, %v1685_v6  ;;  %v2198_v18 = vmul.f32 0.16666667, %v1686_v8  ;;  %v1178_v19 = vmax.f32 %v666_v11, 0.0  ;;  %p3927_p13 = pneg %p3926_p9 }
  0x3c   : > { %v2707_v20 = vmul.f32 %v2195_v14, %v4097_v30  ;;  %v2708_v21 = vmul.f32 %v2196_v15, %v4100_v31  ;;  %v2199_v22 = vmul.f32 0.16666667, %v1687_v9  ;;  %v2200_v23 = vmul.f32 0.16666667, %v1688_v10  ;;  %v165_v6 = vld [vmem:[%s4082_s24 + $0xd0] sm:$0xff]  ;;  %v166_v11 = vld [vmem:[%s4082_s24 + $0xd8] sm:$0xff] }
  0x3d   : > { %v2709_v25 = vmul.f32 %v2197_v17, %v4103_v32  ;;  %v2710_v26 = vmul.f32 %v2198_v18, %v150_v43  ;;  %v1689_v27 = vmin.f32 %v1177_v16, 6.0  ;;  %v1690_v28 = vmin.f32 %v1178_v19, 6.0  ;;  %v168_v17 = vld [vmem:[%s4082_s24 + $0xe8] sm:$0xff]  ;;  %p3932_p4 = pnand %p3931_p3, %p3927_p13 }
  0x3e   : > { %3219 = vst [vmem:[%s4112_s17 + $0x40] sm:$0xff] %v2707_v20  ;;  %v2711_v34 = vmul.f32 %v2199_v22, %v151_v44  ;;  %v667_v30 = vadd.f32 3.0, %v4130_v12  ;;  %v668_v31 = vadd.f32 3.0, %v4133_v13  ;;  %v2712_v32 = vmul.f32 %v2200_v23, %v4108_v45  ;;  %v162_v44 = vld [vmem:[%s4082_s24 + $0xb8] sm:$0xff]  ;;  %v169_v22 = vld [vmem:[%s4082_s24 + $0xf0] sm:$0xff] }
  0x3f   : > { %3220 = vst [vmem:[%s4112_s17 + $0x48] sm:$0xff] %v2708_v21  ;;  %v2201_v37 = vmul.f32 0.16666667, %v1689_v27  ;;  %v2202_v38 = vmul.f32 0.16666667, %v1690_v28  ;;  %v669_v39 = vadd.f32 3.0, %v157_v24 }
  0x40   : > { %3221 = vst [vmem:[%s4112_s17 + $0x50] sm:$0xff] %v2709_v25  ;;  %v1179_v40 = vmax.f32 %v667_v30, 0.0  ;;  %v1180_v41 = vmax.f32 %v668_v31, 0.0  ;;  %v670_v42 = vadd.f32 3.0, %v158_v29  ;;  %v671_v43 = vadd.f32 3.0, %v159_v33 }
  0x41   : > { %3222 = vst [vmem:[%s4112_s17 + $0x58] sm:$0xff] %v2710_v26  ;;  %v2713_v46 = vmul.f32 %v2201_v37, %v4119_v54  ;;  %v2714_v47 = vmul.f32 %v2202_v38, %v154_v63  ;;  %v1181_v48 = vmax.f32 %v669_v39, 0.0  ;;  %v672_v49 = vadd.f32 3.0, %v160_v35  ;;  %v4163_v54 = vld [vmem:[%s4082_s24 + $0xc8] sm:$0xff] }
  0x42   : > { %3223 = vst [vmem:[%s4112_s17 + $0x60] sm:$0xff] %v2711_v34  ;;  %v1691_v45 = vmin.f32 %v1179_v40, 6.0  ;;  %v1692_v50 = vmin.f32 %v1180_v41, 6.0  ;;  %v1182_v51 = vmax.f32 %v670_v42, 0.0  ;;  %v1183_v52 = vmax.f32 %v671_v43, 0.0  ;;  %v4190_v41 = vld [vmem:[%s4082_s24 + $0x108] sm:$0xff] }
  0x43   : > { %3224 = vst [vmem:[%s4112_s17 + $0x68] sm:$0xff] %v2712_v32  ;;  %v1693_v53 = vmin.f32 %v1181_v48, 6.0  ;;  %v1184_v55 = vmax.f32 %v672_v49, 0.0  ;;  %v673_v56 = vadd.f32 3.0, %v4148_v36  ;;  %v674_v57 = vadd.f32 3.0, %v162_v44  ;;  %v4183_v32 = vld [vmem:[%s4082_s24 + $0xf8] sm:$0xff] }
  0x44   : > { %3225 = vst [vmem:[%s4112_s17 + $0x70] sm:$0xff] %v2713_v46  ;;  %v2203_v59 = vmul.f32 0.16666667, %v1691_v45  ;;  %v2204_v60 = vmul.f32 0.16666667, %v1692_v50  ;;  %v1694_v61 = vmin.f32 %v1182_v51, 6.0 }
  0x45   : > { %3226 = vst [vmem:[%s4112_s17 + $0x78] sm:$0xff] %v2714_v47  ;;  %v2205_v62 = vmul.f32 0.16666667, %v1693_v53  ;;  %v1695_v63 = vmin.f32 %v1183_v52, 6.0  ;;  %v1696_v0 = vmin.f32 %v1184_v55, 6.0  ;;  %v1185_v1 = vmax.f32 %v673_v56, 0.0 }
  0x46   : > { %v2715_v2 = vmul.f32 %v2203_v59, %v4130_v12  ;;  %v2716_v3 = vmul.f32 %v2204_v60, %v4133_v13  ;;  %v2206_v4 = vmul.f32 0.16666667, %v1694_v61  ;;  %v1186_v5 = vmax.f32 %v674_v57, 0.0  ;;  %v167_v13 = vld [vmem:[%s4082_s24 + $0xe0] sm:$0xff]  ;;  %v173_v53 = vld [vmem:[%s4082_s24 + $0x110] sm:$0xff]  ;;  %v174_v60 = vld [vmem:[%s4082_s24 + $0x118] sm:$0xff] }
  0x47   : > { %v2717_v7 = vmul.f32 %v2205_v62, %v157_v24  ;;  %v2207_v8 = vmul.f32 0.16666667, %v1695_v63  ;;  %v2208_v9 = vmul.f32 0.16666667, %v1696_v0  ;;  %v1697_v10 = vmin.f32 %v1185_v1, 6.0  ;;  %v175_v63 = vld [vmem:[%s4082_s24 + $0x120] sm:$0xff] }
  0x48   : > { %3227 = vst [vmem:[%s4112_s17 + $0x80] sm:$0xff] %v2715_v2  ;;  %v2718_v14 = vmul.f32 %v2206_v4, %v158_v29  ;;  %v1698_v15 = vmin.f32 %v1186_v5, 6.0  ;;  %v675_v12 = vadd.f32 3.0, %v4160_v58  ;;  %v676_v16 = vadd.f32 3.0, %v4163_v54  ;;  %v176_v0 = vld [vmem:[%s4082_s24 + $0x128] sm:$0xff] }
  0x49   : > { %3228 = vst [vmem:[%s4112_s17 + $0x88] sm:$0xff] %v2716_v3  ;;  %v2719_v18 = vmul.f32 %v2207_v8, %v159_v33  ;;  %v2720_v19 = vmul.f32 %v2208_v9, %v160_v35  ;;  %v2209_v20 = vmul.f32 0.16666667, %v1697_v10  ;;  %v677_v21 = vadd.f32 3.0, %v165_v6  ;;  %v177_v9 = vld [vmem:[%s4082_s24 + $0x130] sm:$0xff] }
  0x4a   : > { %3229 = vst [vmem:[%s4112_s17 + $0x90] sm:$0xff] %v2717_v7  ;;  %v2210_v23 = vmul.f32 0.16666667, %v1698_v15  ;;  %v1187_v24 = vmax.f32 %v675_v12, 0.0  ;;  %v1188_v25 = vmax.f32 %v676_v16, 0.0  ;;  %v678_v26 = vadd.f32 3.0, %v166_v11 }
  0x4b   : > { %3230 = vst [vmem:[%s4112_s17 + $0x98] sm:$0xff] %v2718_v14  ;;  %v2721_v27 = vmul.f32 %v2209_v20, %v4148_v36  ;;  %v1189_v28 = vmax.f32 %v677_v21, 0.0  ;;  %v679_v29 = vadd.f32 3.0, %v167_v13  ;;  %v680_v33 = vadd.f32 3.0, %v168_v17  ;;  %v4187_v36 = vld [vmem:[%s4082_s24 + $0x100] sm:$0xff]  ;;  %v4209_v12 = vld [vmem:[%s4082_s24 + $0x138] sm:$0xff] }
  0x4c   : > { %3231 = vst [vmem:[%s4112_s17 + $0xa0] sm:$0xff] %v2719_v18  ;;  %v2722_v34 = vmul.f32 %v2210_v23, %v162_v44  ;;  %v1699_v30 = vmin.f32 %v1187_v24, 6.0  ;;  %v1700_v31 = vmin.f32 %v1188_v25, 6.0  ;;  %v1190_v35 = vmax.f32 %v678_v26, 0.0  ;;  %v4214_v24 = vld [vmem:[%s4082_s24 + $0x140] sm:$0xff] }
  0x4d   : > { %3232 = vst [vmem:[%s4112_s17 + $0xa8] sm:$0xff] %v2720_v19  ;;  %v1701_v37 = vmin.f32 %v1189_v28, 6.0  ;;  %v1191_v38 = vmax.f32 %v679_v29, 0.0  ;;  %v1192_v39 = vmax.f32 %v680_v33, 0.0  ;;  %v681_v40 = vadd.f32 3.0, %v169_v22 }
  0x4e   : > { %3233 = vst [vmem:[%s4112_s17 + $0xb0] sm:$0xff] %v2721_v27  ;;  %v2211_v42 = vmul.f32 0.16666667, %v1699_v30  ;;  %v2212_v43 = vmul.f32 0.16666667, %v1700_v31  ;;  %v1702_v44 = vmin.f32 %v1190_v35, 6.0 }
  0x4f   : > { %3234 = vst [vmem:[%s4112_s17 + $0xb8] sm:$0xff] %v2722_v34  ;;  %v2213_v46 = vmul.f32 0.16666667, %v1701_v37  ;;  %v1703_v47 = vmin.f32 %v1191_v38, 6.0  ;;  %v1704_v48 = vmin.f32 %v1192_v39, 6.0  ;;  %v1193_v49 = vmax.f32 %v681_v40, 0.0 }
  0x50   : > { %v2723_v45 = vmul.f32 %v2211_v42, %v4160_v58  ;;  %v2724_v50 = vmul.f32 %v2212_v43, %v4163_v54  ;;  %v2214_v51 = vmul.f32 0.16666667, %v1702_v44  ;;  %v682_v52 = vadd.f32 3.0, %v4183_v32  ;;  %v180_v30 = vld [vmem:[%s4082_s24 + $0x148] sm:$0xff]  ;;  %v181_v38 = vld [vmem:[%s4082_s24 + $0x150] sm:$0xff]  ;;  %v182_v44 = vld [vmem:[%s4082_s24 + $0x158] sm:$0xff] }
  0x51   : > { %v2725_v55 = vmul.f32 %v2213_v46, %v165_v6  ;;  %v2215_v56 = vmul.f32 0.16666667, %v1703_v47  ;;  %v2216_v57 = vmul.f32 0.16666667, %v1704_v48  ;;  %v1705_v59 = vmin.f32 %v1193_v49, 6.0  ;;  %v184_v49 = vld [vmem:[%s4082_s24 + $0x168] sm:$0xff] }
  0x52   : > { %3235 = vst [vmem:[%s4112_s17 + $0xc0] sm:$0xff] %v2723_v45  ;;  %v2726_v61 = vmul.f32 %v2214_v51, %v166_v11  ;;  %v1194_v62 = vmax.f32 %v682_v52, 0.0  ;;  %v683_v58 = vadd.f32 3.0, %v4187_v36  ;;  %v684_v54 = vadd.f32 3.0, %v4190_v41 }
  0x53   : > { %3236 = vst [vmem:[%s4112_s17 + $0xc8] sm:$0xff] %v2724_v50  ;;  %v2727_v1 = vmul.f32 %v2215_v56, %v167_v13  ;;  %v2728_v2 = vmul.f32 %v2216_v57, %v168_v17  ;;  %v2217_v3 = vmul.f32 0.16666667, %v1705_v59  ;;  %v685_v4 = vadd.f32 3.0, %v173_v53  ;;  %v185_v59 = vld [vmem:[%s4082_s24 + $0x170] sm:$0xff] }
  0x54   : > { %3237 = vst [vmem:[%s4112_s17 + $0xd0] sm:$0xff] %v2725_v55  ;;  %v1706_v5 = vmin.f32 %v1194_v62, 6.0  ;;  %v1195_v6 = vmax.f32 %v683_v58, 0.0  ;;  %v1196_v7 = vmax.f32 %v684_v54, 0.0  ;;  %v686_v8 = vadd.f32 3.0, %v174_v60  ;;  %v4234_v54 = vld [vmem:[%s4082_s24 + $0x178] sm:$0xff] }
  0x55   : > { %3238 = vst [vmem:[%s4112_s17 + $0xd8] sm:$0xff] %v2726_v61  ;;  %v2729_v10 = vmul.f32 %v2217_v3, %v169_v22  ;;  %v1197_v11 = vmax.f32 %v685_v4, 0.0  ;;  %v687_v14 = vadd.f32 3.0, %v175_v63  ;;  %v688_v15 = vadd.f32 3.0, %v176_v0 }
  0x56   : > { %3239 = vst [vmem:[%s4112_s17 + $0xe0] sm:$0xff] %v2727_v1  ;;  %v2218_v16 = vmul.f32 0.16666667, %v1706_v5  ;;  %v1707_v13 = vmin.f32 %v1195_v6, 6.0  ;;  %v1708_v17 = vmin.f32 %v1196_v7, 6.0  ;;  %v1198_v18 = vmax.f32 %v686_v8, 0.0 }
  0x57   : > { %3240 = vst [vmem:[%s4112_s17 + $0xe8] sm:$0xff] %v2728_v2  ;;  %v1709_v19 = vmin.f32 %v1197_v11, 6.0  ;;  %v1199_v20 = vmax.f32 %v687_v14, 0.0  ;;  %v1200_v21 = vmax.f32 %v688_v15, 0.0  ;;  %v689_v23 = vadd.f32 3.0, %v177_v9  ;;  %v4239_v7 = vld [vmem:[%s4082_s24 + $0x180] sm:$0xff] }
  0x58   : > { %3241 = vst [vmem:[%s4112_s17 + $0xf0] sm:$0xff] %v2729_v10  ;;  %v2730_v22 = vmul.f32 %v2218_v16, %v4183_v32  ;;  %v2219_v25 = vmul.f32 0.16666667, %v1707_v13  ;;  %v2220_v26 = vmul.f32 0.16666667, %v1708_v17  ;;  %v1710_v27 = vmin.f32 %v1198_v18, 6.0 }
  0x59   : > { %v2221_v28 = vmul.f32 0.16666667, %v1709_v19  ;;  %v1711_v29 = vmin.f32 %v1199_v20, 6.0  ;;  %v1712_v33 = vmin.f32 %v1200_v21, 6.0  ;;  %v1201_v34 = vmax.f32 %v689_v23, 0.0  ;;  %v188_v17 = vld [vmem:[%s4082_s24 + $0x188] sm:$0xff] }
  0x5a   : > { %3242 = vst [vmem:[%s4112_s17 + $0xf8] sm:$0xff] %v2730_v22  ;;  %v2731_v31 = vmul.f32 %v2219_v25, %v4187_v36  ;;  %v2732_v35 = vmul.f32 %v2220_v26, %v4190_v41  ;;  %v2222_v37 = vmul.f32 0.16666667, %v1710_v27  ;;  %v690_v32 = vadd.f32 3.0, %v4209_v12  ;;  %v183_v41 = vld [vmem:[%s4082_s24 + $0x160] sm:$0xff]  ;;  %v189_v21 = vld [vmem:[%s4082_s24 + $0x190] sm:$0xff] }
  0x5b   : > { %v2733_v39 = vmul.f32 %v2221_v28, %v173_v53  ;;  %v2223_v40 = vmul.f32 0.16666667, %v1711_v29  ;;  %v2224_v42 = vmul.f32 0.16666667, %v1712_v33  ;;  %v1713_v43 = vmin.f32 %v1201_v34, 6.0  ;;  %v190_v27 = vld [vmem:[%s4082_s24 + $0x198] sm:$0xff] }
  0x5c   : > { %3243 = vst [vmem:[%s4112_s17 + $0x100] sm:$0xff] %v2731_v31  ;;  %v2734_v46 = vmul.f32 %v2222_v37, %v174_v60  ;;  %v1202_v47 = vmax.f32 %v690_v32, 0.0  ;;  %v691_v36 = vadd.f32 3.0, %v4214_v24  ;;  %v692_v48 = vadd.f32 3.0, %v180_v30  ;;  %v191_v34 = vld [vmem:[%s4082_s24 + $0x1a0] sm:$0xff] }
  0x5d   : > { %3244 = vst [vmem:[%s4112_s17 + $0x108] sm:$0xff] %v2732_v35  ;;  %v2735_v45 = vmul.f32 %v2223_v40, %v175_v63  ;;  %v2736_v50 = vmul.f32 %v2224_v42, %v176_v0  ;;  %v2225_v51 = vmul.f32 0.16666667, %v1713_v43  ;;  %v693_v52 = vadd.f32 3.0, %v181_v38  ;;  %v193_v43 = vld [vmem:[%s4082_s24 + $0x1b0] sm:$0xff] }
  0x5e   : > { %3245 = vst [vmem:[%s4112_s17 + $0x110] sm:$0xff] %v2733_v39  ;;  %v1714_v53 = vmin.f32 %v1202_v47, 6.0  ;;  %v1203_v55 = vmax.f32 %v691_v36, 0.0  ;;  %v1204_v56 = vmax.f32 %v692_v48, 0.0  ;;  %v694_v57 = vadd.f32 3.0, %v182_v44  ;;  %v4258_v48 = vld [vmem:[%s4082_s24 + $0x1b8] sm:$0xff] }
  0x5f   : > { %3246 = vst [vmem:[%s4112_s17 + $0x118] sm:$0xff] %v2734_v46  ;;  %v2737_v60 = vmul.f32 %v2225_v51, %v177_v9  ;;  %v1205_v61 = vmax.f32 %v693_v52, 0.0  ;;  %v695_v62 = vadd.f32 3.0, %v183_v41  ;;  %v696_v58 = vadd.f32 3.0, %v184_v49 }
  0x60   : > { %3247 = vst [vmem:[%s4112_s17 + $0x120] sm:$0xff] %v2735_v45  ;;  %v2226_v63 = vmul.f32 0.16666667, %v1714_v53  ;;  %v1715_v0 = vmin.f32 %v1203_v55, 6.0  ;;  %v1716_v1 = vmin.f32 %v1204_v56, 6.0  ;;  %v1206_v2 = vmax.f32 %v694_v57, 0.0 }
  0x61   : > { %3248 = vst [vmem:[%s4112_s17 + $0x128] sm:$0xff] %v2736_v50  ;;  %v1717_v3 = vmin.f32 %v1205_v61, 6.0  ;;  %v1207_v4 = vmax.f32 %v695_v62, 0.0  ;;  %v1208_v5 = vmax.f32 %v696_v58, 0.0  ;;  %v697_v6 = vadd.f32 3.0, %v185_v59  ;;  %v4263_v56 = vld [vmem:[%s4082_s24 + $0x1c0] sm:$0xff] }
  0x62   : > { %3249 = vst [vmem:[%s4112_s17 + $0x130] sm:$0xff] %v2737_v60  ;;  %v2738_v8 = vmul.f32 %v2226_v63, %v4209_v12  ;;  %v2227_v9 = vmul.f32 0.16666667, %v1715_v0  ;;  %v2228_v10 = vmul.f32 0.16666667, %v1716_v1  ;;  %v1718_v11 = vmin.f32 %v1206_v2, 6.0 }
  0x63   : > { %v2229_v14 = vmul.f32 0.16666667, %v1717_v3  ;;  %v1719_v15 = vmin.f32 %v1207_v4, 6.0  ;;  %v1720_v16 = vmin.f32 %v1208_v5, 6.0  ;;  %v1209_v13 = vmax.f32 %v697_v6, 0.0  ;;  %v196_v1 = vld [vmem:[%s4082_s24 + $0x1c8] sm:$0xff] }
  0x64   : > { %3250 = vst [vmem:[%s4112_s17 + $0x138] sm:$0xff] %v2738_v8  ;;  %v2739_v18 = vmul.f32 %v2227_v9, %v4214_v24  ;;  %v2740_v19 = vmul.f32 %v2228_v10, %v180_v30  ;;  %v2230_v20 = vmul.f32 0.16666667, %v1718_v11  ;;  %v698_v12 = vadd.f32 3.0, %v4234_v54  ;;  %v192_v30 = vld [vmem:[%s4082_s24 + $0x1a8] sm:$0xff]  ;;  %v197_v5 = vld [vmem:[%s4082_s24 + $0x1d0] sm:$0xff] }
  0x65   : > { %v2741_v23 = vmul.f32 %v2229_v14, %v181_v38  ;;  %v2231_v22 = vmul.f32 0.16666667, %v1719_v15  ;;  %v2232_v25 = vmul.f32 0.16666667, %v1720_v16  ;;  %v1721_v26 = vmin.f32 %v1209_v13, 6.0  ;;  %v198_v11 = vld [vmem:[%s4082_s24 + $0x1d8] sm:$0xff] }
  0x66   : > { %3251 = vst [vmem:[%s4112_s17 + $0x140] sm:$0xff] %v2739_v18  ;;  %v2742_v28 = vmul.f32 %v2230_v20, %v182_v44  ;;  %v1210_v29 = vmax.f32 %v698_v12, 0.0  ;;  %v699_v24 = vadd.f32 3.0, %v4239_v7  ;;  %v700_v33 = vadd.f32 3.0, %v188_v17  ;;  %v199_v13 = vld [vmem:[%s4082_s24 + $0x1e0] sm:$0xff] }
  0x67   : > { %3252 = vst [vmem:[%s4112_s17 + $0x148] sm:$0xff] %v2740_v19  ;;  %v2743_v31 = vmul.f32 %v2231_v22, %v183_v41  ;;  %v2744_v35 = vmul.f32 %v2232_v25, %v184_v49  ;;  %v2233_v37 = vmul.f32 0.16666667, %v1721_v26  ;;  %v701_v32 = vadd.f32 3.0, %v189_v21  ;;  %v201_v26 = vld [vmem:[%s4082_s24 + $0x1f0] sm:$0xff] }
  0x68   : > { %3253 = vst [vmem:[%s4112_s17 + $0x150] sm:$0xff] %v2741_v23  ;;  %v1722_v38 = vmin.f32 %v1210_v29, 6.0  ;;  %v1211_v39 = vmax.f32 %v699_v24, 0.0  ;;  %v1212_v40 = vmax.f32 %v700_v33, 0.0  ;;  %v702_v42 = vadd.f32 3.0, %v190_v27  ;;  %v4282_v33 = vld [vmem:[%s4082_s24 + $0x1f8] sm:$0xff] }
  0x69   : > { %3254 = vst [vmem:[%s4112_s17 + $0x158] sm:$0xff] %v2742_v28  ;;  %v2745_v44 = vmul.f32 %v2233_v37, %v185_v59  ;;  %v1213_v46 = vmax.f32 %v701_v32, 0.0  ;;  %v703_v47 = vadd.f32 3.0, %v191_v34  ;;  %v704_v36 = vadd.f32 3.0, %v192_v30 }
  0x6a   : > { %3255 = vst [vmem:[%s4112_s17 + $0x160] sm:$0xff] %v2743_v31  ;;  %v2234_v41 = vmul.f32 0.16666667, %v1722_v38  ;;  %v1723_v49 = vmin.f32 %v1211_v39, 6.0  ;;  %v1724_v45 = vmin.f32 %v1212_v40, 6.0  ;;  %v1214_v50 = vmax.f32 %v702_v42, 0.0 }
  0x6b   : > { %3256 = vst [vmem:[%s4112_s17 + $0x168] sm:$0xff] %v2744_v35  ;;  %v1725_v51 = vmin.f32 %v1213_v46, 6.0  ;;  %v1215_v52 = vmax.f32 %v703_v47, 0.0  ;;  %v1216_v53 = vmax.f32 %v704_v36, 0.0  ;;  %v705_v55 = vadd.f32 3.0, %v193_v43  ;;  %v4287_v40 = vld [vmem:[%s4082_s24 + $0x200] sm:$0xff] }
  0x6c   : > { %3257 = vst [vmem:[%s4112_s17 + $0x170] sm:$0xff] %v2745_v44  ;;  %v2746_v57 = vmul.f32 %v2234_v41, %v4234_v54  ;;  %v2235_v59 = vmul.f32 0.16666667, %v1723_v49  ;;  %v2236_v60 = vmul.f32 0.16666667, %v1724_v45  ;;  %v1726_v61 = vmin.f32 %v1214_v50, 6.0 }
  0x6d   : > { %v2237_v62 = vmul.f32 0.16666667, %v1725_v51  ;;  %v1727_v58 = vmin.f32 %v1215_v52, 6.0  ;;  %v1728_v63 = vmin.f32 %v1216_v53, 6.0  ;;  %v1217_v0 = vmax.f32 %v705_v55, 0.0  ;;  %v204_v45 = vld [vmem:[%s4082_s24 + $0x208] sm:$0xff] }
  0x6e   : > { %3258 = vst [vmem:[%s4112_s17 + $0x178] sm:$0xff] %v2746_v57  ;;  %v2747_v2 = vmul.f32 %v2235_v59, %v4239_v7  ;;  %v2748_v3 = vmul.f32 %v2236_v60, %v188_v17  ;;  %v2238_v4 = vmul.f32 0.16666667, %v1726_v61  ;;  %v706_v54 = vadd.f32 3.0, %v4258_v48  ;;  %v200_v17 = vld [vmem:[%s4082_s24 + $0x1e8] sm:$0xff]  ;;  %v205_v53 = vld [vmem:[%s4082_s24 + $0x210] sm:$0xff] }
  0x6f   : > { %v2749_v6 = vmul.f32 %v2237_v62, %v189_v21  ;;  %v2239_v8 = vmul.f32 0.16666667, %v1727_v58  ;;  %v2240_v9 = vmul.f32 0.16666667, %v1728_v63  ;;  %v1729_v10 = vmin.f32 %v1217_v0, 6.0  ;;  %v206_v61 = vld [vmem:[%s4082_s24 + $0x218] sm:$0xff] }
  0x70   : > { %3259 = vst [vmem:[%s4112_s17 + $0x180] sm:$0xff] %v2747_v2  ;;  %v2750_v14 = vmul.f32 %v2238_v4, %v190_v27  ;;  %v1218_v15 = vmax.f32 %v706_v54, 0.0  ;;  %v707_v7 = vadd.f32 3.0, %v4263_v56  ;;  %v708_v16 = vadd.f32 3.0, %v196_v1  ;;  %v207_v0 = vld [vmem:[%s4082_s24 + $0x220] sm:$0xff] }
  0x71   : > { %3260 = vst [vmem:[%s4112_s17 + $0x188] sm:$0xff] %v2748_v3  ;;  %v2751_v18 = vmul.f32 %v2239_v8, %v191_v34  ;;  %v2752_v19 = vmul.f32 %v2240_v9, %v192_v30  ;;  %v2241_v20 = vmul.f32 0.16666667, %v1729_v10  ;;  %v709_v12 = vadd.f32 3.0, %v197_v5  ;;  %v209_v10 = vld [vmem:[%s4082_s24 + $0x230] sm:$0xff] }
  0x72   : > { %3261 = vst [vmem:[%s4112_s17 + $0x190] sm:$0xff] %v2749_v6  ;;  %v1730_v21 = vmin.f32 %v1218_v15, 6.0  ;;  %v1219_v23 = vmax.f32 %v707_v7, 0.0  ;;  %v1220_v22 = vmax.f32 %v708_v16, 0.0  ;;  %v710_v25 = vadd.f32 3.0, %v198_v11  ;;  %v4306_v16 = vld [vmem:[%s4082_s24 + $0x238] sm:$0xff] }
  0x73   : > { %3262 = vst [vmem:[%s4112_s17 + $0x198] sm:$0xff] %v2750_v14  ;;  %v2753_v27 = vmul.f32 %v2241_v20, %v193_v43  ;;  %v1221_v28 = vmax.f32 %v709_v12, 0.0  ;;  %v711_v29 = vadd.f32 3.0, %v199_v13  ;;  %v712_v24 = vadd.f32 3.0, %v200_v17 }
  0x74   : > { %3263 = vst [vmem:[%s4112_s17 + $0x1a0] sm:$0xff] %v2751_v18  ;;  %v2242_v34 = vmul.f32 0.16666667, %v1730_v21  ;;  %v1731_v30 = vmin.f32 %v1219_v23, 6.0  ;;  %v1732_v31 = vmin.f32 %v1220_v22, 6.0  ;;  %v1222_v35 = vmax.f32 %v710_v25, 0.0 }
  0x75   : > { %3264 = vst [vmem:[%s4112_s17 + $0x1a8] sm:$0xff] %v2752_v19  ;;  %v1733_v37 = vmin.f32 %v1221_v28, 6.0  ;;  %v1223_v32 = vmax.f32 %v711_v29, 0.0  ;;  %v1224_v38 = vmax.f32 %v712_v24, 0.0  ;;  %v713_v39 = vadd.f32 3.0, %v201_v26  ;;  %v4311_v22 = vld [vmem:[%s4082_s24 + $0x240] sm:$0xff] }
  0x76   : > { %3265 = vst [vmem:[%s4112_s17 + $0x1b0] sm:$0xff] %v2753_v27  ;;  %v2754_v42 = vmul.f32 %v2242_v34, %v4258_v48  ;;  %v2243_v43 = vmul.f32 0.16666667, %v1731_v30  ;;  %v2244_v44 = vmul.f32 0.16666667, %v1732_v31  ;;  %v1734_v46 = vmin.f32 %v1222_v35, 6.0 }
  0x77   : > { %v2245_v47 = vmul.f32 0.16666667, %v1733_v37  ;;  %v1735_v36 = vmin.f32 %v1223_v32, 6.0  ;;  %v1736_v41 = vmin.f32 %v1224_v38, 6.0  ;;  %v1225_v49 = vmax.f32 %v713_v39, 0.0  ;;  %v212_v31 = vld [vmem:[%s4082_s24 + $0x248] sm:$0xff] }
  0x78   : > { %3266 = vst [vmem:[%s4112_s17 + $0x1b8] sm:$0xff] %v2754_v42  ;;  %v2755_v50 = vmul.f32 %v2243_v43, %v4263_v56  ;;  %v2756_v51 = vmul.f32 %v2244_v44, %v196_v1  ;;  %v2246_v52 = vmul.f32 0.16666667, %v1734_v46  ;;  %v714_v48 = vadd.f32 3.0, %v4282_v33  ;;  %v208_v1 = vld [vmem:[%s4082_s24 + $0x228] sm:$0xff]  ;;  %v213_v38 = vld [vmem:[%s4082_s24 + $0x250] sm:$0xff] }
  0x79   : > { %v2757_v55 = vmul.f32 %v2245_v47, %v197_v5  ;;  %v2247_v57 = vmul.f32 0.16666667, %v1735_v36  ;;  %v2248_v59 = vmul.f32 0.16666667, %v1736_v41  ;;  %v1737_v60 = vmin.f32 %v1225_v49, 6.0  ;;  %v214_v46 = vld [vmem:[%s4082_s24 + $0x258] sm:$0xff] }
  0x7a   : > { %3267 = vst [vmem:[%s4112_s17 + $0x1c0] sm:$0xff] %v2755_v50  ;;  %v2758_v62 = vmul.f32 %v2246_v52, %v198_v11  ;;  %v1226_v58 = vmax.f32 %v714_v48, 0.0  ;;  %v715_v56 = vadd.f32 3.0, %v4287_v40  ;;  %v716_v63 = vadd.f32 3.0, %v204_v45  ;;  %v215_v49 = vld [vmem:[%s4082_s24 + $0x260] sm:$0xff] }
  0x7b   : > { %3268 = vst [vmem:[%s4112_s17 + $0x1c8] sm:$0xff] %v2756_v51  ;;  %v2759_v2 = vmul.f32 %v2247_v57, %v199_v13  ;;  %v2760_v3 = vmul.f32 %v2248_v59, %v200_v17  ;;  %v2249_v4 = vmul.f32 0.16666667, %v1737_v60  ;;  %v717_v54 = vadd.f32 3.0, %v205_v53  ;;  %v217_v60 = vld [vmem:[%s4082_s24 + $0x270] sm:$0xff] }
  0x7c   : > { %3269 = vst [vmem:[%s4112_s17 + $0x1d0] sm:$0xff] %v2757_v55  ;;  %v1738_v5 = vmin.f32 %v1226_v58, 6.0  ;;  %v1227_v6 = vmax.f32 %v715_v56, 0.0  ;;  %v1228_v8 = vmax.f32 %v716_v63, 0.0  ;;  %v718_v9 = vadd.f32 3.0, %v206_v61  ;;  %v4330_v63 = vld [vmem:[%s4082_s24 + $0x278] sm:$0xff] }
  0x7d   : > { %3270 = vst [vmem:[%s4112_s17 + $0x1d8] sm:$0xff] %v2758_v62  ;;  %v2761_v11 = vmul.f32 %v2249_v4, %v201_v26  ;;  %v1229_v14 = vmax.f32 %v717_v54, 0.0  ;;  %v719_v15 = vadd.f32 3.0, %v207_v0  ;;  %v720_v7 = vadd.f32 3.0, %v208_v1 }
  0x7e   : > { %3271 = vst [vmem:[%s4112_s17 + $0x1e0] sm:$0xff] %v2759_v2  ;;  %v2250_v13 = vmul.f32 0.16666667, %v1738_v5  ;;  %v1739_v17 = vmin.f32 %v1227_v6, 6.0  ;;  %v1740_v18 = vmin.f32 %v1228_v8, 6.0  ;;  %v1230_v19 = vmax.f32 %v718_v9, 0.0 }
  0x7f   : > { %3272 = vst [vmem:[%s4112_s17 + $0x1e8] sm:$0xff] %v2760_v3  ;;  %v1741_v20 = vmin.f32 %v1229_v14, 6.0  ;;  %v1231_v12 = vmax.f32 %v719_v15, 0.0  ;;  %v1232_v21 = vmax.f32 %v720_v7, 0.0  ;;  %v721_v23 = vadd.f32 3.0, %v209_v10  ;;  %v4335_v8 = vld [vmem:[%s4082_s24 + $0x280] sm:$0xff] }
  0x80   : > { %3273 = vst [vmem:[%s4112_s17 + $0x1f0] sm:$0xff] %v2761_v11  ;;  %v2762_v25 = vmul.f32 %v2250_v13, %v4282_v33  ;;  %v2251_v26 = vmul.f32 0.16666667, %v1739_v17  ;;  %v2252_v27 = vmul.f32 0.16666667, %v1740_v18  ;;  %v1742_v28 = vmin.f32 %v1230_v19, 6.0 }
  0x81   : > { %v2253_v29 = vmul.f32 0.16666667, %v1741_v20  ;;  %v1743_v24 = vmin.f32 %v1231_v12, 6.0  ;;  %v1744_v34 = vmin.f32 %v1232_v21, 6.0  ;;  %v1233_v30 = vmax.f32 %v721_v23, 0.0  ;;  %v220_v18 = vld [vmem:[%s4082_s24 + $0x288] sm:$0xff] }
  0x82   : > { %3274 = vst [vmem:[%s4112_s17 + $0x1f8] sm:$0xff] %v2762_v25  ;;  %v2763_v35 = vmul.f32 %v2251_v26, %v4287_v40  ;;  %v2764_v37 = vmul.f32 %v2252_v27, %v204_v45  ;;  %v2254_v32 = vmul.f32 0.16666667, %v1742_v28  ;;  %v722_v33 = vadd.f32 3.0, %v4306_v16  ;;  %v216_v45 = vld [vmem:[%s4082_s24 + $0x268] sm:$0xff]  ;;  %v221_v21 = vld [vmem:[%s4082_s24 + $0x290] sm:$0xff] }
  0x83   : > { %v2765_v39 = vmul.f32 %v2253_v29, %v205_v53  ;;  %v2255_v42 = vmul.f32 0.16666667, %v1743_v24  ;;  %v2256_v43 = vmul.f32 0.16666667, %v1744_v34  ;;  %v1745_v44 = vmin.f32 %v1233_v30, 6.0  ;;  %v222_v28 = vld [vmem:[%s4082_s24 + $0x298] sm:$0xff] }
  0x84   : > { %3275 = vst [vmem:[%s4112_s17 + $0x200] sm:$0xff] %v2763_v35  ;;  %v2766_v47 = vmul.f32 %v2254_v32, %v206_v61  ;;  %v1234_v36 = vmax.f32 %v722_v33, 0.0  ;;  %v723_v40 = vadd.f32 3.0, %v4311_v22  ;;  %v724_v41 = vadd.f32 3.0, %v212_v31  ;;  %v223_v30 = vld [vmem:[%s4082_s24 + $0x2a0] sm:$0xff] }
  0x85   : > { %3276 = vst [vmem:[%s4112_s17 + $0x208] sm:$0xff] %v2764_v37  ;;  %v2767_v50 = vmul.f32 %v2255_v42, %v207_v0  ;;  %v2768_v51 = vmul.f32 %v2256_v43, %v208_v1  ;;  %v2257_v52 = vmul.f32 0.16666667, %v1745_v44  ;;  %v725_v48 = vadd.f32 3.0, %v213_v38  ;;  %v225_v44 = vld [vmem:[%s4082_s24 + $0x2b0] sm:$0xff] }
  0x86   : > { %3277 = vst [vmem:[%s4112_s17 + $0x210] sm:$0xff] %v2765_v39  ;;  %v1746_v53 = vmin.f32 %v1234_v36, 6.0  ;;  %v1235_v55 = vmax.f32 %v723_v40, 0.0  ;;  %v1236_v57 = vmax.f32 %v724_v41, 0.0  ;;  %v726_v59 = vadd.f32 3.0, %v214_v46  ;;  %v4354_v41 = vld [vmem:[%s4082_s24 + $0x2b8] sm:$0xff] }
  0x87   : > { %3278 = vst [vmem:[%s4112_s17 + $0x218] sm:$0xff] %v2766_v47  ;;  %v2769_v61 = vmul.f32 %v2257_v52, %v209_v10  ;;  %v1237_v62 = vmax.f32 %v725_v48, 0.0  ;;  %v727_v58 = vadd.f32 3.0, %v215_v49  ;;  %v728_v56 = vadd.f32 3.0, %v216_v45 }
  0x88   : > { %3279 = vst [vmem:[%s4112_s17 + $0x220] sm:$0xff] %v2767_v50  ;;  %v2258_v0 = vmul.f32 0.16666667, %v1746_v53  ;;  %v1747_v1 = vmin.f32 %v1235_v55, 6.0  ;;  %v1748_v2 = vmin.f32 %v1236_v57, 6.0  ;;  %v1238_v3 = vmax.f32 %v726_v59, 0.0 }
  0x89   : > { %3280 = vst [vmem:[%s4112_s17 + $0x228] sm:$0xff] %v2768_v51  ;;  %v1749_v4 = vmin.f32 %v1237_v62, 6.0  ;;  %v1239_v54 = vmax.f32 %v727_v58, 0.0  ;;  %v1240_v5 = vmax.f32 %v728_v56, 0.0  ;;  %v729_v6 = vadd.f32 3.0, %v217_v60  ;;  %v4359_v57 = vld [vmem:[%s4082_s24 + $0x2c0] sm:$0xff] }
  0x8a   : > { %3281 = vst [vmem:[%s4112_s17 + $0x230] sm:$0xff] %v2769_v61  ;;  %v2770_v9 = vmul.f32 %v2258_v0, %v4306_v16  ;;  %v2259_v10 = vmul.f32 0.16666667, %v1747_v1  ;;  %v2260_v11 = vmul.f32 0.16666667, %v1748_v2  ;;  %v1750_v14 = vmin.f32 %v1238_v3, 6.0 }
  0x8b   : > { %v2261_v15 = vmul.f32 0.16666667, %v1749_v4  ;;  %v1751_v7 = vmin.f32 %v1239_v54, 6.0  ;;  %v1752_v13 = vmin.f32 %v1240_v5, 6.0  ;;  %v1241_v17 = vmax.f32 %v729_v6, 0.0  ;;  %v228_v2 = vld [vmem:[%s4082_s24 + $0x2c8] sm:$0xff] }
  0x8c   : > { %3282 = vst [vmem:[%s4112_s17 + $0x238] sm:$0xff] %v2770_v9  ;;  %v2771_v19 = vmul.f32 %v2259_v10, %v4311_v22  ;;  %v2772_v20 = vmul.f32 %v2260_v11, %v212_v31  ;;  %v2262_v12 = vmul.f32 0.16666667, %v1750_v14  ;;  %v730_v16 = vadd.f32 3.0, %v4330_v63  ;;  %v224_v31 = vld [vmem:[%s4082_s24 + $0x2a8] sm:$0xff]  ;;  %v229_v5 = vld [vmem:[%s4082_s24 + $0x2d0] sm:$0xff] }
  0x8d   : > { %v2773_v23 = vmul.f32 %v2261_v15, %v213_v38  ;;  %v2263_v25 = vmul.f32 0.16666667, %v1751_v7  ;;  %v2264_v26 = vmul.f32 0.16666667, %v1752_v13  ;;  %v1753_v27 = vmin.f32 %v1241_v17, 6.0  ;;  %v230_v14 = vld [vmem:[%s4082_s24 + $0x2d8] sm:$0xff] }
  0x8e   : > { %3283 = vst [vmem:[%s4112_s17 + $0x240] sm:$0xff] %v2771_v19  ;;  %v2774_v29 = vmul.f32 %v2262_v12, %v214_v46  ;;  %v1242_v24 = vmax.f32 %v730_v16, 0.0  ;;  %v731_v22 = vadd.f32 3.0, %v4335_v8  ;;  %v732_v34 = vadd.f32 3.0, %v220_v18  ;;  %v231_v17 = vld [vmem:[%s4082_s24 + $0x2e0] sm:$0xff] }
  0x8f   : > { %3284 = vst [vmem:[%s4112_s17 + $0x248] sm:$0xff] %v2772_v20  ;;  %v2775_v35 = vmul.f32 %v2263_v25, %v215_v49  ;;  %v2776_v37 = vmul.f32 %v2264_v26, %v216_v45  ;;  %v2265_v32 = vmul.f32 0.16666667, %v1753_v27  ;;  %v733_v33 = vadd.f32 3.0, %v221_v21  ;;  %v233_v27 = vld [vmem:[%s4082_s24 + $0x2f0] sm:$0xff] }
  0x90   : > { %3285 = vst [vmem:[%s4112_s17 + $0x250] sm:$0xff] %v2773_v23  ;;  %v1754_v38 = vmin.f32 %v1242_v24, 6.0  ;;  %v1243_v39 = vmax.f32 %v731_v22, 0.0  ;;  %v1244_v42 = vmax.f32 %v732_v34, 0.0  ;;  %v734_v43 = vadd.f32 3.0, %v222_v28  ;;  %v4378_v34 = vld [vmem:[%s4082_s24 + $0x2f8] sm:$0xff] }
  0x91   : > { %3286 = vst [vmem:[%s4112_s17 + $0x258] sm:$0xff] %v2774_v29  ;;  %v2777_v46 = vmul.f32 %v2265_v32, %v217_v60  ;;  %v1245_v47 = vmax.f32 %v733_v33, 0.0  ;;  %v735_v36 = vadd.f32 3.0, %v223_v30  ;;  %v736_v40 = vadd.f32 3.0, %v224_v31 }
  0x92   : > { %3287 = vst [vmem:[%s4112_s17 + $0x260] sm:$0xff] %v2775_v35  ;;  %v2266_v49 = vmul.f32 0.16666667, %v1754_v38  ;;  %v1755_v45 = vmin.f32 %v1243_v39, 6.0  ;;  %v1756_v50 = vmin.f32 %v1244_v42, 6.0  ;;  %v1246_v51 = vmax.f32 %v734_v43, 0.0 }
  0x93   : > { %3288 = vst [vmem:[%s4112_s17 + $0x268] sm:$0xff] %v2776_v37  ;;  %v1757_v52 = vmin.f32 %v1245_v47, 6.0  ;;  %v1247_v48 = vmax.f32 %v735_v36, 0.0  ;;  %v1248_v53 = vmax.f32 %v736_v40, 0.0  ;;  %v737_v55 = vadd.f32 3.0, %v225_v44  ;;  %v4383_v42 = vld [vmem:[%s4082_s24 + $0x300] sm:$0xff] }
  0x94   : > { %3289 = vst [vmem:[%s4112_s17 + $0x270] sm:$0xff] %v2777_v46  ;;  %v2778_v59 = vmul.f32 %v2266_v49, %v4330_v63  ;;  %v2267_v60 = vmul.f32 0.16666667, %v1755_v45  ;;  %v2268_v61 = vmul.f32 0.16666667, %v1756_v50  ;;  %v1758_v62 = vmin.f32 %v1246_v51, 6.0 }
  0x95   : > { %v2269_v58 = vmul.f32 0.16666667, %v1757_v52  ;;  %v1759_v56 = vmin.f32 %v1247_v48, 6.0  ;;  %v1760_v0 = vmin.f32 %v1248_v53, 6.0  ;;  %v1249_v1 = vmax.f32 %v737_v55, 0.0  ;;  %v236_v50 = vld [vmem:[%s4082_s24 + $0x308] sm:$0xff] }
  0x96   : > { %3290 = vst [vmem:[%s4112_s17 + $0x278] sm:$0xff] %v2778_v59  ;;  %v2779_v3 = vmul.f32 %v2267_v60, %v4335_v8  ;;  %v2780_v4 = vmul.f32 %v2268_v61, %v220_v18  ;;  %v2270_v54 = vmul.f32 0.16666667, %v1758_v62  ;;  %v738_v63 = vadd.f32 3.0, %v4354_v41  ;;  %v232_v18 = vld [vmem:[%s4082_s24 + $0x2e8] sm:$0xff]  ;;  %v237_v53 = vld [vmem:[%s4082_s24 + $0x310] sm:$0xff] }
  0x97   : > { %v2781_v6 = vmul.f32 %v2269_v58, %v221_v21  ;;  %v2271_v9 = vmul.f32 0.16666667, %v1759_v56  ;;  %v2272_v10 = vmul.f32 0.16666667, %v1760_v0  ;;  %v1761_v11 = vmin.f32 %v1249_v1, 6.0  ;;  %v238_v62 = vld [vmem:[%s4082_s24 + $0x318] sm:$0xff] }
  0x98   : > { %3291 = vst [vmem:[%s4112_s17 + $0x280] sm:$0xff] %v2779_v3  ;;  %v2782_v15 = vmul.f32 %v2270_v54, %v222_v28  ;;  %v1250_v7 = vmax.f32 %v738_v63, 0.0  ;;  %v739_v8 = vadd.f32 3.0, %v4359_v57  ;;  %v740_v13 = vadd.f32 3.0, %v228_v2  ;;  %v239_v1 = vld [vmem:[%s4082_s24 + $0x320] sm:$0xff] }
  0x99   : > { %3292 = vst [vmem:[%s4112_s17 + $0x288] sm:$0xff] %v2780_v4  ;;  %v2783_v19 = vmul.f32 %v2271_v9, %v223_v30  ;;  %v2784_v20 = vmul.f32 %v2272_v10, %v224_v31  ;;  %v2273_v12 = vmul.f32 0.16666667, %v1761_v11  ;;  %v741_v16 = vadd.f32 3.0, %v229_v5  ;;  %v241_v11 = vld [vmem:[%s4082_s24 + $0x330] sm:$0xff] }
  0x9a   : > { %3293 = vst [vmem:[%s4112_s17 + $0x290] sm:$0xff] %v2781_v6  ;;  %v1762_v21 = vmin.f32 %v1250_v7, 6.0  ;;  %v1251_v23 = vmax.f32 %v739_v8, 0.0  ;;  %v1252_v25 = vmax.f32 %v740_v13, 0.0  ;;  %v742_v26 = vadd.f32 3.0, %v230_v14  ;;  %v4402_v13 = vld [vmem:[%s4082_s24 + $0x338] sm:$0xff] }
  0x9b   : > { %3294 = vst [vmem:[%s4112_s17 + $0x298] sm:$0xff] %v2782_v15  ;;  %v2785_v28 = vmul.f32 %v2273_v12, %v225_v44  ;;  %v1253_v29 = vmax.f32 %v741_v16, 0.0  ;;  %v743_v24 = vadd.f32 3.0, %v231_v17  ;;  %v744_v22 = vadd.f32 3.0, %v232_v18 }
  0x9c   : > { %3295 = vst [vmem:[%s4112_s17 + $0x2a0] sm:$0xff] %v2783_v19  ;;  %v2274_v30 = vmul.f32 0.16666667, %v1762_v21  ;;  %v1763_v31 = vmin.f32 %v1251_v23, 6.0  ;;  %v1764_v35 = vmin.f32 %v1252_v25, 6.0  ;;  %v1254_v37 = vmax.f32 %v742_v26, 0.0 }
  0x9d   : > { %3296 = vst [vmem:[%s4112_s17 + $0x2a8] sm:$0xff] %v2784_v20  ;;  %v1765_v32 = vmin.f32 %v1253_v29, 6.0  ;;  %v1255_v33 = vmax.f32 %v743_v24, 0.0  ;;  %v1256_v38 = vmax.f32 %v744_v22, 0.0  ;;  %v745_v39 = vadd.f32 3.0, %v233_v27  ;;  %v4407_v25 = vld [vmem:[%s4082_s24 + $0x340] sm:$0xff] }
  0x9e   : > { %3297 = vst [vmem:[%s4112_s17 + $0x2b0] sm:$0xff] %v2785_v28  ;;  %v2786_v43 = vmul.f32 %v2274_v30, %v4354_v41  ;;  %v2275_v44 = vmul.f32 0.16666667, %v1763_v31  ;;  %v2276_v46 = vmul.f32 0.16666667, %v1764_v35  ;;  %v1766_v47 = vmin.f32 %v1254_v37, 6.0 }
  0x9f   : > { %v2277_v36 = vmul.f32 0.16666667, %v1765_v32  ;;  %v1767_v40 = vmin.f32 %v1255_v33, 6.0  ;;  %v1768_v49 = vmin.f32 %v1256_v38, 6.0  ;;  %v1257_v45 = vmax.f32 %v745_v39, 0.0  ;;  %v244_v35 = vld [vmem:[%s4082_s24 + $0x348] sm:$0xff] }
  0xa0   : > { %3298 = vst [vmem:[%s4112_s17 + $0x2b8] sm:$0xff] %v2786_v43  ;;  %v2787_v51 = vmul.f32 %v2275_v44, %v4359_v57  ;;  %v2788_v52 = vmul.f32 %v2276_v46, %v228_v2  ;;  %v2278_v48 = vmul.f32 0.16666667, %v1766_v47  ;;  %v746_v41 = vadd.f32 3.0, %v4378_v34  ;;  %v240_v2 = vld [vmem:[%s4082_s24 + $0x328] sm:$0xff]  ;;  %v245_v38 = vld [vmem:[%s4082_s24 + $0x350] sm:$0xff] }
  0xa1   : > { %v2789_v55 = vmul.f32 %v2277_v36, %v229_v5  ;;  %v2279_v59 = vmul.f32 0.16666667, %v1767_v40  ;;  %v2280_v60 = vmul.f32 0.16666667, %v1768_v49  ;;  %v1769_v61 = vmin.f32 %v1257_v45, 6.0  ;;  %v246_v47 = vld [vmem:[%s4082_s24 + $0x358] sm:$0xff] }
  0xa2   : > { %3299 = vst [vmem:[%s4112_s17 + $0x2c0] sm:$0xff] %v2787_v51  ;;  %v2790_v58 = vmul.f32 %v2278_v48, %v230_v14  ;;  %v1258_v56 = vmax.f32 %v746_v41, 0.0  ;;  %v747_v57 = vadd.f32 3.0, %v4383_v42  ;;  %v748_v0 = vadd.f32 3.0, %v236_v50  ;;  %v247_v45 = vld [vmem:[%s4082_s24 + $0x360] sm:$0xff] }
  0xa3   : > { %3300 = vst [vmem:[%s4112_s17 + $0x2c8] sm:$0xff] %v2788_v52  ;;  %v2791_v3 = vmul.f32 %v2279_v59, %v231_v17  ;;  %v2792_v4 = vmul.f32 %v2280_v60, %v232_v18  ;;  %v2281_v54 = vmul.f32 0.16666667, %v1769_v61  ;;  %v749_v63 = vadd.f32 3.0, %v237_v53  ;;  %v249_v61 = vld [vmem:[%s4082_s24 + $0x370] sm:$0xff] }
  0xa4   : > { %3301 = vst [vmem:[%s4112_s17 + $0x2d0] sm:$0xff] %v2789_v55  ;;  %v1770_v5 = vmin.f32 %v1258_v56, 6.0  ;;  %v1259_v6 = vmax.f32 %v747_v57, 0.0  ;;  %v1260_v9 = vmax.f32 %v748_v0, 0.0  ;;  %v750_v10 = vadd.f32 3.0, %v238_v62  ;;  %v4426_v0 = vld [vmem:[%s4082_s24 + $0x378] sm:$0xff] }
  0xa5   : > { %3302 = vst [vmem:[%s4112_s17 + $0x2d8] sm:$0xff] %v2790_v58  ;;  %v2793_v14 = vmul.f32 %v2281_v54, %v233_v27  ;;  %v1261_v15 = vmax.f32 %v749_v63, 0.0  ;;  %v751_v7 = vadd.f32 3.0, %v239_v1  ;;  %v752_v8 = vadd.f32 3.0, %v240_v2 }
  0xa6   : > { %3303 = vst [vmem:[%s4112_s17 + $0x2e0] sm:$0xff] %v2791_v3  ;;  %v2282_v17 = vmul.f32 0.16666667, %v1770_v5  ;;  %v1771_v18 = vmin.f32 %v1259_v6, 6.0  ;;  %v1772_v19 = vmin.f32 %v1260_v9, 6.0  ;;  %v1262_v20 = vmax.f32 %v750_v10, 0.0 }
  0xa7   : > { %3304 = vst [vmem:[%s4112_s17 + $0x2e8] sm:$0xff] %v2792_v4  ;;  %v1773_v12 = vmin.f32 %v1261_v15, 6.0  ;;  %v1263_v16 = vmax.f32 %v751_v7, 0.0  ;;  %v1264_v21 = vmax.f32 %v752_v8, 0.0  ;;  %v753_v23 = vadd.f32 3.0, %v241_v11  ;;  %v4431_v9 = vld [vmem:[%s4082_s24 + $0x380] sm:$0xff] }
  0xa8   : > { %3305 = vst [vmem:[%s4112_s17 + $0x2f0] sm:$0xff] %v2793_v14  ;;  %v2794_v26 = vmul.f32 %v2282_v17, %v4378_v34  ;;  %v2283_v27 = vmul.f32 0.16666667, %v1771_v18  ;;  %v2284_v28 = vmul.f32 0.16666667, %v1772_v19  ;;  %v1774_v29 = vmin.f32 %v1262_v20, 6.0 }
  0xa9   : > { %v2285_v24 = vmul.f32 0.16666667, %v1773_v12  ;;  %v1775_v22 = vmin.f32 %v1263_v16, 6.0  ;;  %v1776_v30 = vmin.f32 %v1264_v21, 6.0  ;;  %v1265_v31 = vmax.f32 %v753_v23, 0.0  ;;  %v252_v19 = vld [vmem:[%s4082_s24 + $0x388] sm:$0xff] }
  0xaa   : > { %3306 = vst [vmem:[%s4112_s17 + $0x2f8] sm:$0xff] %v2794_v26  ;;  %v2795_v37 = vmul.f32 %v2283_v27, %v4383_v42  ;;  %v2796_v32 = vmul.f32 %v2284_v28, %v236_v50  ;;  %v2286_v33 = vmul.f32 0.16666667, %v1774_v29  ;;  %v754_v34 = vadd.f32 3.0, %v4402_v13  ;;  %v248_v50 = vld [vmem:[%s4082_s24 + $0x368] sm:$0xff]  ;;  %v253_v21 = vld [vmem:[%s4082_s24 + $0x390] sm:$0xff] }
  0xab   : > { %v2797_v39 = vmul.f32 %v2285_v24, %v237_v53  ;;  %v2287_v43 = vmul.f32 0.16666667, %v1775_v22  ;;  %v2288_v44 = vmul.f32 0.16666667, %v1776_v30  ;;  %v1777_v46 = vmin.f32 %v1265_v31, 6.0  ;;  %v254_v29 = vld [vmem:[%s4082_s24 + $0x398] sm:$0xff] }
  0xac   : > { %3307 = vst [vmem:[%s4112_s17 + $0x300] sm:$0xff] %v2795_v37  ;;  %v2798_v36 = vmul.f32 %v2286_v33, %v238_v62  ;;  %v1266_v40 = vmax.f32 %v754_v34, 0.0  ;;  %v755_v42 = vadd.f32 3.0, %v4407_v25  ;;  %v756_v49 = vadd.f32 3.0, %v244_v35  ;;  %v255_v31 = vld [vmem:[%s4082_s24 + $0x3a0] sm:$0xff] }
  0xad   : > { %3308 = vst [vmem:[%s4112_s17 + $0x308] sm:$0xff] %v2796_v32  ;;  %v2799_v51 = vmul.f32 %v2287_v43, %v239_v1  ;;  %v2800_v52 = vmul.f32 %v2288_v44, %v240_v2  ;;  %v2289_v48 = vmul.f32 0.16666667, %v1777_v46  ;;  %v757_v41 = vadd.f32 3.0, %v245_v38  ;;  %v257_v46 = vld [vmem:[%s4082_s24 + $0x3b0] sm:$0xff] }
  0xae   : > { %3309 = vst [vmem:[%s4112_s17 + $0x310] sm:$0xff] %v2797_v39  ;;  %v1778_v53 = vmin.f32 %v1266_v40, 6.0  ;;  %v1267_v55 = vmax.f32 %v755_v42, 0.0  ;;  %v1268_v59 = vmax.f32 %v756_v49, 0.0  ;;  %v758_v60 = vadd.f32 3.0, %v246_v47  ;;  %v4450_v49 = vld [vmem:[%s4082_s24 + $0x3b8] sm:$0xff] }
  0xaf   : > { %3310 = vst [vmem:[%s4112_s17 + $0x318] sm:$0xff] %v2798_v36  ;;  %v2801_v62 = vmul.f32 %v2289_v48, %v241_v11  ;;  %v1269_v58 = vmax.f32 %v757_v41, 0.0  ;;  %v759_v56 = vadd.f32 3.0, %v247_v45  ;;  %v760_v57 = vadd.f32 3.0, %v248_v50 }
  0xb0   : > { %3311 = vst [vmem:[%s4112_s17 + $0x320] sm:$0xff] %v2799_v51  ;;  %v2290_v1 = vmul.f32 0.16666667, %v1778_v53  ;;  %v1779_v2 = vmin.f32 %v1267_v55, 6.0  ;;  %v1780_v3 = vmin.f32 %v1268_v59, 6.0  ;;  %v1270_v4 = vmax.f32 %v758_v60, 0.0 }
  0xb1   : > { %3312 = vst [vmem:[%s4112_s17 + $0x328] sm:$0xff] %v2800_v52  ;;  %v1781_v54 = vmin.f32 %v1269_v58, 6.0  ;;  %v1271_v63 = vmax.f32 %v759_v56, 0.0  ;;  %v1272_v5 = vmax.f32 %v760_v57, 0.0  ;;  %v761_v6 = vadd.f32 3.0, %v249_v61  ;;  %v4455_v59 = vld [vmem:[%s4082_s24 + $0x3c0] sm:$0xff] }
  0xb2   : > { %3313 = vst [vmem:[%s4112_s17 + $0x330] sm:$0xff] %v2801_v62  ;;  %v2802_v10 = vmul.f32 %v2290_v1, %v4402_v13  ;;  %v2291_v11 = vmul.f32 0.16666667, %v1779_v2  ;;  %v2292_v14 = vmul.f32 0.16666667, %v1780_v3  ;;  %v1782_v15 = vmin.f32 %v1270_v4, 6.0 }
  0xb3   : > { %v2293_v7 = vmul.f32 0.16666667, %v1781_v54  ;;  %v1783_v8 = vmin.f32 %v1271_v63, 6.0  ;;  %v1784_v17 = vmin.f32 %v1272_v5, 6.0  ;;  %v1273_v18 = vmax.f32 %v761_v6, 0.0  ;;  %v260_v3 = vld [vmem:[%s4082_s24 + $0x3c8] sm:$0xff] }
  0xb4   : > { %3314 = vst [vmem:[%s4112_s17 + $0x338] sm:$0xff] %v2802_v10  ;;  %v2803_v20 = vmul.f32 %v2291_v11, %v4407_v25  ;;  %v2804_v12 = vmul.f32 %v2292_v14, %v244_v35  ;;  %v2294_v16 = vmul.f32 0.16666667, %v1782_v15  ;;  %v762_v13 = vadd.f32 3.0, %v4426_v0  ;;  %v256_v35 = vld [vmem:[%s4082_s24 + $0x3a8] sm:$0xff]  ;;  %v261_v5 = vld [vmem:[%s4082_s24 + $0x3d0] sm:$0xff] }
  0xb5   : > { %v2805_v23 = vmul.f32 %v2293_v7, %v245_v38  ;;  %v2295_v26 = vmul.f32 0.16666667, %v1783_v8  ;;  %v2296_v27 = vmul.f32 0.16666667, %v1784_v17  ;;  %v1785_v28 = vmin.f32 %v1273_v18, 6.0  ;;  %v262_v15 = vld [vmem:[%s4082_s24 + $0x3d8] sm:$0xff] }
  0xb6   : > { %3315 = vst [vmem:[%s4112_s17 + $0x340] sm:$0xff] %v2803_v20  ;;  %v2806_v24 = vmul.f32 %v2294_v16, %v246_v47  ;;  %v1274_v22 = vmax.f32 %v762_v13, 0.0  ;;  %v763_v25 = vadd.f32 3.0, %v4431_v9  ;;  %v764_v30 = vadd.f32 3.0, %v252_v19  ;;  %v263_v18 = vld [vmem:[%s4082_s24 + $0x3e0] sm:$0xff] }
  0xb7   : > { %3316 = vst [vmem:[%s4112_s17 + $0x348] sm:$0xff] %v2804_v12  ;;  %v2807_v37 = vmul.f32 %v2295_v26, %v247_v45  ;;  %v2808_v32 = vmul.f32 %v2296_v27, %v248_v50  ;;  %v2297_v33 = vmul.f32 0.16666667, %v1785_v28  ;;  %v765_v34 = vadd.f32 3.0, %v253_v21  ;;  %v265_v28 = vld [vmem:[%s4082_s24 + $0x3f0] sm:$0xff] }
  0xb8   : > { %3317 = vst [vmem:[%s4112_s17 + $0x350] sm:$0xff] %v2805_v23  ;;  %v1786_v38 = vmin.f32 %v1274_v22, 6.0  ;;  %v1275_v39 = vmax.f32 %v763_v25, 0.0  ;;  %v1276_v43 = vmax.f32 %v764_v30, 0.0  ;;  %v766_v44 = vadd.f32 3.0, %v254_v29  ;;  %v4474_v30 = vld [vmem:[%s4082_s24 + $0x3f8] sm:$0xff] }
  0xb9   : > { %3318 = vst [vmem:[%s4112_s17 + $0x358] sm:$0xff] %v2806_v24  ;;  %v2809_v47 = vmul.f32 %v2297_v33, %v249_v61  ;;  %v1277_v36 = vmax.f32 %v765_v34, 0.0  ;;  %v767_v40 = vadd.f32 3.0, %v255_v31  ;;  %v768_v42 = vadd.f32 3.0, %v256_v35 }
  0xba   : > { %3319 = vst [vmem:[%s4112_s17 + $0x360] sm:$0xff] %v2807_v37  ;;  %v2298_v45 = vmul.f32 0.16666667, %v1786_v38  ;;  %v1787_v50 = vmin.f32 %v1275_v39, 6.0  ;;  %v1788_v51 = vmin.f32 %v1276_v43, 6.0  ;;  %v1278_v52 = vmax.f32 %v766_v44, 0.0 }
  0xbb   : > { %3320 = vst [vmem:[%s4112_s17 + $0x368] sm:$0xff] %v2808_v32  ;;  %v1789_v48 = vmin.f32 %v1277_v36, 6.0  ;;  %v1279_v41 = vmax.f32 %v767_v40, 0.0  ;;  %v1280_v53 = vmax.f32 %v768_v42, 0.0  ;;  %v769_v55 = vadd.f32 3.0, %v257_v46  ;;  %v4479_v43 = vld [vmem:[%s4082_s24 + $0x400] sm:$0xff] }
  0xbc   : > { %3321 = vst [vmem:[%s4112_s17 + $0x370] sm:$0xff] %v2809_v47  ;;  %v2810_v60 = vmul.f32 %v2298_v45, %v4426_v0  ;;  %v2299_v61 = vmul.f32 0.16666667, %v1787_v50  ;;  %v2300_v62 = vmul.f32 0.16666667, %v1788_v51  ;;  %v1790_v58 = vmin.f32 %v1278_v52, 6.0 }
  0xbd   : > { %v2301_v56 = vmul.f32 0.16666667, %v1789_v48  ;;  %v1791_v57 = vmin.f32 %v1279_v41, 6.0  ;;  %v1792_v1 = vmin.f32 %v1280_v53, 6.0  ;;  %v1281_v2 = vmax.f32 %v769_v55, 0.0  ;;  %v268_v51 = vld [vmem:[%s4082_s24 + $0x408] sm:$0xff] }
  0xbe   : > { %3322 = vst [vmem:[%s4112_s17 + $0x378] sm:$0xff] %v2810_v60  ;;  %v2811_v4 = vmul.f32 %v2299_v61, %v4431_v9  ;;  %v2812_v54 = vmul.f32 %v2300_v62, %v252_v19  ;;  %v2302_v63 = vmul.f32 0.16666667, %v1790_v58  ;;  %v770_v0 = vadd.f32 3.0, %v4450_v49  ;;  %v264_v19 = vld [vmem:[%s4082_s24 + $0x3e8] sm:$0xff]  ;;  %v269_v53 = vld [vmem:[%s4082_s24 + $0x410] sm:$0xff] }
  0xbf   : > { %v2813_v6 = vmul.f32 %v2301_v56, %v253_v21  ;;  %v2303_v10 = vmul.f32 0.16666667, %v1791_v57  ;;  %v2304_v11 = vmul.f32 0.16666667, %v1792_v1  ;;  %v1793_v14 = vmin.f32 %v1281_v2, 6.0  ;;  %v270_v58 = vld [vmem:[%s4082_s24 + $0x418] sm:$0xff] }
  0xc0   : > { %3323 = vst [vmem:[%s4112_s17 + $0x380] sm:$0xff] %v2811_v4  ;;  %v2814_v7 = vmul.f32 %v2302_v63, %v254_v29  ;;  %v1282_v8 = vmax.f32 %v770_v0, 0.0  ;;  %v771_v9 = vadd.f32 3.0, %v4455_v59  ;;  %v772_v17 = vadd.f32 3.0, %v260_v3  ;;  %v271_v2 = vld [vmem:[%s4082_s24 + $0x420] sm:$0xff] }
  0xc1   : > { %3324 = vst [vmem:[%s4112_s17 + $0x388] sm:$0xff] %v2812_v54  ;;  %v2815_v20 = vmul.f32 %v2303_v10, %v255_v31  ;;  %v2816_v12 = vmul.f32 %v2304_v11, %v256_v35  ;;  %v2305_v16 = vmul.f32 0.16666667, %v1793_v14  ;;  %v773_v13 = vadd.f32 3.0, %v261_v5  ;;  %v273_v14 = vld [vmem:[%s4082_s24 + $0x430] sm:$0xff] }
  0xc2   : > { %3325 = vst [vmem:[%s4112_s17 + $0x390] sm:$0xff] %v2813_v6  ;;  %v1794_v21 = vmin.f32 %v1282_v8, 6.0  ;;  %v1283_v23 = vmax.f32 %v771_v9, 0.0  ;;  %v1284_v26 = vmax.f32 %v772_v17, 0.0  ;;  %v774_v27 = vadd.f32 3.0, %v262_v15  ;;  %v4498_v17 = vld [vmem:[%s4082_s24 + $0x438] sm:$0xff] }
  0xc3   : > { %3326 = vst [vmem:[%s4112_s17 + $0x398] sm:$0xff] %v2814_v7  ;;  %v2817_v29 = vmul.f32 %v2305_v16, %v257_v46  ;;  %v1285_v24 = vmax.f32 %v773_v13, 0.0  ;;  %v775_v22 = vadd.f32 3.0, %v263_v18  ;;  %v776_v25 = vadd.f32 3.0, %v264_v19 }
  0xc4   : > { %3327 = vst [vmem:[%s4112_s17 + $0x3a0] sm:$0xff] %v2815_v20  ;;  %v2306_v31 = vmul.f32 0.16666667, %v1794_v21  ;;  %v1795_v35 = vmin.f32 %v1283_v23, 6.0  ;;  %v1796_v37 = vmin.f32 %v1284_v26, 6.0  ;;  %v1286_v32 = vmax.f32 %v774_v27, 0.0 }
  0xc5   : > { %3328 = vst [vmem:[%s4112_s17 + $0x3a8] sm:$0xff] %v2816_v12  ;;  %v1797_v33 = vmin.f32 %v1285_v24, 6.0  ;;  %v1287_v34 = vmax.f32 %v775_v22, 0.0  ;;  %v1288_v38 = vmax.f32 %v776_v25, 0.0  ;;  %v777_v39 = vadd.f32 3.0, %v265_v28  ;;  %v4503_v26 = vld [vmem:[%s4082_s24 + $0x440] sm:$0xff] }
  0xc6   : > { %3329 = vst [vmem:[%s4112_s17 + $0x3b0] sm:$0xff] %v2817_v29  ;;  %v2818_v44 = vmul.f32 %v2306_v31, %v4450_v49  ;;  %v2307_v46 = vmul.f32 0.16666667, %v1795_v35  ;;  %v2308_v47 = vmul.f32 0.16666667, %v1796_v37  ;;  %v1798_v36 = vmin.f32 %v1286_v32, 6.0 }
  0xc7   : > { %v2309_v40 = vmul.f32 0.16666667, %v1797_v33  ;;  %v1799_v42 = vmin.f32 %v1287_v34, 6.0  ;;  %v1800_v45 = vmin.f32 %v1288_v38, 6.0  ;;  %v1289_v50 = vmax.f32 %v777_v39, 0.0  ;;  %v276_v37 = vld [vmem:[%s4082_s24 + $0x448] sm:$0xff] }
  0xc8   : > { %3330 = vst [vmem:[%s4112_s17 + $0x3b8] sm:$0xff] %v2818_v44  ;;  %v2819_v52 = vmul.f32 %v2307_v46, %v4455_v59  ;;  %v2820_v48 = vmul.f32 %v2308_v47, %v260_v3  ;;  %v2310_v41 = vmul.f32 0.16666667, %v1798_v36  ;;  %v778_v49 = vadd.f32 3.0, %v4474_v30  ;;  %v272_v3 = vld [vmem:[%s4082_s24 + $0x428] sm:$0xff]  ;;  %v277_v38 = vld [vmem:[%s4082_s24 + $0x450] sm:$0xff] }
  0xc9   : > { %v2821_v55 = vmul.f32 %v2309_v40, %v261_v5  ;;  %v2311_v60 = vmul.f32 0.16666667, %v1799_v42  ;;  %v2312_v61 = vmul.f32 0.16666667, %v1800_v45  ;;  %v1801_v62 = vmin.f32 %v1289_v50, 6.0  ;;  %v278_v36 = vld [vmem:[%s4082_s24 + $0x458] sm:$0xff] }
  0xca   : > { %3331 = vst [vmem:[%s4112_s17 + $0x3c0] sm:$0xff] %v2819_v52  ;;  %v2822_v56 = vmul.f32 %v2310_v41, %v262_v15  ;;  %v1290_v57 = vmax.f32 %v778_v49, 0.0  ;;  %v779_v59 = vadd.f32 3.0, %v4479_v43  ;;  %v780_v1 = vadd.f32 3.0, %v268_v51  ;;  %v279_v50 = vld [vmem:[%s4082_s24 + $0x460] sm:$0xff] }
  0xcb   : > { %3332 = vst [vmem:[%s4112_s17 + $0x3c8] sm:$0xff] %v2820_v48  ;;  %v2823_v4 = vmul.f32 %v2311_v60, %v263_v18  ;;  %v2824_v54 = vmul.f32 %v2312_v61, %v264_v19  ;;  %v2313_v63 = vmul.f32 0.16666667, %v1801_v62  ;;  %v781_v0 = vadd.f32 3.0, %v269_v53  ;;  %v281_v62 = vld [vmem:[%s4082_s24 + $0x470] sm:$0xff] }
  0xcc   : > { %3333 = vst [vmem:[%s4112_s17 + $0x3d0] sm:$0xff] %v2821_v55  ;;  %v1802_v5 = vmin.f32 %v1290_v57, 6.0  ;;  %v1291_v6 = vmax.f32 %v779_v59, 0.0  ;;  %v1292_v10 = vmax.f32 %v780_v1, 0.0  ;;  %v782_v11 = vadd.f32 3.0, %v270_v58  ;;  %v4522_v1 = vld [vmem:[%s4082_s24 + $0x478] sm:$0xff] }
  0xcd   : > { %3334 = vst [vmem:[%s4112_s17 + $0x3d8] sm:$0xff] %v2822_v56  ;;  %v2825_v15 = vmul.f32 %v2313_v63, %v265_v28  ;;  %v1293_v7 = vmax.f32 %v781_v0, 0.0  ;;  %v783_v8 = vadd.f32 3.0, %v271_v2  ;;  %v784_v9 = vadd.f32 3.0, %v272_v3 }
  0xce   : > { %3335 = vst [vmem:[%s4112_s17 + $0x3e0] sm:$0xff] %v2823_v4  ;;  %v2314_v18 = vmul.f32 0.16666667, %v1802_v5  ;;  %v1803_v19 = vmin.f32 %v1291_v6, 6.0  ;;  %v1804_v20 = vmin.f32 %v1292_v10, 6.0  ;;  %v1294_v12 = vmax.f32 %v782_v11, 0.0 }
  0xcf   : > { %3336 = vst [vmem:[%s4112_s17 + $0x3e8] sm:$0xff] %v2824_v54  ;;  %v1805_v16 = vmin.f32 %v1293_v7, 6.0  ;;  %v1295_v13 = vmax.f32 %v783_v8, 0.0  ;;  %v1296_v21 = vmax.f32 %v784_v9, 0.0  ;;  %v785_v23 = vadd.f32 3.0, %v273_v14  ;;  %v4527_v10 = vld [vmem:[%s4082_s24 + $0x480] sm:$0xff] }
  0xd0   : > { %3337 = vst [vmem:[%s4112_s17 + $0x3f0] sm:$0xff] %v2825_v15  ;;  %v2826_v27 = vmul.f32 %v2314_v18, %v4474_v30  ;;  %v2315_v28 = vmul.f32 0.16666667, %v1803_v19  ;;  %v2316_v29 = vmul.f32 0.16666667, %v1804_v20  ;;  %v1806_v24 = vmin.f32 %v1294_v12, 6.0 }
  0xd1   : > { %v2317_v22 = vmul.f32 0.16666667, %v1805_v16  ;;  %v1807_v25 = vmin.f32 %v1295_v13, 6.0  ;;  %v1808_v31 = vmin.f32 %v1296_v21, 6.0  ;;  %v1297_v35 = vmax.f32 %v785_v23, 0.0  ;;  %v284_v20 = vld [vmem:[%s4082_s24 + $0x488] sm:$0xff] }
  0xd2   : > { %3338 = vst [vmem:[%s4112_s17 + $0x3f8] sm:$0xff] %v2826_v27  ;;  %v2827_v32 = vmul.f32 %v2315_v28, %v4479_v43  ;;  %v2828_v33 = vmul.f32 %v2316_v29, %v268_v51  ;;  %v2318_v34 = vmul.f32 0.16666667, %v1806_v24  ;;  %v786_v30 = vadd.f32 3.0, %v4498_v17  ;;  %v280_v51 = vld [vmem:[%s4082_s24 + $0x468] sm:$0xff]  ;;  %v285_v21 = vld [vmem:[%s4082_s24 + $0x490] sm:$0xff] }
  0xd3   : > { %v2829_v39 = vmul.f32 %v2317_v22, %v269_v53  ;;  %v2319_v44 = vmul.f32 0.16666667, %v1807_v25  ;;  %v2320_v46 = vmul.f32 0.16666667, %v1808_v31  ;;  %v1809_v47 = vmin.f32 %v1297_v35, 6.0  ;;  %v286_v24 = vld [vmem:[%s4082_s24 + $0x498] sm:$0xff] }
  0xd4   : > { %3339 = vst [vmem:[%s4112_s17 + $0x400] sm:$0xff] %v2827_v32  ;;  %v2830_v40 = vmul.f32 %v2318_v34, %v270_v58  ;;  %v1298_v42 = vmax.f32 %v786_v30, 0.0  ;;  %v787_v43 = vadd.f32 3.0, %v4503_v26  ;;  %v788_v45 = vadd.f32 3.0, %v276_v37  ;;  %v287_v35 = vld [vmem:[%s4082_s24 + $0x4a0] sm:$0xff] }
  0xd5   : > { %3340 = vst [vmem:[%s4112_s17 + $0x408] sm:$0xff] %v2828_v33  ;;  %v2831_v52 = vmul.f32 %v2319_v44, %v271_v2  ;;  %v2832_v48 = vmul.f32 %v2320_v46, %v272_v3  ;;  %v2321_v41 = vmul.f32 0.16666667, %v1809_v47  ;;  %v789_v49 = vadd.f32 3.0, %v277_v38  ;;  %v289_v47 = vld [vmem:[%s4082_s24 + $0x4b0] sm:$0xff] }
  0xd6   : > { %3341 = vst [vmem:[%s4112_s17 + $0x410] sm:$0xff] %v2829_v39  ;;  %v1810_v53 = vmin.f32 %v1298_v42, 6.0  ;;  %v1299_v55 = vmax.f32 %v787_v43, 0.0  ;;  %v1300_v60 = vmax.f32 %v788_v45, 0.0  ;;  %v790_v61 = vadd.f32 3.0, %v278_v36  ;;  %v4546_v45 = vld [vmem:[%s4082_s24 + $0x4b8] sm:$0xff] }
  0xd7   : > { %3342 = vst [vmem:[%s4112_s17 + $0x418] sm:$0xff] %v2830_v40  ;;  %v2833_v58 = vmul.f32 %v2321_v41, %v273_v14  ;;  %v1301_v56 = vmax.f32 %v789_v49, 0.0  ;;  %v791_v57 = vadd.f32 3.0, %v279_v50  ;;  %v792_v59 = vadd.f32 3.0, %v280_v51 }
  0xd8   : > { %3343 = vst [vmem:[%s4112_s17 + $0x420] sm:$0xff] %v2831_v52  ;;  %v2322_v2 = vmul.f32 0.16666667, %v1810_v53  ;;  %v1811_v3 = vmin.f32 %v1299_v55, 6.0  ;;  %v1812_v4 = vmin.f32 %v1300_v60, 6.0  ;;  %v1302_v54 = vmax.f32 %v790_v61, 0.0 }
  0xd9   : > { %3344 = vst [vmem:[%s4112_s17 + $0x428] sm:$0xff] %v2832_v48  ;;  %v1813_v63 = vmin.f32 %v1301_v56, 6.0  ;;  %v1303_v0 = vmax.f32 %v791_v57, 0.0  ;;  %v1304_v5 = vmax.f32 %v792_v59, 0.0  ;;  %v793_v6 = vadd.f32 3.0, %v281_v62  ;;  %v4551_v60 = vld [vmem:[%s4082_s24 + $0x4c0] sm:$0xff] }
  0xda   : > { %3345 = vst [vmem:[%s4112_s17 + $0x430] sm:$0xff] %v2833_v58  ;;  %v2834_v11 = vmul.f32 %v2322_v2, %v4498_v17  ;;  %v2323_v14 = vmul.f32 0.16666667, %v1811_v3  ;;  %v2324_v15 = vmul.f32 0.16666667, %v1812_v4  ;;  %v1814_v7 = vmin.f32 %v1302_v54, 6.0 }
  0xdb   : > { %v2325_v8 = vmul.f32 0.16666667, %v1813_v63  ;;  %v1815_v9 = vmin.f32 %v1303_v0, 6.0  ;;  %v1816_v18 = vmin.f32 %v1304_v5, 6.0  ;;  %v1305_v19 = vmax.f32 %v793_v6, 0.0  ;;  %v292_v4 = vld [vmem:[%s4082_s24 + $0x4c8] sm:$0xff] }
  0xdc   : > { %3346 = vst [vmem:[%s4112_s17 + $0x438] sm:$0xff] %v2834_v11  ;;  %v2835_v12 = vmul.f32 %v2323_v14, %v4503_v26  ;;  %v2836_v16 = vmul.f32 %v2324_v15, %v276_v37  ;;  %v2326_v13 = vmul.f32 0.16666667, %v1814_v7  ;;  %v794_v17 = vadd.f32 3.0, %v4522_v1  ;;  %v288_v37 = vld [vmem:[%s4082_s24 + $0x4a8] sm:$0xff]  ;;  %v293_v5 = vld [vmem:[%s4082_s24 + $0x4d0] sm:$0xff] }
  0xdd   : > { %v2837_v23 = vmul.f32 %v2325_v8, %v277_v38  ;;  %v2327_v27 = vmul.f32 0.16666667, %v1815_v9  ;;  %v2328_v28 = vmul.f32 0.16666667, %v1816_v18  ;;  %v1817_v29 = vmin.f32 %v1305_v19, 6.0  ;;  %v294_v7 = vld [vmem:[%s4082_s24 + $0x4d8] sm:$0xff] }
  0xde   : > { %3347 = vst [vmem:[%s4112_s17 + $0x440] sm:$0xff] %v2835_v12  ;;  %v2838_v22 = vmul.f32 %v2326_v13, %v278_v36  ;;  %v1306_v25 = vmax.f32 %v794_v17, 0.0  ;;  %v795_v26 = vadd.f32 3.0, %v4527_v10  ;;  %v796_v31 = vadd.f32 3.0, %v284_v20  ;;  %v295_v19 = vld [vmem:[%s4082_s24 + $0x4e0] sm:$0xff] }
  0xdf   : > { %3348 = vst [vmem:[%s4112_s17 + $0x448] sm:$0xff] %v2836_v16  ;;  %v2839_v32 = vmul.f32 %v2327_v27, %v279_v50  ;;  %v2840_v33 = vmul.f32 %v2328_v28, %v280_v51  ;;  %v2329_v34 = vmul.f32 0.16666667, %v1817_v29  ;;  %v797_v30 = vadd.f32 3.0, %v285_v21  ;;  %v297_v29 = vld [vmem:[%s4082_s24 + $0x4f0] sm:$0xff] }
  0xe0   : > { %3349 = vst [vmem:[%s4112_s17 + $0x450] sm:$0xff] %v2837_v23  ;;  %v1818_v38 = vmin.f32 %v1306_v25, 6.0  ;;  %v1307_v39 = vmax.f32 %v795_v26, 0.0  ;;  %v1308_v44 = vmax.f32 %v796_v31, 0.0  ;;  %v798_v46 = vadd.f32 3.0, %v286_v24  ;;  %v4570_v31 = vld [vmem:[%s4082_s24 + $0x4f8] sm:$0xff] }
  0xe1   : > { %3350 = vst [vmem:[%s4112_s17 + $0x458] sm:$0xff] %v2838_v22  ;;  %v2841_v36 = vmul.f32 %v2329_v34, %v281_v62  ;;  %v1309_v40 = vmax.f32 %v797_v30, 0.0  ;;  %v799_v42 = vadd.f32 3.0, %v287_v35  ;;  %v800_v43 = vadd.f32 3.0, %v288_v37 }
  0xe2   : > { %3351 = vst [vmem:[%s4112_s17 + $0x460] sm:$0xff] %v2839_v32  ;;  %v2330_v50 = vmul.f32 0.16666667, %v1818_v38  ;;  %v1819_v51 = vmin.f32 %v1307_v39, 6.0  ;;  %v1820_v52 = vmin.f32 %v1308_v44, 6.0  ;;  %v1310_v48 = vmax.f32 %v798_v46, 0.0 }
  0xe3   : > { %3352 = vst [vmem:[%s4112_s17 + $0x468] sm:$0xff] %v2840_v33  ;;  %v1821_v41 = vmin.f32 %v1309_v40, 6.0  ;;  %v1311_v49 = vmax.f32 %v799_v42, 0.0  ;;  %v1312_v53 = vmax.f32 %v800_v43, 0.0  ;;  %v801_v55 = vadd.f32 3.0, %v289_v47  ;;  %v4575_v44 = vld [vmem:[%s4082_s24 + $0x500] sm:$0xff] }
  0xe4   : > { %3353 = vst [vmem:[%s4112_s17 + $0x470] sm:$0xff] %v2841_v36  ;;  %v2842_v61 = vmul.f32 %v2330_v50, %v4522_v1  ;;  %v2331_v62 = vmul.f32 0.16666667, %v1819_v51  ;;  %v2332_v58 = vmul.f32 0.16666667, %v1820_v52  ;;  %v1822_v56 = vmin.f32 %v1310_v48, 6.0 }
  0xe5   : > { %v2333_v57 = vmul.f32 0.16666667, %v1821_v41  ;;  %v1823_v59 = vmin.f32 %v1311_v49, 6.0  ;;  %v1824_v2 = vmin.f32 %v1312_v53, 6.0  ;;  %v1313_v3 = vmax.f32 %v801_v55, 0.0  ;;  %v300_v52 = vld [vmem:[%s4082_s24 + $0x508] sm:$0xff] }
  0xe6   : > { %3354 = vst [vmem:[%s4112_s17 + $0x478] sm:$0xff] %v2842_v61  ;;  %v2843_v54 = vmul.f32 %v2331_v62, %v4527_v10  ;;  %v2844_v63 = vmul.f32 %v2332_v58, %v284_v20  ;;  %v2334_v0 = vmul.f32 0.16666667, %v1822_v56  ;;  %v802_v1 = vadd.f32 3.0, %v4546_v45  ;;  %v296_v20 = vld [vmem:[%s4082_s24 + $0x4e8] sm:$0xff]  ;;  %v301_v53 = vld [vmem:[%s4082_s24 + $0x510] sm:$0xff] }
  0xe7   : > { %v2845_v6 = vmul.f32 %v2333_v57, %v285_v21  ;;  %v2335_v11 = vmul.f32 0.16666667, %v1823_v59  ;;  %v2336_v14 = vmul.f32 0.16666667, %v1824_v2  ;;  %v1825_v15 = vmin.f32 %v1313_v3, 6.0  ;;  %v302_v56 = vld [vmem:[%s4082_s24 + $0x518] sm:$0xff] }
  0xe8   : > { %3355 = vst [vmem:[%s4112_s17 + $0x480] sm:$0xff] %v2843_v54  ;;  %v2846_v8 = vmul.f32 %v2334_v0, %v286_v24  ;;  %v1314_v9 = vmax.f32 %v802_v1, 0.0  ;;  %v803_v10 = vadd.f32 3.0, %v4551_v60  ;;  %v804_v18 = vadd.f32 3.0, %v292_v4  ;;  %v303_v3 = vld [vmem:[%s4082_s24 + $0x520] sm:$0xff] }
  0xe9   : > { %3356 = vst [vmem:[%s4112_s17 + $0x488] sm:$0xff] %v2844_v63  ;;  %v2847_v12 = vmul.f32 %v2335_v11, %v287_v35  ;;  %v2848_v16 = vmul.f32 %v2336_v14, %v288_v37  ;;  %v2337_v13 = vmul.f32 0.16666667, %v1825_v15  ;;  %v805_v17 = vadd.f32 3.0, %v293_v5  ;;  %v305_v15 = vld [vmem:[%s4082_s24 + $0x530] sm:$0xff] }
  0xea   : > { %3357 = vst [vmem:[%s4112_s17 + $0x490] sm:$0xff] %v2845_v6  ;;  %v1826_v21 = vmin.f32 %v1314_v9, 6.0  ;;  %v1315_v23 = vmax.f32 %v803_v10, 0.0  ;;  %v1316_v27 = vmax.f32 %v804_v18, 0.0  ;;  %v806_v28 = vadd.f32 3.0, %v294_v7  ;;  %v4594_v18 = vld [vmem:[%s4082_s24 + $0x538] sm:$0xff] }
  0xeb   : > { %3358 = vst [vmem:[%s4112_s17 + $0x498] sm:$0xff] %v2846_v8  ;;  %v2849_v24 = vmul.f32 %v2337_v13, %v289_v47  ;;  %v1317_v22 = vmax.f32 %v805_v17, 0.0  ;;  %v807_v25 = vadd.f32 3.0, %v295_v19  ;;  %v808_v26 = vadd.f32 3.0, %v296_v20 }
  0xec   : > { %3359 = vst [vmem:[%s4112_s17 + $0x4a0] sm:$0xff] %v2847_v12  ;;  %v2338_v35 = vmul.f32 0.16666667, %v1826_v21  ;;  %v1827_v37 = vmin.f32 %v1315_v23, 6.0  ;;  %v1828_v32 = vmin.f32 %v1316_v27, 6.0  ;;  %v1318_v33 = vmax.f32 %v806_v28, 0.0 }
  0xed   : > { %3360 = vst [vmem:[%s4112_s17 + $0x4a8] sm:$0xff] %v2848_v16  ;;  %v1829_v34 = vmin.f32 %v1317_v22, 6.0  ;;  %v1319_v30 = vmax.f32 %v807_v25, 0.0  ;;  %v1320_v38 = vmax.f32 %v808_v26, 0.0  ;;  %v809_v39 = vadd.f32 3.0, %v297_v29  ;;  %v4599_v27 = vld [vmem:[%s4082_s24 + $0x540] sm:$0xff] }
  0xee   : > { %3361 = vst [vmem:[%s4112_s17 + $0x4b0] sm:$0xff] %v2849_v24  ;;  %v2850_v46 = vmul.f32 %v2338_v35, %v4546_v45  ;;  %v2339_v47 = vmul.f32 0.16666667, %v1827_v37  ;;  %v2340_v36 = vmul.f32 0.16666667, %v1828_v32  ;;  %v1830_v40 = vmin.f32 %v1318_v33, 6.0 }
  0xef   : > { %v2341_v42 = vmul.f32 0.16666667, %v1829_v34  ;;  %v1831_v43 = vmin.f32 %v1319_v30, 6.0  ;;  %v1832_v50 = vmin.f32 %v1320_v38, 6.0  ;;  %v1321_v51 = vmax.f32 %v809_v39, 0.0  ;;  %v308_v32 = vld [vmem:[%s4082_s24 + $0x548] sm:$0xff] }
  0xf0   : > { %3362 = vst [vmem:[%s4112_s17 + $0x4b8] sm:$0xff] %v2850_v46  ;;  %v2851_v48 = vmul.f32 %v2339_v47, %v4551_v60  ;;  %v2852_v41 = vmul.f32 %v2340_v36, %v292_v4  ;;  %v2342_v49 = vmul.f32 0.16666667, %v1830_v40  ;;  %v810_v45 = vadd.f32 3.0, %v4570_v31  ;;  %v304_v4 = vld [vmem:[%s4082_s24 + $0x528] sm:$0xff]  ;;  %v309_v38 = vld [vmem:[%s4082_s24 + $0x550] sm:$0xff] }
  0xf1   : > { %v2853_v55 = vmul.f32 %v2341_v42, %v293_v5  ;;  %v2343_v61 = vmul.f32 0.16666667, %v1831_v43  ;;  %v2344_v62 = vmul.f32 0.16666667, %v1832_v50  ;;  %v1833_v58 = vmin.f32 %v1321_v51, 6.0  ;;  %v310_v40 = vld [vmem:[%s4082_s24 + $0x558] sm:$0xff] }
  0xf2   : > { %3363 = vst [vmem:[%s4112_s17 + $0x4c0] sm:$0xff] %v2851_v48  ;;  %v2854_v57 = vmul.f32 %v2342_v49, %v294_v7  ;;  %v1322_v59 = vmax.f32 %v810_v45, 0.0  ;;  %v811_v60 = vadd.f32 3.0, %v4575_v44  ;;  %v812_v2 = vadd.f32 3.0, %v300_v52  ;;  %v311_v51 = vld [vmem:[%s4082_s24 + $0x560] sm:$0xff] }
  0xf3   : > { %3364 = vst [vmem:[%s4112_s17 + $0x4c8] sm:$0xff] %v2852_v41  ;;  %v2855_v54 = vmul.f32 %v2343_v61, %v295_v19  ;;  %v2856_v63 = vmul.f32 %v2344_v62, %v296_v20  ;;  %v2345_v0 = vmul.f32 0.16666667, %v1833_v58  ;;  %v813_v1 = vadd.f32 3.0, %v301_v53  ;;  %v313_v58 = vld [vmem:[%s4082_s24 + $0x570] sm:$0xff] }
  0xf4   : > { %3365 = vst [vmem:[%s4112_s17 + $0x4d0] sm:$0xff] %v2853_v55  ;;  %v1834_v5 = vmin.f32 %v1322_v59, 6.0  ;;  %v1323_v6 = vmax.f32 %v811_v60, 0.0  ;;  %v1324_v11 = vmax.f32 %v812_v2, 0.0  ;;  %v814_v14 = vadd.f32 3.0, %v302_v56  ;;  %v4618_v2 = vld [vmem:[%s4082_s24 + $0x578] sm:$0xff] }
  0xf5   : > { %3366 = vst [vmem:[%s4112_s17 + $0x4d8] sm:$0xff] %v2854_v57  ;;  %v2857_v7 = vmul.f32 %v2345_v0, %v297_v29  ;;  %v1325_v8 = vmax.f32 %v813_v1, 0.0  ;;  %v815_v9 = vadd.f32 3.0, %v303_v3  ;;  %v816_v10 = vadd.f32 3.0, %v304_v4 }
  0xf6   : > { %3367 = vst [vmem:[%s4112_s17 + $0x4e0] sm:$0xff] %v2855_v54  ;;  %v2346_v19 = vmul.f32 0.16666667, %v1834_v5  ;;  %v1835_v20 = vmin.f32 %v1323_v6, 6.0  ;;  %v1836_v12 = vmin.f32 %v1324_v11, 6.0  ;;  %v1326_v16 = vmax.f32 %v814_v14, 0.0 }
  0xf7   : > { %3368 = vst [vmem:[%s4112_s17 + $0x4e8] sm:$0xff] %v2856_v63  ;;  %v1837_v13 = vmin.f32 %v1325_v8, 6.0  ;;  %v1327_v17 = vmax.f32 %v815_v9, 0.0  ;;  %v1328_v21 = vmax.f32 %v816_v10, 0.0  ;;  %v817_v23 = vadd.f32 3.0, %v305_v15  ;;  %v4623_v11 = vld [vmem:[%s4082_s24 + $0x580] sm:$0xff] }
  0xf8   : > { %3369 = vst [vmem:[%s4112_s17 + $0x4f0] sm:$0xff] %v2857_v7  ;;  %v2858_v28 = vmul.f32 %v2346_v19, %v4570_v31  ;;  %v2347_v29 = vmul.f32 0.16666667, %v1835_v20  ;;  %v2348_v24 = vmul.f32 0.16666667, %v1836_v12  ;;  %v1838_v22 = vmin.f32 %v1326_v16, 6.0 }
  0xf9   : > { %v2349_v25 = vmul.f32 0.16666667, %v1837_v13  ;;  %v1839_v26 = vmin.f32 %v1327_v17, 6.0  ;;  %v1840_v35 = vmin.f32 %v1328_v21, 6.0  ;;  %v1329_v37 = vmax.f32 %v817_v23, 0.0  ;;  %v316_v12 = vld [vmem:[%s4082_s24 + $0x588] sm:$0xff] }
  0xfa   : > { %3370 = vst [vmem:[%s4112_s17 + $0x4f8] sm:$0xff] %v2858_v28  ;;  %v2859_v33 = vmul.f32 %v2347_v29, %v4575_v44  ;;  %v2860_v34 = vmul.f32 %v2348_v24, %v300_v52  ;;  %v2350_v30 = vmul.f32 0.16666667, %v1838_v22  ;;  %v818_v31 = vadd.f32 3.0, %v4594_v18  ;;  %v312_v52 = vld [vmem:[%s4082_s24 + $0x568] sm:$0xff]  ;;  %v317_v21 = vld [vmem:[%s4082_s24 + $0x590] sm:$0xff] }
  0xfb   : > { %v2861_v39 = vmul.f32 %v2349_v25, %v301_v53  ;;  %v2351_v46 = vmul.f32 0.16666667, %v1839_v26  ;;  %v2352_v47 = vmul.f32 0.16666667, %v1840_v35  ;;  %v1841_v36 = vmin.f32 %v1329_v37, 6.0  ;;  %v318_v22 = vld [vmem:[%s4082_s24 + $0x598] sm:$0xff] }
  0xfc   : > { %3371 = vst [vmem:[%s4112_s17 + $0x500] sm:$0xff] %v2859_v33  ;;  %v2862_v42 = vmul.f32 %v2350_v30, %v302_v56  ;;  %v1330_v43 = vmax.f32 %v818_v31, 0.0  ;;  %v819_v44 = vadd.f32 3.0, %v4599_v27  ;;  %v820_v50 = vadd.f32 3.0, %v308_v32  ;;  %v319_v37 = vld [vmem:[%s4082_s24 + $0x5a0] sm:$0xff] }
  0xfd   : > { %3372 = vst [vmem:[%s4112_s17 + $0x508] sm:$0xff] %v2860_v34  ;;  %v2863_v48 = vmul.f32 %v2351_v46, %v303_v3  ;;  %v2864_v41 = vmul.f32 %v2352_v47, %v304_v4  ;;  %v2353_v49 = vmul.f32 0.16666667, %v1841_v36  ;;  %v821_v45 = vadd.f32 3.0, %v309_v38  ;;  %v321_v36 = vld [vmem:[%s4082_s24 + $0x5b0] sm:$0xff] }
  0xfe   : > { %3373 = vst [vmem:[%s4112_s17 + $0x510] sm:$0xff] %v2861_v39  ;;  %v1842_v53 = vmin.f32 %v1330_v43, 6.0  ;;  %v1331_v55 = vmax.f32 %v819_v44, 0.0  ;;  %v1332_v61 = vmax.f32 %v820_v50, 0.0  ;;  %v822_v62 = vadd.f32 3.0, %v310_v40  ;;  %v4642_v50 = vld [vmem:[%s4082_s24 + $0x5b8] sm:$0xff] }
  0xff   : > { %3374 = vst [vmem:[%s4112_s17 + $0x518] sm:$0xff] %v2862_v42  ;;  %v2865_v56 = vmul.f32 %v2353_v49, %v305_v15  ;;  %v1333_v57 = vmax.f32 %v821_v45, 0.0  ;;  %v823_v59 = vadd.f32 3.0, %v311_v51  ;;  %v824_v60 = vadd.f32 3.0, %v312_v52 }
 0x100   : > { %3375 = vst [vmem:[%s4112_s17 + $0x520] sm:$0xff] %v2863_v48  ;;  %v2354_v3 = vmul.f32 0.16666667, %v1842_v53  ;;  %v1843_v4 = vmin.f32 %v1331_v55, 6.0  ;;  %v1844_v54 = vmin.f32 %v1332_v61, 6.0  ;;  %v1334_v63 = vmax.f32 %v822_v62, 0.0 }
 0x101   : > { %3376 = vst [vmem:[%s4112_s17 + $0x528] sm:$0xff] %v2864_v41  ;;  %v1845_v0 = vmin.f32 %v1333_v57, 6.0  ;;  %v1335_v1 = vmax.f32 %v823_v59, 0.0  ;;  %v1336_v5 = vmax.f32 %v824_v60, 0.0  ;;  %v825_v6 = vadd.f32 3.0, %v313_v58  ;;  %v4647_v61 = vld [vmem:[%s4082_s24 + $0x5c0] sm:$0xff] }
 0x102   : > { %3377 = vst [vmem:[%s4112_s17 + $0x530] sm:$0xff] %v2865_v56  ;;  %v2866_v14 = vmul.f32 %v2354_v3, %v4594_v18  ;;  %v2355_v15 = vmul.f32 0.16666667, %v1843_v4  ;;  %v2356_v7 = vmul.f32 0.16666667, %v1844_v54  ;;  %v1846_v8 = vmin.f32 %v1334_v63, 6.0 }
 0x103   : > { %v2357_v9 = vmul.f32 0.16666667, %v1845_v0  ;;  %v1847_v10 = vmin.f32 %v1335_v1, 6.0  ;;  %v1848_v19 = vmin.f32 %v1336_v5, 6.0  ;;  %v1337_v20 = vmax.f32 %v825_v6, 0.0  ;;  %v324_v54 = vld [vmem:[%s4082_s24 + $0x5c8] sm:$0xff] }
 0x104   : > { %3378 = vst [vmem:[%s4112_s17 + $0x538] sm:$0xff] %v2866_v14  ;;  %v2867_v16 = vmul.f32 %v2355_v15, %v4599_v27  ;;  %v2868_v13 = vmul.f32 %v2356_v7, %v308_v32  ;;  %v2358_v17 = vmul.f32 0.16666667, %v1846_v8  ;;  %v826_v18 = vadd.f32 3.0, %v4618_v2  ;;  %v320_v32 = vld [vmem:[%s4082_s24 + $0x5a8] sm:$0xff]  ;;  %v325_v5 = vld [vmem:[%s4082_s24 + $0x5d0] sm:$0xff] }
 0x105   : > { %v2869_v23 = vmul.f32 %v2357_v9, %v309_v38  ;;  %v2359_v28 = vmul.f32 0.16666667, %v1847_v10  ;;  %v2360_v29 = vmul.f32 0.16666667, %v1848_v19  ;;  %v1849_v24 = vmin.f32 %v1337_v20, 6.0  ;;  %v326_v8 = vld [vmem:[%s4082_s24 + $0x5d8] sm:$0xff] }
 0x106   : > { %3379 = vst [vmem:[%s4112_s17 + $0x540] sm:$0xff] %v2867_v16  ;;  %v2870_v25 = vmul.f32 %v2358_v17, %v310_v40  ;;  %v1338_v26 = vmax.f32 %v826_v18, 0.0  ;;  %v827_v27 = vadd.f32 3.0, %v4623_v11  ;;  %v828_v35 = vadd.f32 3.0, %v316_v12  ;;  %v327_v20 = vld [vmem:[%s4082_s24 + $0x5e0] sm:$0xff] }
 0x107   : > { %3380 = vst [vmem:[%s4112_s17 + $0x548] sm:$0xff] %v2868_v13  ;;  %v2871_v33 = vmul.f32 %v2359_v28, %v311_v51  ;;  %v2872_v34 = vmul.f32 %v2360_v29, %v312_v52  ;;  %v2361_v30 = vmul.f32 0.16666667, %v1849_v24  ;;  %v829_v31 = vadd.f32 3.0, %v317_v21  ;;  %v329_v24 = vld [vmem:[%s4082_s24 + $0x5f0] sm:$0xff] }
 0x108   : > { %3381 = vst [vmem:[%s4112_s17 + $0x550] sm:$0xff] %v2869_v23  ;;  %v1850_v38 = vmin.f32 %v1338_v26, 6.0  ;;  %v1339_v39 = vmax.f32 %v827_v27, 0.0  ;;  %v1340_v46 = vmax.f32 %v828_v35, 0.0  ;;  %v830_v47 = vadd.f32 3.0, %v318_v22  ;;  %v4666_v35 = vld [vmem:[%s4082_s24 + $0x5f8] sm:$0xff] }
 0x109   : > { %3382 = vst [vmem:[%s4112_s17 + $0x558] sm:$0xff] %v2870_v25  ;;  %v2873_v40 = vmul.f32 %v2361_v30, %v313_v58  ;;  %v1341_v42 = vmax.f32 %v829_v31, 0.0  ;;  %v831_v43 = vadd.f32 3.0, %v319_v37  ;;  %v832_v44 = vadd.f32 3.0, %v320_v32 }
 0x10a   : > { %3383 = vst [vmem:[%s4112_s17 + $0x560] sm:$0xff] %v2871_v33  ;;  %v2362_v51 = vmul.f32 0.16666667, %v1850_v38  ;;  %v1851_v52 = vmin.f32 %v1339_v39, 6.0  ;;  %v1852_v48 = vmin.f32 %v1340_v46, 6.0  ;;  %v1342_v41 = vmax.f32 %v830_v47, 0.0 }
 0x10b   : > { %3384 = vst [vmem:[%s4112_s17 + $0x568] sm:$0xff] %v2872_v34  ;;  %v1853_v49 = vmin.f32 %v1341_v42, 6.0  ;;  %v1343_v45 = vmax.f32 %v831_v43, 0.0  ;;  %v1344_v53 = vmax.f32 %v832_v44, 0.0  ;;  %v833_v55 = vadd.f32 3.0, %v321_v36  ;;  %v4671_v46 = vld [vmem:[%s4082_s24 + $0x600] sm:$0xff] }
 0x10c   : > { %3385 = vst [vmem:[%s4112_s17 + $0x570] sm:$0xff] %v2873_v40  ;;  %v2874_v62 = vmul.f32 %v2362_v51, %v4618_v2  ;;  %v2363_v58 = vmul.f32 0.16666667, %v1851_v52  ;;  %v2364_v56 = vmul.f32 0.16666667, %v1852_v48  ;;  %v1854_v57 = vmin.f32 %v1342_v41, 6.0 }
 0x10d   : > { %v2365_v59 = vmul.f32 0.16666667, %v1853_v49  ;;  %v1855_v60 = vmin.f32 %v1343_v45, 6.0  ;;  %v1856_v3 = vmin.f32 %v1344_v53, 6.0  ;;  %v1345_v4 = vmax.f32 %v833_v55, 0.0  ;;  %v332_v48 = vld [vmem:[%s4082_s24 + $0x608] sm:$0xff] }
 0x10e   : > { %3386 = vst [vmem:[%s4112_s17 + $0x578] sm:$0xff] %v2874_v62  ;;  %v2875_v63 = vmul.f32 %v2363_v58, %v4623_v11  ;;  %v2876_v0 = vmul.f32 %v2364_v56, %v316_v12  ;;  %v2366_v1 = vmul.f32 0.16666667, %v1854_v57  ;;  %v834_v2 = vadd.f32 3.0, %v4642_v50  ;;  %v328_v12 = vld [vmem:[%s4082_s24 + $0x5e8] sm:$0xff]  ;;  %v333_v53 = vld [vmem:[%s4082_s24 + $0x610] sm:$0xff] }
 0x10f   : > { %v2877_v6 = vmul.f32 %v2365_v59, %v317_v21  ;;  %v2367_v14 = vmul.f32 0.16666667, %v1855_v60  ;;  %v2368_v15 = vmul.f32 0.16666667, %v1856_v3  ;;  %v1857_v7 = vmin.f32 %v1345_v4, 6.0  ;;  %v334_v57 = vld [vmem:[%s4082_s24 + $0x618] sm:$0xff] }
 0x110   : > { %3387 = vst [vmem:[%s4112_s17 + $0x580] sm:$0xff] %v2875_v63  ;;  %v2878_v9 = vmul.f32 %v2366_v1, %v318_v22  ;;  %v1346_v10 = vmax.f32 %v834_v2, 0.0  ;;  %v835_v11 = vadd.f32 3.0, %v4647_v61  ;;  %v836_v19 = vadd.f32 3.0, %v324_v54  ;;  %v335_v4 = vld [vmem:[%s4082_s24 + $0x620] sm:$0xff] }
 0x111   : > { %3388 = vst [vmem:[%s4112_s17 + $0x588] sm:$0xff] %v2876_v0  ;;  %v2879_v16 = vmul.f32 %v2367_v14, %v319_v37  ;;  %v2880_v13 = vmul.f32 %v2368_v15, %v320_v32  ;;  %v2369_v17 = vmul.f32 0.16666667, %v1857_v7  ;;  %v837_v18 = vadd.f32 3.0, %v325_v5  ;;  %v337_v7 = vld [vmem:[%s4082_s24 + $0x630] sm:$0xff] }
 0x112   : > { %3389 = vst [vmem:[%s4112_s17 + $0x590] sm:$0xff] %v2877_v6  ;;  %v1858_v21 = vmin.f32 %v1346_v10, 6.0  ;;  %v1347_v23 = vmax.f32 %v835_v11, 0.0  ;;  %v1348_v28 = vmax.f32 %v836_v19, 0.0  ;;  %v838_v29 = vadd.f32 3.0, %v326_v8  ;;  %v4690_v19 = vld [vmem:[%s4082_s24 + $0x638] sm:$0xff] }
 0x113   : > { %3390 = vst [vmem:[%s4112_s17 + $0x598] sm:$0xff] %v2878_v9  ;;  %v2881_v22 = vmul.f32 %v2369_v17, %v321_v36  ;;  %v1349_v25 = vmax.f32 %v837_v18, 0.0  ;;  %v839_v26 = vadd.f32 3.0, %v327_v20  ;;  %v840_v27 = vadd.f32 3.0, %v328_v12 }
 0x114   : > { %3391 = vst [vmem:[%s4112_s17 + $0x5a0] sm:$0xff] %v2879_v16  ;;  %v2370_v37 = vmul.f32 0.16666667, %v1858_v21  ;;  %v1859_v32 = vmin.f32 %v1347_v23, 6.0  ;;  %v1860_v33 = vmin.f32 %v1348_v28, 6.0  ;;  %v1350_v34 = vmax.f32 %v838_v29, 0.0 }
 0x115   : > { %3392 = vst [vmem:[%s4112_s17 + $0x5a8] sm:$0xff] %v2880_v13  ;;  %v1861_v30 = vmin.f32 %v1349_v25, 6.0  ;;  %v1351_v31 = vmax.f32 %v839_v26, 0.0  ;;  %v1352_v38 = vmax.f32 %v840_v27, 0.0  ;;  %v841_v39 = vadd.f32 3.0, %v329_v24  ;;  %v4695_v28 = vld [vmem:[%s4082_s24 + $0x640] sm:$0xff] }
 0x116   : > { %3393 = vst [vmem:[%s4112_s17 + $0x5b0] sm:$0xff] %v2881_v22  ;;  %v2882_v47 = vmul.f32 %v2370_v37, %v4642_v50  ;;  %v2371_v36 = vmul.f32 0.16666667, %v1859_v32  ;;  %v2372_v40 = vmul.f32 0.16666667, %v1860_v33  ;;  %v1862_v42 = vmin.f32 %v1350_v34, 6.0 }
 0x117   : > { %v2373_v43 = vmul.f32 0.16666667, %v1861_v30  ;;  %v1863_v44 = vmin.f32 %v1351_v31, 6.0  ;;  %v1864_v51 = vmin.f32 %v1352_v38, 6.0  ;;  %v1353_v52 = vmax.f32 %v841_v39, 0.0  ;;  %v340_v33 = vld [vmem:[%s4082_s24 + $0x648] sm:$0xff] }
 0x118   : > { %3394 = vst [vmem:[%s4112_s17 + $0x5b8] sm:$0xff] %v2882_v47  ;;  %v2883_v41 = vmul.f32 %v2371_v36, %v4647_v61  ;;  %v2884_v49 = vmul.f32 %v2372_v40, %v324_v54  ;;  %v2374_v45 = vmul.f32 0.16666667, %v1862_v42  ;;  %v842_v50 = vadd.f32 3.0, %v4666_v35  ;;  %v336_v54 = vld [vmem:[%s4082_s24 + $0x628] sm:$0xff]  ;;  %v341_v38 = vld [vmem:[%s4082_s24 + $0x650] sm:$0xff] }
 0x119   : > { %v2885_v55 = vmul.f32 %v2373_v43, %v325_v5  ;;  %v2375_v62 = vmul.f32 0.16666667, %v1863_v44  ;;  %v2376_v58 = vmul.f32 0.16666667, %v1864_v51  ;;  %v1865_v56 = vmin.f32 %v1353_v52, 6.0  ;;  %v342_v42 = vld [vmem:[%s4082_s24 + $0x658] sm:$0xff] }
 0x11a   : > { %3395 = vst [vmem:[%s4112_s17 + $0x5c0] sm:$0xff] %v2883_v41  ;;  %v2886_v59 = vmul.f32 %v2374_v45, %v326_v8  ;;  %v1354_v60 = vmax.f32 %v842_v50, 0.0  ;;  %v843_v61 = vadd.f32 3.0, %v4671_v46  ;;  %v844_v3 = vadd.f32 3.0, %v332_v48  ;;  %v343_v52 = vld [vmem:[%s4082_s24 + $0x660] sm:$0xff] }
 0x11b   : > { %3396 = vst [vmem:[%s4112_s17 + $0x5c8] sm:$0xff] %v2884_v49  ;;  %v2887_v63 = vmul.f32 %v2375_v62, %v327_v20  ;;  %v2888_v0 = vmul.f32 %v2376_v58, %v328_v12  ;;  %v2377_v1 = vmul.f32 0.16666667, %v1865_v56  ;;  %v845_v2 = vadd.f32 3.0, %v333_v53  ;;  %v345_v56 = vld [vmem:[%s4082_s24 + $0x670] sm:$0xff] }
 0x11c   : > { %3397 = vst [vmem:[%s4112_s17 + $0x5d0] sm:$0xff] %v2885_v55  ;;  %v1866_v5 = vmin.f32 %v1354_v60, 6.0  ;;  %v1355_v6 = vmax.f32 %v843_v61, 0.0  ;;  %v1356_v14 = vmax.f32 %v844_v3, 0.0  ;;  %v846_v15 = vadd.f32 3.0, %v334_v57  ;;  %v4714_v3 = vld [vmem:[%s4082_s24 + $0x678] sm:$0xff] }
 0x11d   : > { %3398 = vst [vmem:[%s4112_s17 + $0x5d8] sm:$0xff] %v2886_v59  ;;  %v2889_v8 = vmul.f32 %v2377_v1, %v329_v24  ;;  %v1357_v9 = vmax.f32 %v845_v2, 0.0  ;;  %v847_v10 = vadd.f32 3.0, %v335_v4  ;;  %v848_v11 = vadd.f32 3.0, %v336_v54 }
 0x11e   : > { %3399 = vst [vmem:[%s4112_s17 + $0x5e0] sm:$0xff] %v2887_v63  ;;  %v2378_v20 = vmul.f32 0.16666667, %v1866_v5  ;;  %v1867_v12 = vmin.f32 %v1355_v6, 6.0  ;;  %v1868_v16 = vmin.f32 %v1356_v14, 6.0  ;;  %v1358_v13 = vmax.f32 %v846_v15, 0.0 }
 0x11f   : > { %3400 = vst [vmem:[%s4112_s17 + $0x5e8] sm:$0xff] %v2888_v0  ;;  %v1869_v17 = vmin.f32 %v1357_v9, 6.0  ;;  %v1359_v18 = vmax.f32 %v847_v10, 0.0  ;;  %v1360_v21 = vmax.f32 %v848_v11, 0.0  ;;  %v849_v23 = vadd.f32 3.0, %v337_v7  ;;  %v4719_v14 = vld [vmem:[%s4082_s24 + $0x680] sm:$0xff] }
 0x120   : > { %3401 = vst [vmem:[%s4112_s17 + $0x5f0] sm:$0xff] %v2889_v8  ;;  %v2890_v29 = vmul.f32 %v2378_v20, %v4666_v35  ;;  %v2379_v24 = vmul.f32 0.16666667, %v1867_v12  ;;  %v2380_v22 = vmul.f32 0.16666667, %v1868_v16  ;;  %v1870_v25 = vmin.f32 %v1358_v13, 6.0 }
 0x121   : > { %v2381_v26 = vmul.f32 0.16666667, %v1869_v17  ;;  %v1871_v27 = vmin.f32 %v1359_v18, 6.0  ;;  %v1872_v37 = vmin.f32 %v1360_v21, 6.0  ;;  %v1361_v32 = vmax.f32 %v849_v23, 0.0  ;;  %v348_v16 = vld [vmem:[%s4082_s24 + $0x688] sm:$0xff] }
 0x122   : > { %3402 = vst [vmem:[%s4112_s17 + $0x5f8] sm:$0xff] %v2890_v29  ;;  %v2891_v34 = vmul.f32 %v2379_v24, %v4671_v46  ;;  %v2892_v30 = vmul.f32 %v2380_v22, %v332_v48  ;;  %v2382_v31 = vmul.f32 0.16666667, %v1870_v25  ;;  %v850_v35 = vadd.f32 3.0, %v4690_v19  ;;  %v344_v48 = vld [vmem:[%s4082_s24 + $0x668] sm:$0xff]  ;;  %v349_v21 = vld [vmem:[%s4082_s24 + $0x690] sm:$0xff] }
 0x123   : > { %v2893_v39 = vmul.f32 %v2381_v26, %v333_v53  ;;  %v2383_v47 = vmul.f32 0.16666667, %v1871_v27  ;;  %v2384_v36 = vmul.f32 0.16666667, %v1872_v37  ;;  %v1873_v40 = vmin.f32 %v1361_v32, 6.0  ;;  %v350_v25 = vld [vmem:[%s4082_s24 + $0x698] sm:$0xff] }
 0x124   : > { %3403 = vst [vmem:[%s4112_s17 + $0x600] sm:$0xff] %v2891_v34  ;;  %v2894_v43 = vmul.f32 %v2382_v31, %v334_v57  ;;  %v1362_v44 = vmax.f32 %v850_v35, 0.0  ;;  %v851_v46 = vadd.f32 3.0, %v4695_v28  ;;  %v852_v51 = vadd.f32 3.0, %v340_v33  ;;  %v351_v32 = vld [vmem:[%s4082_s24 + $0x6a0] sm:$0xff] }
 0x125   : > { %3404 = vst [vmem:[%s4112_s17 + $0x608] sm:$0xff] %v2892_v30  ;;  %v2895_v41 = vmul.f32 %v2383_v47, %v335_v4  ;;  %v2896_v49 = vmul.f32 %v2384_v36, %v336_v54  ;;  %v2385_v45 = vmul.f32 0.16666667, %v1873_v40  ;;  %v853_v50 = vadd.f32 3.0, %v341_v38  ;;  %v353_v40 = vld [vmem:[%s4082_s24 + $0x6b0] sm:$0xff] }
 0x126   : > { %3405 = vst [vmem:[%s4112_s17 + $0x610] sm:$0xff] %v2893_v39  ;;  %v1874_v53 = vmin.f32 %v1362_v44, 6.0  ;;  %v1363_v55 = vmax.f32 %v851_v46, 0.0  ;;  %v1364_v62 = vmax.f32 %v852_v51, 0.0  ;;  %v854_v58 = vadd.f32 3.0, %v342_v42  ;;  %v4738_v51 = vld [vmem:[%s4082_s24 + $0x6b8] sm:$0xff] }
 0x127   : > { %3406 = vst [vmem:[%s4112_s17 + $0x618] sm:$0xff] %v2894_v43  ;;  %v2897_v57 = vmul.f32 %v2385_v45, %v337_v7  ;;  %v1365_v59 = vmax.f32 %v853_v50, 0.0  ;;  %v855_v60 = vadd.f32 3.0, %v343_v52  ;;  %v856_v61 = vadd.f32 3.0, %v344_v48 }
 0x128   : > { %3407 = vst [vmem:[%s4112_s17 + $0x620] sm:$0xff] %v2895_v41  ;;  %v2386_v4 = vmul.f32 0.16666667, %v1874_v53  ;;  %v1875_v54 = vmin.f32 %v1363_v55, 6.0  ;;  %v1876_v63 = vmin.f32 %v1364_v62, 6.0  ;;  %v1366_v0 = vmax.f32 %v854_v58, 0.0 }
 0x129   : > { %3408 = vst [vmem:[%s4112_s17 + $0x628] sm:$0xff] %v2896_v49  ;;  %v1877_v1 = vmin.f32 %v1365_v59, 6.0  ;;  %v1367_v2 = vmax.f32 %v855_v60, 0.0  ;;  %v1368_v5 = vmax.f32 %v856_v61, 0.0  ;;  %v857_v6 = vadd.f32 3.0, %v345_v56  ;;  %v4743_v62 = vld [vmem:[%s4082_s24 + $0x6c0] sm:$0xff] }
 0x12a   : > { %3409 = vst [vmem:[%s4112_s17 + $0x630] sm:$0xff] %v2897_v57  ;;  %v2898_v15 = vmul.f32 %v2386_v4, %v4690_v19  ;;  %v2387_v7 = vmul.f32 0.16666667, %v1875_v54  ;;  %v2388_v8 = vmul.f32 0.16666667, %v1876_v63  ;;  %v1878_v9 = vmin.f32 %v1366_v0, 6.0 }
 0x12b   : > { %v2389_v10 = vmul.f32 0.16666667, %v1877_v1  ;;  %v1879_v11 = vmin.f32 %v1367_v2, 6.0  ;;  %v1880_v20 = vmin.f32 %v1368_v5, 6.0  ;;  %v1369_v12 = vmax.f32 %v857_v6, 0.0  ;;  %v356_v63 = vld [vmem:[%s4082_s24 + $0x6c8] sm:$0xff] }
 0x12c   : > { %3410 = vst [vmem:[%s4112_s17 + $0x638] sm:$0xff] %v2898_v15  ;;  %v2899_v13 = vmul.f32 %v2387_v7, %v4695_v28  ;;  %v2900_v17 = vmul.f32 %v2388_v8, %v340_v33  ;;  %v2390_v18 = vmul.f32 0.16666667, %v1878_v9  ;;  %v858_v19 = vadd.f32 3.0, %v4714_v3  ;;  %v352_v33 = vld [vmem:[%s4082_s24 + $0x6a8] sm:$0xff]  ;;  %v357_v5 = vld [vmem:[%s4082_s24 + $0x6d0] sm:$0xff] }
 0x12d   : > { %v2901_v23 = vmul.f32 %v2389_v10, %v341_v38  ;;  %v2391_v29 = vmul.f32 0.16666667, %v1879_v11  ;;  %v2392_v24 = vmul.f32 0.16666667, %v1880_v20  ;;  %v1881_v22 = vmin.f32 %v1369_v12, 6.0  ;;  %v358_v9 = vld [vmem:[%s4082_s24 + $0x6d8] sm:$0xff] }
 0x12e   : > { %3411 = vst [vmem:[%s4112_s17 + $0x640] sm:$0xff] %v2899_v13  ;;  %v2902_v26 = vmul.f32 %v2390_v18, %v342_v42  ;;  %v1370_v27 = vmax.f32 %v858_v19, 0.0  ;;  %v859_v28 = vadd.f32 3.0, %v4719_v14  ;;  %v860_v37 = vadd.f32 3.0, %v348_v16  ;;  %v359_v12 = vld [vmem:[%s4082_s24 + $0x6e0] sm:$0xff] }
 0x12f   : > { %3412 = vst [vmem:[%s4112_s17 + $0x648] sm:$0xff] %v2900_v17  ;;  %v2903_v34 = vmul.f32 %v2391_v29, %v343_v52  ;;  %v2904_v30 = vmul.f32 %v2392_v24, %v344_v48  ;;  %v2393_v31 = vmul.f32 0.16666667, %v1881_v22  ;;  %v861_v35 = vadd.f32 3.0, %v349_v21  ;;  %v361_v22 = vld [vmem:[%s4082_s24 + $0x6f0] sm:$0xff] }
 0x130   : > { %3413 = vst [vmem:[%s4112_s17 + $0x650] sm:$0xff] %v2901_v23  ;;  %v1882_v38 = vmin.f32 %v1370_v27, 6.0  ;;  %v1371_v39 = vmax.f32 %v859_v28, 0.0  ;;  %v1372_v47 = vmax.f32 %v860_v37, 0.0  ;;  %v862_v36 = vadd.f32 3.0, %v350_v25  ;;  %v4762_v37 = vld [vmem:[%s4082_s24 + $0x6f8] sm:$0xff] }
 0x131   : > { %3414 = vst [vmem:[%s4112_s17 + $0x658] sm:$0xff] %v2902_v26  ;;  %v2905_v42 = vmul.f32 %v2393_v31, %v345_v56  ;;  %v1373_v43 = vmax.f32 %v861_v35, 0.0  ;;  %v863_v44 = vadd.f32 3.0, %v351_v32  ;;  %v864_v46 = vadd.f32 3.0, %v352_v33 }
 0x132   : > { %3415 = vst [vmem:[%s4112_s17 + $0x660] sm:$0xff] %v2903_v34  ;;  %v2394_v52 = vmul.f32 0.16666667, %v1882_v38  ;;  %v1883_v48 = vmin.f32 %v1371_v39, 6.0  ;;  %v1884_v41 = vmin.f32 %v1372_v47, 6.0  ;;  %v1374_v49 = vmax.f32 %v862_v36, 0.0 }
 0x133   : > { %3416 = vst [vmem:[%s4112_s17 + $0x668] sm:$0xff] %v2904_v30  ;;  %v1885_v45 = vmin.f32 %v1373_v43, 6.0  ;;  %v1375_v50 = vmax.f32 %v863_v44, 0.0  ;;  %v1376_v53 = vmax.f32 %v864_v46, 0.0  ;;  %v865_v55 = vadd.f32 3.0, %v353_v40  ;;  %v4767_v47 = vld [vmem:[%s4082_s24 + $0x700] sm:$0xff] }
 0x134   : > { %3417 = vst [vmem:[%s4112_s17 + $0x670] sm:$0xff] %v2905_v42  ;;  %v2906_v58 = vmul.f32 %v2394_v52, %v4714_v3  ;;  %v2395_v56 = vmul.f32 0.16666667, %v1883_v48  ;;  %v2396_v57 = vmul.f32 0.16666667, %v1884_v41  ;;  %v1886_v59 = vmin.f32 %v1374_v49, 6.0 }
 0x135   : > { %v2397_v60 = vmul.f32 0.16666667, %v1885_v45  ;;  %v1887_v61 = vmin.f32 %v1375_v50, 6.0  ;;  %v1888_v4 = vmin.f32 %v1376_v53, 6.0  ;;  %v1377_v54 = vmax.f32 %v865_v55, 0.0  ;;  %v364_v41 = vld [vmem:[%s4082_s24 + $0x708] sm:$0xff] }
 0x136   : > { %3418 = vst [vmem:[%s4112_s17 + $0x678] sm:$0xff] %v2906_v58  ;;  %v2907_v0 = vmul.f32 %v2395_v56, %v4719_v14  ;;  %v2908_v1 = vmul.f32 %v2396_v57, %v348_v16  ;;  %v2398_v2 = vmul.f32 0.16666667, %v1886_v59  ;;  %v866_v3 = vadd.f32 3.0, %v4738_v51  ;;  %v360_v16 = vld [vmem:[%s4082_s24 + $0x6e8] sm:$0xff]  ;;  %v365_v53 = vld [vmem:[%s4082_s24 + $0x710] sm:$0xff] }
 0x137   : > { %v2909_v6 = vmul.f32 %v2397_v60, %v349_v21  ;;  %v2399_v15 = vmul.f32 0.16666667, %v1887_v61  ;;  %v2400_v7 = vmul.f32 0.16666667, %v1888_v4  ;;  %v1889_v8 = vmin.f32 %v1377_v54, 6.0  ;;  %v366_v59 = vld [vmem:[%s4082_s24 + $0x718] sm:$0xff] }
 0x138   : > { %3419 = vst [vmem:[%s4112_s17 + $0x680] sm:$0xff] %v2907_v0  ;;  %v2910_v10 = vmul.f32 %v2398_v2, %v350_v25  ;;  %v1378_v11 = vmax.f32 %v866_v3, 0.0  ;;  %v867_v14 = vadd.f32 3.0, %v4743_v62  ;;  %v868_v20 = vadd.f32 3.0, %v356_v63  ;;  %v367_v54 = vld [vmem:[%s4082_s24 + $0x720] sm:$0xff] }
 0x139   : > { %3420 = vst [vmem:[%s4112_s17 + $0x688] sm:$0xff] %v2908_v1  ;;  %v2911_v13 = vmul.f32 %v2399_v15, %v351_v32  ;;  %v2912_v17 = vmul.f32 %v2400_v7, %v352_v33  ;;  %v2401_v18 = vmul.f32 0.16666667, %v1889_v8  ;;  %v869_v19 = vadd.f32 3.0, %v357_v5  ;;  %v369_v8 = vld [vmem:[%s4082_s24 + $0x730] sm:$0xff] }
 0x13a   : > { %3421 = vst [vmem:[%s4112_s17 + $0x690] sm:$0xff] %v2909_v6  ;;  %v1890_v21 = vmin.f32 %v1378_v11, 6.0  ;;  %v1379_v23 = vmax.f32 %v867_v14, 0.0  ;;  %v1380_v29 = vmax.f32 %v868_v20, 0.0  ;;  %v870_v24 = vadd.f32 3.0, %v358_v9  ;;  %v4786_v20 = vld [vmem:[%s4082_s24 + $0x738] sm:$0xff] }
 0x13b   : > { %3422 = vst [vmem:[%s4112_s17 + $0x698] sm:$0xff] %v2910_v10  ;;  %v2913_v25 = vmul.f32 %v2401_v18, %v353_v40  ;;  %v1381_v26 = vmax.f32 %v869_v19, 0.0  ;;  %v871_v27 = vadd.f32 3.0, %v359_v12  ;;  %v872_v28 = vadd.f32 3.0, %v360_v16 }
 0x13c   : > { %3423 = vst [vmem:[%s4112_s17 + $0x6a0] sm:$0xff] %v2911_v13  ;;  %v2402_v32 = vmul.f32 0.16666667, %v1890_v21  ;;  %v1891_v33 = vmin.f32 %v1379_v23, 6.0  ;;  %v1892_v34 = vmin.f32 %v1380_v29, 6.0  ;;  %v1382_v30 = vmax.f32 %v870_v24, 0.0 }
 0x13d   : > { %3424 = vst [vmem:[%s4112_s17 + $0x6a8] sm:$0xff] %v2912_v17  ;;  %v1893_v31 = vmin.f32 %v1381_v26, 6.0  ;;  %v1383_v35 = vmax.f32 %v871_v27, 0.0  ;;  %v1384_v38 = vmax.f32 %v872_v28, 0.0  ;;  %v873_v39 = vadd.f32 3.0, %v361_v22  ;;  %v4791_v29 = vld [vmem:[%s4082_s24 + $0x740] sm:$0xff] }
 0x13e   : > { %3425 = vst [vmem:[%s4112_s17 + $0x6b0] sm:$0xff] %v2913_v25  ;;  %v2914_v36 = vmul.f32 %v2402_v32, %v4738_v51  ;;  %v2403_v40 = vmul.f32 0.16666667, %v1891_v33  ;;  %v2404_v42 = vmul.f32 0.16666667, %v1892_v34  ;;  %v1894_v43 = vmin.f32 %v1382_v30, 6.0 }
 0x13f   : > { %v2405_v44 = vmul.f32 0.16666667, %v1893_v31  ;;  %v1895_v46 = vmin.f32 %v1383_v35, 6.0  ;;  %v1896_v52 = vmin.f32 %v1384_v38, 6.0  ;;  %v1385_v48 = vmax.f32 %v873_v39, 0.0  ;;  %v372_v34 = vld [vmem:[%s4082_s24 + $0x748] sm:$0xff] }
 0x140   : > { %3426 = vst [vmem:[%s4112_s17 + $0x6b8] sm:$0xff] %v2914_v36  ;;  %v2915_v49 = vmul.f32 %v2403_v40, %v4743_v62  ;;  %v2916_v45 = vmul.f32 %v2404_v42, %v356_v63  ;;  %v2406_v50 = vmul.f32 0.16666667, %v1894_v43  ;;  %v874_v51 = vadd.f32 3.0, %v4762_v37  ;;  %v368_v63 = vld [vmem:[%s4082_s24 + $0x728] sm:$0xff]  ;;  %v373_v38 = vld [vmem:[%s4082_s24 + $0x750] sm:$0xff] }
 0x141   : > { %v2917_v55 = vmul.f32 %v2405_v44, %v357_v5  ;;  %v2407_v58 = vmul.f32 0.16666667, %v1895_v46  ;;  %v2408_v56 = vmul.f32 0.16666667, %v1896_v52  ;;  %v1897_v57 = vmin.f32 %v1385_v48, 6.0  ;;  %v374_v43 = vld [vmem:[%s4082_s24 + $0x758] sm:$0xff] }
 0x142   : > { %3427 = vst [vmem:[%s4112_s17 + $0x6c0] sm:$0xff] %v2915_v49  ;;  %v2918_v60 = vmul.f32 %v2406_v50, %v358_v9  ;;  %v1386_v61 = vmax.f32 %v874_v51, 0.0  ;;  %v875_v62 = vadd.f32 3.0, %v4767_v47  ;;  %v876_v4 = vadd.f32 3.0, %v364_v41  ;;  %v375_v48 = vld [vmem:[%s4082_s24 + $0x760] sm:$0xff] }
 0x143   : > { %3428 = vst [vmem:[%s4112_s17 + $0x6c8] sm:$0xff] %v2916_v45  ;;  %v2919_v0 = vmul.f32 %v2407_v58, %v359_v12  ;;  %v2920_v1 = vmul.f32 %v2408_v56, %v360_v16  ;;  %v2409_v2 = vmul.f32 0.16666667, %v1897_v57  ;;  %v877_v3 = vadd.f32 3.0, %v365_v53  ;;  %v377_v57 = vld [vmem:[%s4082_s24 + $0x770] sm:$0xff] }
 0x144   : > { %3429 = vst [vmem:[%s4112_s17 + $0x6d0] sm:$0xff] %v2917_v55  ;;  %v1898_v5 = vmin.f32 %v1386_v61, 6.0  ;;  %v1387_v6 = vmax.f32 %v875_v62, 0.0  ;;  %v1388_v15 = vmax.f32 %v876_v4, 0.0  ;;  %v878_v7 = vadd.f32 3.0, %v366_v59  ;;  %v4810_v4 = vld [vmem:[%s4082_s24 + $0x778] sm:$0xff] }
 0x145   : > { %3430 = vst [vmem:[%s4112_s17 + $0x6d8] sm:$0xff] %v2918_v60  ;;  %v2921_v9 = vmul.f32 %v2409_v2, %v361_v22  ;;  %v1389_v10 = vmax.f32 %v877_v3, 0.0  ;;  %v879_v11 = vadd.f32 3.0, %v367_v54  ;;  %v880_v14 = vadd.f32 3.0, %v368_v63 }
 0x146   : > { %3431 = vst [vmem:[%s4112_s17 + $0x6e0] sm:$0xff] %v2919_v0  ;;  %v2410_v12 = vmul.f32 0.16666667, %v1898_v5  ;;  %v1899_v16 = vmin.f32 %v1387_v6, 6.0  ;;  %v1900_v13 = vmin.f32 %v1388_v15, 6.0  ;;  %v1390_v17 = vmax.f32 %v878_v7, 0.0 }
 0x147   : > { %3432 = vst [vmem:[%s4112_s17 + $0x6e8] sm:$0xff] %v2920_v1  ;;  %v1901_v18 = vmin.f32 %v1389_v10, 6.0  ;;  %v1391_v19 = vmax.f32 %v879_v11, 0.0  ;;  %v1392_v21 = vmax.f32 %v880_v14, 0.0  ;;  %v881_v23 = vadd.f32 3.0, %v369_v8  ;;  %v4815_v15 = vld [vmem:[%s4082_s24 + $0x780] sm:$0xff] }
 0x148   : > { %3433 = vst [vmem:[%s4112_s17 + $0x6f0] sm:$0xff] %v2921_v9  ;;  %v2922_v24 = vmul.f32 %v2410_v12, %v4762_v37  ;;  %v2411_v22 = vmul.f32 0.16666667, %v1899_v16  ;;  %v2412_v25 = vmul.f32 0.16666667, %v1900_v13  ;;  %v1902_v26 = vmin.f32 %v1390_v17, 6.0 }
 0x149   : > { %v2413_v27 = vmul.f32 0.16666667, %v1901_v18  ;;  %v1903_v28 = vmin.f32 %v1391_v19, 6.0  ;;  %v1904_v32 = vmin.f32 %v1392_v21, 6.0  ;;  %v1393_v33 = vmax.f32 %v881_v23, 0.0  ;;  %v380_v13 = vld [vmem:[%s4082_s24 + $0x788] sm:$0xff] }
 0x14a   : > { %3434 = vst [vmem:[%s4112_s17 + $0x6f8] sm:$0xff] %v2922_v24  ;;  %v2923_v30 = vmul.f32 %v2411_v22, %v4767_v47  ;;  %v2924_v31 = vmul.f32 %v2412_v25, %v364_v41  ;;  %v2414_v35 = vmul.f32 0.16666667, %v1902_v26  ;;  %v882_v37 = vadd.f32 3.0, %v4786_v20  ;;  %v376_v41 = vld [vmem:[%s4082_s24 + $0x768] sm:$0xff]  ;;  %v381_v21 = vld [vmem:[%s4082_s24 + $0x790] sm:$0xff] }
 0x14b   : > { %v2925_v39 = vmul.f32 %v2413_v27, %v365_v53  ;;  %v2415_v36 = vmul.f32 0.16666667, %v1903_v28  ;;  %v2416_v40 = vmul.f32 0.16666667, %v1904_v32  ;;  %v1905_v42 = vmin.f32 %v1393_v33, 6.0  ;;  %v382_v26 = vld [vmem:[%s4082_s24 + $0x798] sm:$0xff] }
 0x14c   : > { %3435 = vst [vmem:[%s4112_s17 + $0x700] sm:$0xff] %v2923_v30  ;;  %v2926_v44 = vmul.f32 %v2414_v35, %v366_v59  ;;  %v1394_v46 = vmax.f32 %v882_v37, 0.0  ;;  %v883_v47 = vadd.f32 3.0, %v4791_v29  ;;  %v884_v52 = vadd.f32 3.0, %v372_v34  ;;  %v383_v33 = vld [vmem:[%s4082_s24 + $0x7a0] sm:$0xff] }
 0x14d   : > { %3436 = vst [vmem:[%s4112_s17 + $0x708] sm:$0xff] %v2924_v31  ;;  %v2927_v49 = vmul.f32 %v2415_v36, %v367_v54  ;;  %v2928_v45 = vmul.f32 %v2416_v40, %v368_v63  ;;  %v2417_v50 = vmul.f32 0.16666667, %v1905_v42  ;;  %v885_v51 = vadd.f32 3.0, %v373_v38  ;;  %v385_v42 = vld [vmem:[%s4082_s24 + $0x7b0] sm:$0xff] }
 0x14e   : > { %3437 = vst [vmem:[%s4112_s17 + $0x710] sm:$0xff] %v2925_v39  ;;  %v1906_v53 = vmin.f32 %v1394_v46, 6.0  ;;  %v1395_v55 = vmax.f32 %v883_v47, 0.0  ;;  %v1396_v58 = vmax.f32 %v884_v52, 0.0  ;;  %v886_v56 = vadd.f32 3.0, %v374_v43  ;;  %v4834_v52 = vld [vmem:[%s4082_s24 + $0x7b8] sm:$0xff] }
 0x14f   : > { %3438 = vst [vmem:[%s4112_s17 + $0x718] sm:$0xff] %v2926_v44  ;;  %v2929_v59 = vmul.f32 %v2417_v50, %v369_v8  ;;  %v1397_v60 = vmax.f32 %v885_v51, 0.0  ;;  %v887_v61 = vadd.f32 3.0, %v375_v48  ;;  %v888_v62 = vadd.f32 3.0, %v376_v41 }
 0x150   : > { %3439 = vst [vmem:[%s4112_s17 + $0x720] sm:$0xff] %v2927_v49  ;;  %v2418_v54 = vmul.f32 0.16666667, %v1906_v53  ;;  %v1907_v63 = vmin.f32 %v1395_v55, 6.0  ;;  %v1908_v0 = vmin.f32 %v1396_v58, 6.0  ;;  %v1398_v1 = vmax.f32 %v886_v56, 0.0 }
 0x151   : > { %3440 = vst [vmem:[%s4112_s17 + $0x728] sm:$0xff] %v2928_v45  ;;  %v1909_v2 = vmin.f32 %v1397_v60, 6.0  ;;  %v1399_v3 = vmax.f32 %v887_v61, 0.0  ;;  %v1400_v5 = vmax.f32 %v888_v62, 0.0  ;;  %v889_v6 = vadd.f32 3.0, %v377_v57  ;;  %v4839_v58 = vld [vmem:[%s4082_s24 + $0x7c0] sm:$0xff] }
 0x152   : > { %3441 = vst [vmem:[%s4112_s17 + $0x730] sm:$0xff] %v2929_v59  ;;  %v2930_v7 = vmul.f32 %v2418_v54, %v4786_v20  ;;  %v2419_v8 = vmul.f32 0.16666667, %v1907_v63  ;;  %v2420_v9 = vmul.f32 0.16666667, %v1908_v0  ;;  %v1910_v10 = vmin.f32 %v1398_v1, 6.0 }
 0x153   : > { %v2421_v11 = vmul.f32 0.16666667, %v1909_v2  ;;  %v1911_v14 = vmin.f32 %v1399_v3, 6.0  ;;  %v1912_v12 = vmin.f32 %v1400_v5, 6.0  ;;  %v1401_v16 = vmax.f32 %v889_v6, 0.0  ;;  %v388_v0 = vld [vmem:[%s4082_s24 + $0x7c8] sm:$0xff] }
 0x154   : > { %3442 = vst [vmem:[%s4112_s17 + $0x738] sm:$0xff] %v2930_v7  ;;  %v2931_v17 = vmul.f32 %v2419_v8, %v4791_v29  ;;  %v2932_v18 = vmul.f32 %v2420_v9, %v372_v34  ;;  %v2422_v19 = vmul.f32 0.16666667, %v1910_v10  ;;  %v890_v20 = vadd.f32 3.0, %v4810_v4  ;;  %v384_v34 = vld [vmem:[%s4082_s24 + $0x7a8] sm:$0xff]  ;;  %v389_v5 = vld [vmem:[%s4082_s24 + $0x7d0] sm:$0xff] }
 0x155   : > { %v2933_v23 = vmul.f32 %v2421_v11, %v373_v38  ;;  %v2423_v24 = vmul.f32 0.16666667, %v1911_v14  ;;  %v2424_v22 = vmul.f32 0.16666667, %v1912_v12  ;;  %v1913_v25 = vmin.f32 %v1401_v16, 6.0  ;;  %v390_v10 = vld [vmem:[%s4082_s24 + $0x7d8] sm:$0xff] }
 0x156   : > { %3443 = vst [vmem:[%s4112_s17 + $0x740] sm:$0xff] %v2931_v17  ;;  %v2934_v27 = vmul.f32 %v2422_v19, %v374_v43  ;;  %v1402_v28 = vmax.f32 %v890_v20, 0.0  ;;  %v891_v29 = vadd.f32 3.0, %v4815_v15  ;;  %v892_v32 = vadd.f32 3.0, %v380_v13  ;;  %v391_v16 = vld [vmem:[%s4082_s24 + $0x7e0] sm:$0xff] }
 0x157   : > { %3444 = vst [vmem:[%s4112_s17 + $0x748] sm:$0xff] %v2932_v18  ;;  %v2935_v30 = vmul.f32 %v2423_v24, %v375_v48  ;;  %v2936_v31 = vmul.f32 %v2424_v22, %v376_v41  ;;  %v2425_v35 = vmul.f32 0.16666667, %v1913_v25  ;;  %v893_v37 = vadd.f32 3.0, %v381_v21  ;;  %v393_v25 = vld [vmem:[%s4082_s24 + $0x7f0] sm:$0xff] }
 0x158   : > { %3445 = vst [vmem:[%s4112_s17 + $0x750] sm:$0xff] %v2933_v23  ;;  %v1914_v38 = vmin.f32 %v1402_v28, 6.0  ;;  %v1403_v39 = vmax.f32 %v891_v29, 0.0  ;;  %v1404_v36 = vmax.f32 %v892_v32, 0.0  ;;  %v894_v40 = vadd.f32 3.0, %v382_v26  ;;  %v4858_v32 = vld [vmem:[%s4082_s24 + $0x7f8] sm:$0xff] }
 0x159   : > { %3446 = vst [vmem:[%s4112_s17 + $0x758] sm:$0xff] %v2934_v27  ;;  %v2937_v43 = vmul.f32 %v2425_v35, %v377_v57  ;;  %v1405_v44 = vmax.f32 %v893_v37, 0.0  ;;  %v895_v46 = vadd.f32 3.0, %v383_v33  ;;  %v896_v47 = vadd.f32 3.0, %v384_v34 }
 0x15a   : > { %3447 = vst [vmem:[%s4112_s17 + $0x760] sm:$0xff] %v2935_v30  ;;  %v2426_v48 = vmul.f32 0.16666667, %v1914_v38  ;;  %v1915_v41 = vmin.f32 %v1403_v39, 6.0  ;;  %v1916_v49 = vmin.f32 %v1404_v36, 6.0  ;;  %v1406_v45 = vmax.f32 %v894_v40, 0.0 }
 0x15b   : > { %3448 = vst [vmem:[%s4112_s17 + $0x768] sm:$0xff] %v2936_v31  ;;  %v1917_v50 = vmin.f32 %v1405_v44, 6.0  ;;  %v1407_v51 = vmax.f32 %v895_v46, 0.0  ;;  %v1408_v53 = vmax.f32 %v896_v47, 0.0  ;;  %v897_v55 = vadd.f32 3.0, %v385_v42  ;;  %v4863_v36 = vld [vmem:[%s4082_s24 + $0x800] sm:$0xff] }
 0x15c   : > { %3449 = vst [vmem:[%s4112_s17 + $0x770] sm:$0xff] %v2937_v43  ;;  %v2938_v56 = vmul.f32 %v2426_v48, %v4810_v4  ;;  %v2427_v57 = vmul.f32 0.16666667, %v1915_v41  ;;  %v2428_v59 = vmul.f32 0.16666667, %v1916_v49  ;;  %v1918_v60 = vmin.f32 %v1406_v45, 6.0 }
 0x15d   : > { %v2429_v61 = vmul.f32 0.16666667, %v1917_v50  ;;  %v1919_v62 = vmin.f32 %v1407_v51, 6.0  ;;  %v1920_v54 = vmin.f32 %v1408_v53, 6.0  ;;  %v1409_v63 = vmax.f32 %v897_v55, 0.0  ;;  %v396_v49 = vld [vmem:[%s4082_s24 + $0x808] sm:$0xff] }
 0x15e   : > { %3450 = vst [vmem:[%s4112_s17 + $0x778] sm:$0xff] %v2938_v56  ;;  %v2939_v1 = vmul.f32 %v2427_v57, %v4815_v15  ;;  %v2940_v2 = vmul.f32 %v2428_v59, %v380_v13  ;;  %v2430_v3 = vmul.f32 0.16666667, %v1918_v60  ;;  %v898_v4 = vadd.f32 3.0, %v4834_v52  ;;  %v392_v13 = vld [vmem:[%s4082_s24 + $0x7e8] sm:$0xff]  ;;  %v397_v53 = vld [vmem:[%s4082_s24 + $0x810] sm:$0xff] }
 0x15f   : > { %v2941_v6 = vmul.f32 %v2429_v61, %v381_v21  ;;  %v2431_v7 = vmul.f32 0.16666667, %v1919_v62  ;;  %v2432_v8 = vmul.f32 0.16666667, %v1920_v54  ;;  %v1921_v9 = vmin.f32 %v1409_v63, 6.0  ;;  %v398_v60 = vld [vmem:[%s4082_s24 + $0x818] sm:$0xff] }
 0x160   : > { %3451 = vst [vmem:[%s4112_s17 + $0x780] sm:$0xff] %v2939_v1  ;;  %v2942_v11 = vmul.f32 %v2430_v3, %v382_v26  ;;  %v1410_v14 = vmax.f32 %v898_v4, 0.0  ;;  %v899_v15 = vadd.f32 3.0, %v4839_v58  ;;  %v900_v12 = vadd.f32 3.0, %v388_v0  ;;  %v399_v63 = vld [vmem:[%s4082_s24 + $0x820] sm:$0xff] }
 0x161   : > { %3452 = vst [vmem:[%s4112_s17 + $0x788] sm:$0xff] %v2940_v2  ;;  %v2943_v17 = vmul.f32 %v2431_v7, %v383_v33  ;;  %v2944_v18 = vmul.f32 %v2432_v8, %v384_v34  ;;  %v2433_v19 = vmul.f32 0.16666667, %v1921_v9  ;;  %v901_v20 = vadd.f32 3.0, %v389_v5  ;;  %v401_v9 = vld [vmem:[%s4082_s24 + $0x830] sm:$0xff] }
 0x162   : > { %3453 = vst [vmem:[%s4112_s17 + $0x790] sm:$0xff] %v2941_v6  ;;  %v1922_v21 = vmin.f32 %v1410_v14, 6.0  ;;  %v1411_v23 = vmax.f32 %v899_v15, 0.0  ;;  %v1412_v24 = vmax.f32 %v900_v12, 0.0  ;;  %v902_v22 = vadd.f32 3.0, %v390_v10  ;;  %v4882_v12 = vld [vmem:[%s4082_s24 + $0x838] sm:$0xff] }
 0x163   : > { %3454 = vst [vmem:[%s4112_s17 + $0x798] sm:$0xff] %v2942_v11  ;;  %v2945_v26 = vmul.f32 %v2433_v19, %v385_v42  ;;  %v1413_v27 = vmax.f32 %v901_v20, 0.0  ;;  %v903_v28 = vadd.f32 3.0, %v391_v16  ;;  %v904_v29 = vadd.f32 3.0, %v392_v13 }
 0x164   : > { %3455 = vst [vmem:[%s4112_s17 + $0x7a0] sm:$0xff] %v2943_v17  ;;  %v2434_v33 = vmul.f32 0.16666667, %v1922_v21  ;;  %v1923_v34 = vmin.f32 %v1411_v23, 6.0  ;;  %v1924_v30 = vmin.f32 %v1412_v24, 6.0  ;;  %v1414_v31 = vmax.f32 %v902_v22, 0.0 }
 0x165   : > { %3456 = vst [vmem:[%s4112_s17 + $0x7a8] sm:$0xff] %v2944_v18  ;;  %v1925_v35 = vmin.f32 %v1413_v27, 6.0  ;;  %v1415_v37 = vmax.f32 %v903_v28, 0.0  ;;  %v1416_v38 = vmax.f32 %v904_v29, 0.0  ;;  %v905_v39 = vadd.f32 3.0, %v393_v25  ;;  %v4887_v24 = vld [vmem:[%s4082_s24 + $0x840] sm:$0xff] }
 0x166   : > { %3457 = vst [vmem:[%s4112_s17 + $0x7b0] sm:$0xff] %v2945_v26  ;;  %v2946_v40 = vmul.f32 %v2434_v33, %v4834_v52  ;;  %v2435_v42 = vmul.f32 0.16666667, %v1923_v34  ;;  %v2436_v43 = vmul.f32 0.16666667, %v1924_v30  ;;  %v1926_v44 = vmin.f32 %v1414_v31, 6.0 }
 0x167   : > { %v2437_v46 = vmul.f32 0.16666667, %v1925_v35  ;;  %v1927_v47 = vmin.f32 %v1415_v37, 6.0  ;;  %v1928_v48 = vmin.f32 %v1416_v38, 6.0  ;;  %v1417_v41 = vmax.f32 %v905_v39, 0.0  ;;  %v404_v30 = vld [vmem:[%s4082_s24 + $0x848] sm:$0xff] }
 0x168   : > { %3458 = vst [vmem:[%s4112_s17 + $0x7b8] sm:$0xff] %v2946_v40  ;;  %v2947_v45 = vmul.f32 %v2435_v42, %v4839_v58  ;;  %v2948_v50 = vmul.f32 %v2436_v43, %v388_v0  ;;  %v2438_v51 = vmul.f32 0.16666667, %v1926_v44  ;;  %v906_v52 = vadd.f32 3.0, %v4858_v32  ;;  %v400_v0 = vld [vmem:[%s4082_s24 + $0x828] sm:$0xff]  ;;  %v405_v38 = vld [vmem:[%s4082_s24 + $0x850] sm:$0xff] }
 0x169   : > { %v2949_v55 = vmul.f32 %v2437_v46, %v389_v5  ;;  %v2439_v56 = vmul.f32 0.16666667, %v1927_v47  ;;  %v2440_v57 = vmul.f32 0.16666667, %v1928_v48  ;;  %v1929_v59 = vmin.f32 %v1417_v41, 6.0  ;;  %v406_v44 = vld [vmem:[%s4082_s24 + $0x858] sm:$0xff] }
 0x16a   : > { %3459 = vst [vmem:[%s4112_s17 + $0x7c0] sm:$0xff] %v2947_v45  ;;  %v2950_v61 = vmul.f32 %v2438_v51, %v390_v10  ;;  %v1418_v62 = vmax.f32 %v906_v52, 0.0  ;;  %v907_v58 = vadd.f32 3.0, %v4863_v36  ;;  %v908_v54 = vadd.f32 3.0, %v396_v49  ;;  %v407_v41 = vld [vmem:[%s4082_s24 + $0x860] sm:$0xff] }
 0x16b   : > { %3460 = vst [vmem:[%s4112_s17 + $0x7c8] sm:$0xff] %v2948_v50  ;;  %v2951_v1 = vmul.f32 %v2439_v56, %v391_v16  ;;  %v2952_v2 = vmul.f32 %v2440_v57, %v392_v13  ;;  %v2441_v3 = vmul.f32 0.16666667, %v1929_v59  ;;  %v909_v4 = vadd.f32 3.0, %v397_v53  ;;  %v409_v59 = vld [vmem:[%s4082_s24 + $0x870] sm:$0xff] }
 0x16c   : > { %3461 = vst [vmem:[%s4112_s17 + $0x7d0] sm:$0xff] %v2949_v55  ;;  %v1930_v5 = vmin.f32 %v1418_v62, 6.0  ;;  %v1419_v6 = vmax.f32 %v907_v58, 0.0  ;;  %v1420_v7 = vmax.f32 %v908_v54, 0.0  ;;  %v910_v8 = vadd.f32 3.0, %v398_v60  ;;  %v4906_v54 = vld [vmem:[%s4082_s24 + $0x878] sm:$0xff] }
 0x16d   : > { %3462 = vst [vmem:[%s4112_s17 + $0x7d8] sm:$0xff] %v2950_v61  ;;  %v2953_v10 = vmul.f32 %v2441_v3, %v393_v25  ;;  %v1421_v11 = vmax.f32 %v909_v4, 0.0  ;;  %v911_v14 = vadd.f32 3.0, %v399_v63  ;;  %v912_v15 = vadd.f32 3.0, %v400_v0 }
 0x16e   : > { %3463 = vst [vmem:[%s4112_s17 + $0x7e0] sm:$0xff] %v2951_v1  ;;  %v2442_v16 = vmul.f32 0.16666667, %v1930_v5  ;;  %v1931_v13 = vmin.f32 %v1419_v6, 6.0  ;;  %v1932_v17 = vmin.f32 %v1420_v7, 6.0  ;;  %v1422_v18 = vmax.f32 %v910_v8, 0.0 }
 0x16f   : > { %3464 = vst [vmem:[%s4112_s17 + $0x7e8] sm:$0xff] %v2952_v2  ;;  %v1933_v19 = vmin.f32 %v1421_v11, 6.0  ;;  %v1423_v20 = vmax.f32 %v911_v14, 0.0  ;;  %v1424_v21 = vmax.f32 %v912_v15, 0.0  ;;  %v913_v23 = vadd.f32 3.0, %v401_v9  ;;  %v4911_v7 = vld [vmem:[%s4082_s24 + $0x880] sm:$0xff] }
 0x170   : > { %3465 = vst [vmem:[%s4112_s17 + $0x7f0] sm:$0xff] %v2953_v10  ;;  %v2954_v22 = vmul.f32 %v2442_v16, %v4858_v32  ;;  %v2443_v25 = vmul.f32 0.16666667, %v1931_v13  ;;  %v2444_v26 = vmul.f32 0.16666667, %v1932_v17  ;;  %v1934_v27 = vmin.f32 %v1422_v18, 6.0 }
 0x171   : > { %v2445_v28 = vmul.f32 0.16666667, %v1933_v19  ;;  %v1935_v29 = vmin.f32 %v1423_v20, 6.0  ;;  %v1936_v33 = vmin.f32 %v1424_v21, 6.0  ;;  %v1425_v34 = vmax.f32 %v913_v23, 0.0  ;;  %v412_v17 = vld [vmem:[%s4082_s24 + $0x888] sm:$0xff] }
 0x172   : > { %3466 = vst [vmem:[%s4112_s17 + $0x7f8] sm:$0xff] %v2954_v22  ;;  %v2955_v31 = vmul.f32 %v2443_v25, %v4863_v36  ;;  %v2956_v35 = vmul.f32 %v2444_v26, %v396_v49  ;;  %v2446_v37 = vmul.f32 0.16666667, %v1934_v27  ;;  %v914_v32 = vadd.f32 3.0, %v4882_v12  ;;  %v408_v49 = vld [vmem:[%s4082_s24 + $0x868] sm:$0xff]  ;;  %v413_v21 = vld [vmem:[%s4082_s24 + $0x890] sm:$0xff] }
 0x173   : > { %v2957_v39 = vmul.f32 %v2445_v28, %v397_v53  ;;  %v2447_v40 = vmul.f32 0.16666667, %v1935_v29  ;;  %v2448_v42 = vmul.f32 0.16666667, %v1936_v33  ;;  %v1937_v43 = vmin.f32 %v1425_v34, 6.0  ;;  %v414_v27 = vld [vmem:[%s4082_s24 + $0x898] sm:$0xff] }
 0x174   : > { %3467 = vst [vmem:[%s4112_s17 + $0x800] sm:$0xff] %v2955_v31  ;;  %v2958_v46 = vmul.f32 %v2446_v37, %v398_v60  ;;  %v1426_v47 = vmax.f32 %v914_v32, 0.0  ;;  %v915_v36 = vadd.f32 3.0, %v4887_v24  ;;  %v916_v48 = vadd.f32 3.0, %v404_v30  ;;  %v415_v34 = vld [vmem:[%s4082_s24 + $0x8a0] sm:$0xff] }
 0x175   : > { %3468 = vst [vmem:[%s4112_s17 + $0x808] sm:$0xff] %v2956_v35  ;;  %v2959_v45 = vmul.f32 %v2447_v40, %v399_v63  ;;  %v2960_v50 = vmul.f32 %v2448_v42, %v400_v0  ;;  %v2449_v51 = vmul.f32 0.16666667, %v1937_v43  ;;  %v917_v52 = vadd.f32 3.0, %v405_v38  ;;  %v417_v43 = vld [vmem:[%s4082_s24 + $0x8b0] sm:$0xff] }
 0x176   : > { %3469 = vst [vmem:[%s4112_s17 + $0x810] sm:$0xff] %v2957_v39  ;;  %v1938_v53 = vmin.f32 %v1426_v47, 6.0  ;;  %v1427_v55 = vmax.f32 %v915_v36, 0.0  ;;  %v1428_v56 = vmax.f32 %v916_v48, 0.0  ;;  %v918_v57 = vadd.f32 3.0, %v406_v44  ;;  %v4930_v48 = vld [vmem:[%s4082_s24 + $0x8b8] sm:$0xff] }
 0x177   : > { %3470 = vst [vmem:[%s4112_s17 + $0x818] sm:$0xff] %v2958_v46  ;;  %v2961_v60 = vmul.f32 %v2449_v51, %v401_v9  ;;  %v1429_v61 = vmax.f32 %v917_v52, 0.0  ;;  %v919_v62 = vadd.f32 3.0, %v407_v41  ;;  %v920_v58 = vadd.f32 3.0, %v408_v49 }
 0x178   : > { %3471 = vst [vmem:[%s4112_s17 + $0x820] sm:$0xff] %v2959_v45  ;;  %v2450_v63 = vmul.f32 0.16666667, %v1938_v53  ;;  %v1939_v0 = vmin.f32 %v1427_v55, 6.0  ;;  %v1940_v1 = vmin.f32 %v1428_v56, 6.0  ;;  %v1430_v2 = vmax.f32 %v918_v57, 0.0 }
 0x179   : > { %3472 = vst [vmem:[%s4112_s17 + $0x828] sm:$0xff] %v2960_v50  ;;  %v1941_v3 = vmin.f32 %v1429_v61, 6.0  ;;  %v1431_v4 = vmax.f32 %v919_v62, 0.0  ;;  %v1432_v5 = vmax.f32 %v920_v58, 0.0  ;;  %v921_v6 = vadd.f32 3.0, %v409_v59  ;;  %v4935_v56 = vld [vmem:[%s4082_s24 + $0x8c0] sm:$0xff] }
 0x17a   : > { %3473 = vst [vmem:[%s4112_s17 + $0x830] sm:$0xff] %v2961_v60  ;;  %v2962_v8 = vmul.f32 %v2450_v63, %v4882_v12  ;;  %v2451_v9 = vmul.f32 0.16666667, %v1939_v0  ;;  %v2452_v10 = vmul.f32 0.16666667, %v1940_v1  ;;  %v1942_v11 = vmin.f32 %v1430_v2, 6.0 }
 0x17b   : > { %v2453_v14 = vmul.f32 0.16666667, %v1941_v3  ;;  %v1943_v15 = vmin.f32 %v1431_v4, 6.0  ;;  %v1944_v16 = vmin.f32 %v1432_v5, 6.0  ;;  %v1433_v13 = vmax.f32 %v921_v6, 0.0  ;;  %v420_v1 = vld [vmem:[%s4082_s24 + $0x8c8] sm:$0xff] }
 0x17c   : > { %3474 = vst [vmem:[%s4112_s17 + $0x838] sm:$0xff] %v2962_v8  ;;  %v2963_v18 = vmul.f32 %v2451_v9, %v4887_v24  ;;  %v2964_v19 = vmul.f32 %v2452_v10, %v404_v30  ;;  %v2454_v20 = vmul.f32 0.16666667, %v1942_v11  ;;  %v922_v12 = vadd.f32 3.0, %v4906_v54  ;;  %v416_v30 = vld [vmem:[%s4082_s24 + $0x8a8] sm:$0xff]  ;;  %v421_v5 = vld [vmem:[%s4082_s24 + $0x8d0] sm:$0xff] }
 0x17d   : > { %v2965_v23 = vmul.f32 %v2453_v14, %v405_v38  ;;  %v2455_v22 = vmul.f32 0.16666667, %v1943_v15  ;;  %v2456_v25 = vmul.f32 0.16666667, %v1944_v16  ;;  %v1945_v26 = vmin.f32 %v1433_v13, 6.0  ;;  %v422_v11 = vld [vmem:[%s4082_s24 + $0x8d8] sm:$0xff] }
 0x17e   : > { %3475 = vst [vmem:[%s4112_s17 + $0x840] sm:$0xff] %v2963_v18  ;;  %v2966_v28 = vmul.f32 %v2454_v20, %v406_v44  ;;  %v1434_v29 = vmax.f32 %v922_v12, 0.0  ;;  %v923_v24 = vadd.f32 3.0, %v4911_v7  ;;  %v924_v33 = vadd.f32 3.0, %v412_v17  ;;  %v423_v13 = vld [vmem:[%s4082_s24 + $0x8e0] sm:$0xff] }
 0x17f   : > { %3476 = vst [vmem:[%s4112_s17 + $0x848] sm:$0xff] %v2964_v19  ;;  %v2967_v31 = vmul.f32 %v2455_v22, %v407_v41  ;;  %v2968_v35 = vmul.f32 %v2456_v25, %v408_v49  ;;  %v2457_v37 = vmul.f32 0.16666667, %v1945_v26  ;;  %v925_v32 = vadd.f32 3.0, %v413_v21  ;;  %v425_v26 = vld [vmem:[%s4082_s24 + $0x8f0] sm:$0xff] }
 0x180   : > { %3477 = vst [vmem:[%s4112_s17 + $0x850] sm:$0xff] %v2965_v23  ;;  %v1946_v38 = vmin.f32 %v1434_v29, 6.0  ;;  %v1435_v39 = vmax.f32 %v923_v24, 0.0  ;;  %v1436_v40 = vmax.f32 %v924_v33, 0.0  ;;  %v926_v42 = vadd.f32 3.0, %v414_v27  ;;  %v4954_v33 = vld [vmem:[%s4082_s24 + $0x8f8] sm:$0xff] }
 0x181   : > { %3478 = vst [vmem:[%s4112_s17 + $0x858] sm:$0xff] %v2966_v28  ;;  %v2969_v44 = vmul.f32 %v2457_v37, %v409_v59  ;;  %v1437_v46 = vmax.f32 %v925_v32, 0.0  ;;  %v927_v47 = vadd.f32 3.0, %v415_v34  ;;  %v928_v36 = vadd.f32 3.0, %v416_v30 }
 0x182   : > { %3479 = vst [vmem:[%s4112_s17 + $0x860] sm:$0xff] %v2967_v31  ;;  %v2458_v41 = vmul.f32 0.16666667, %v1946_v38  ;;  %v1947_v49 = vmin.f32 %v1435_v39, 6.0  ;;  %v1948_v45 = vmin.f32 %v1436_v40, 6.0  ;;  %v1438_v50 = vmax.f32 %v926_v42, 0.0 }
 0x183   : > { %3480 = vst [vmem:[%s4112_s17 + $0x868] sm:$0xff] %v2968_v35  ;;  %v1949_v51 = vmin.f32 %v1437_v46, 6.0  ;;  %v1439_v52 = vmax.f32 %v927_v47, 0.0  ;;  %v1440_v53 = vmax.f32 %v928_v36, 0.0  ;;  %v929_v55 = vadd.f32 3.0, %v417_v43  ;;  %v4959_v40 = vld [vmem:[%s4082_s24 + $0x900] sm:$0xff] }
 0x184   : > { %3481 = vst [vmem:[%s4112_s17 + $0x870] sm:$0xff] %v2969_v44  ;;  %v2970_v57 = vmul.f32 %v2458_v41, %v4906_v54  ;;  %v2459_v59 = vmul.f32 0.16666667, %v1947_v49  ;;  %v2460_v60 = vmul.f32 0.16666667, %v1948_v45  ;;  %v1950_v61 = vmin.f32 %v1438_v50, 6.0 }
 0x185   : > { %v2461_v62 = vmul.f32 0.16666667, %v1949_v51  ;;  %v1951_v58 = vmin.f32 %v1439_v52, 6.0  ;;  %v1952_v63 = vmin.f32 %v1440_v53, 6.0  ;;  %v1441_v0 = vmax.f32 %v929_v55, 0.0  ;;  %v428_v45 = vld [vmem:[%s4082_s24 + $0x908] sm:$0xff] }
 0x186   : > { %3482 = vst [vmem:[%s4112_s17 + $0x878] sm:$0xff] %v2970_v57  ;;  %v2971_v2 = vmul.f32 %v2459_v59, %v4911_v7  ;;  %v2972_v3 = vmul.f32 %v2460_v60, %v412_v17  ;;  %v2462_v4 = vmul.f32 0.16666667, %v1950_v61  ;;  %v930_v54 = vadd.f32 3.0, %v4930_v48  ;;  %v424_v17 = vld [vmem:[%s4082_s24 + $0x8e8] sm:$0xff]  ;;  %v429_v53 = vld [vmem:[%s4082_s24 + $0x910] sm:$0xff] }
 0x187   : > { %v2973_v6 = vmul.f32 %v2461_v62, %v413_v21  ;;  %v2463_v8 = vmul.f32 0.16666667, %v1951_v58  ;;  %v2464_v9 = vmul.f32 0.16666667, %v1952_v63  ;;  %v1953_v10 = vmin.f32 %v1441_v0, 6.0  ;;  %v430_v61 = vld [vmem:[%s4082_s24 + $0x918] sm:$0xff] }
 0x188   : > { %3483 = vst [vmem:[%s4112_s17 + $0x880] sm:$0xff] %v2971_v2  ;;  %v2974_v14 = vmul.f32 %v2462_v4, %v414_v27  ;;  %v1442_v15 = vmax.f32 %v930_v54, 0.0  ;;  %v931_v7 = vadd.f32 3.0, %v4935_v56  ;;  %v932_v16 = vadd.f32 3.0, %v420_v1  ;;  %v431_v0 = vld [vmem:[%s4082_s24 + $0x920] sm:$0xff] }
 0x189   : > { %3484 = vst [vmem:[%s4112_s17 + $0x888] sm:$0xff] %v2972_v3  ;;  %v2975_v18 = vmul.f32 %v2463_v8, %v415_v34  ;;  %v2976_v19 = vmul.f32 %v2464_v9, %v416_v30  ;;  %v2465_v20 = vmul.f32 0.16666667, %v1953_v10  ;;  %v933_v12 = vadd.f32 3.0, %v421_v5  ;;  %v433_v10 = vld [vmem:[%s4082_s24 + $0x930] sm:$0xff] }
 0x18a   : > { %3485 = vst [vmem:[%s4112_s17 + $0x890] sm:$0xff] %v2973_v6  ;;  %v1954_v21 = vmin.f32 %v1442_v15, 6.0  ;;  %v1443_v23 = vmax.f32 %v931_v7, 0.0  ;;  %v1444_v22 = vmax.f32 %v932_v16, 0.0  ;;  %v934_v25 = vadd.f32 3.0, %v422_v11  ;;  %v4978_v16 = vld [vmem:[%s4082_s24 + $0x938] sm:$0xff] }
 0x18b   : > { %3486 = vst [vmem:[%s4112_s17 + $0x898] sm:$0xff] %v2974_v14  ;;  %v2977_v27 = vmul.f32 %v2465_v20, %v417_v43  ;;  %v1445_v28 = vmax.f32 %v933_v12, 0.0  ;;  %v935_v29 = vadd.f32 3.0, %v423_v13  ;;  %v936_v24 = vadd.f32 3.0, %v424_v17 }
 0x18c   : > { %3487 = vst [vmem:[%s4112_s17 + $0x8a0] sm:$0xff] %v2975_v18  ;;  %v2466_v34 = vmul.f32 0.16666667, %v1954_v21  ;;  %v1955_v30 = vmin.f32 %v1443_v23, 6.0  ;;  %v1956_v31 = vmin.f32 %v1444_v22, 6.0  ;;  %v1446_v35 = vmax.f32 %v934_v25, 0.0 }
 0x18d   : > { %3488 = vst [vmem:[%s4112_s17 + $0x8a8] sm:$0xff] %v2976_v19  ;;  %v1957_v37 = vmin.f32 %v1445_v28, 6.0  ;;  %v1447_v32 = vmax.f32 %v935_v29, 0.0  ;;  %v1448_v38 = vmax.f32 %v936_v24, 0.0  ;;  %v937_v39 = vadd.f32 3.0, %v425_v26  ;;  %v4983_v22 = vld [vmem:[%s4082_s24 + $0x940] sm:$0xff] }
 0x18e   : > { %3489 = vst [vmem:[%s4112_s17 + $0x8b0] sm:$0xff] %v2977_v27  ;;  %v2978_v42 = vmul.f32 %v2466_v34, %v4930_v48  ;;  %v2467_v43 = vmul.f32 0.16666667, %v1955_v30  ;;  %v2468_v44 = vmul.f32 0.16666667, %v1956_v31  ;;  %v1958_v46 = vmin.f32 %v1446_v35, 6.0 }
 0x18f   : > { %v2469_v47 = vmul.f32 0.16666667, %v1957_v37  ;;  %v1959_v36 = vmin.f32 %v1447_v32, 6.0  ;;  %v1960_v41 = vmin.f32 %v1448_v38, 6.0  ;;  %v1449_v49 = vmax.f32 %v937_v39, 0.0  ;;  %v436_v31 = vld [vmem:[%s4082_s24 + $0x948] sm:$0xff] }
 0x190   : > { %3490 = vst [vmem:[%s4112_s17 + $0x8b8] sm:$0xff] %v2978_v42  ;;  %v2979_v50 = vmul.f32 %v2467_v43, %v4935_v56  ;;  %v2980_v51 = vmul.f32 %v2468_v44, %v420_v1  ;;  %v2470_v52 = vmul.f32 0.16666667, %v1958_v46  ;;  %v938_v48 = vadd.f32 3.0, %v4954_v33  ;;  %v432_v1 = vld [vmem:[%s4082_s24 + $0x928] sm:$0xff]  ;;  %v437_v38 = vld [vmem:[%s4082_s24 + $0x950] sm:$0xff] }
 0x191   : > { %v2981_v55 = vmul.f32 %v2469_v47, %v421_v5  ;;  %v2471_v57 = vmul.f32 0.16666667, %v1959_v36  ;;  %v2472_v59 = vmul.f32 0.16666667, %v1960_v41  ;;  %v1961_v60 = vmin.f32 %v1449_v49, 6.0  ;;  %v438_v46 = vld [vmem:[%s4082_s24 + $0x958] sm:$0xff] }
 0x192   : > { %3491 = vst [vmem:[%s4112_s17 + $0x8c0] sm:$0xff] %v2979_v50  ;;  %v2982_v62 = vmul.f32 %v2470_v52, %v422_v11  ;;  %v1450_v58 = vmax.f32 %v938_v48, 0.0  ;;  %v939_v56 = vadd.f32 3.0, %v4959_v40  ;;  %v940_v63 = vadd.f32 3.0, %v428_v45  ;;  %v439_v49 = vld [vmem:[%s4082_s24 + $0x960] sm:$0xff] }
 0x193   : > { %3492 = vst [vmem:[%s4112_s17 + $0x8c8] sm:$0xff] %v2980_v51  ;;  %v2983_v2 = vmul.f32 %v2471_v57, %v423_v13  ;;  %v2984_v3 = vmul.f32 %v2472_v59, %v424_v17  ;;  %v2473_v4 = vmul.f32 0.16666667, %v1961_v60  ;;  %v941_v54 = vadd.f32 3.0, %v429_v53  ;;  %v441_v60 = vld [vmem:[%s4082_s24 + $0x970] sm:$0xff] }
 0x194   : > { %3493 = vst [vmem:[%s4112_s17 + $0x8d0] sm:$0xff] %v2981_v55  ;;  %v1962_v5 = vmin.f32 %v1450_v58, 6.0  ;;  %v1451_v6 = vmax.f32 %v939_v56, 0.0  ;;  %v1452_v8 = vmax.f32 %v940_v63, 0.0  ;;  %v942_v9 = vadd.f32 3.0, %v430_v61  ;;  %v5002_v63 = vld [vmem:[%s4082_s24 + $0x978] sm:$0xff] }
 0x195   : > { %3494 = vst [vmem:[%s4112_s17 + $0x8d8] sm:$0xff] %v2982_v62  ;;  %v2985_v11 = vmul.f32 %v2473_v4, %v425_v26  ;;  %v1453_v14 = vmax.f32 %v941_v54, 0.0  ;;  %v943_v15 = vadd.f32 3.0, %v431_v0  ;;  %v944_v7 = vadd.f32 3.0, %v432_v1 }
 0x196   : > { %3495 = vst [vmem:[%s4112_s17 + $0x8e0] sm:$0xff] %v2983_v2  ;;  %v2474_v13 = vmul.f32 0.16666667, %v1962_v5  ;;  %v1963_v17 = vmin.f32 %v1451_v6, 6.0  ;;  %v1964_v18 = vmin.f32 %v1452_v8, 6.0  ;;  %v1454_v19 = vmax.f32 %v942_v9, 0.0 }
 0x197   : > { %3496 = vst [vmem:[%s4112_s17 + $0x8e8] sm:$0xff] %v2984_v3  ;;  %v1965_v20 = vmin.f32 %v1453_v14, 6.0  ;;  %v1455_v12 = vmax.f32 %v943_v15, 0.0  ;;  %v1456_v21 = vmax.f32 %v944_v7, 0.0  ;;  %v945_v23 = vadd.f32 3.0, %v433_v10  ;;  %v5007_v8 = vld [vmem:[%s4082_s24 + $0x980] sm:$0xff] }
 0x198   : > { %3497 = vst [vmem:[%s4112_s17 + $0x8f0] sm:$0xff] %v2985_v11  ;;  %v2986_v25 = vmul.f32 %v2474_v13, %v4954_v33  ;;  %v2475_v26 = vmul.f32 0.16666667, %v1963_v17  ;;  %v2476_v27 = vmul.f32 0.16666667, %v1964_v18  ;;  %v1966_v28 = vmin.f32 %v1454_v19, 6.0 }
 0x199   : > { %v2477_v29 = vmul.f32 0.16666667, %v1965_v20  ;;  %v1967_v24 = vmin.f32 %v1455_v12, 6.0  ;;  %v1968_v34 = vmin.f32 %v1456_v21, 6.0  ;;  %v1457_v30 = vmax.f32 %v945_v23, 0.0  ;;  %v444_v18 = vld [vmem:[%s4082_s24 + $0x988] sm:$0xff] }
 0x19a   : > { %3498 = vst [vmem:[%s4112_s17 + $0x8f8] sm:$0xff] %v2986_v25  ;;  %v2987_v35 = vmul.f32 %v2475_v26, %v4959_v40  ;;  %v2988_v37 = vmul.f32 %v2476_v27, %v428_v45  ;;  %v2478_v32 = vmul.f32 0.16666667, %v1966_v28  ;;  %v946_v33 = vadd.f32 3.0, %v4978_v16  ;;  %v440_v45 = vld [vmem:[%s4082_s24 + $0x968] sm:$0xff]  ;;  %v445_v21 = vld [vmem:[%s4082_s24 + $0x990] sm:$0xff] }
 0x19b   : > { %v2989_v39 = vmul.f32 %v2477_v29, %v429_v53  ;;  %v2479_v42 = vmul.f32 0.16666667, %v1967_v24  ;;  %v2480_v43 = vmul.f32 0.16666667, %v1968_v34  ;;  %v1969_v44 = vmin.f32 %v1457_v30, 6.0  ;;  %v446_v28 = vld [vmem:[%s4082_s24 + $0x998] sm:$0xff] }
 0x19c   : > { %3499 = vst [vmem:[%s4112_s17 + $0x900] sm:$0xff] %v2987_v35  ;;  %v2990_v47 = vmul.f32 %v2478_v32, %v430_v61  ;;  %v1458_v36 = vmax.f32 %v946_v33, 0.0  ;;  %v947_v40 = vadd.f32 3.0, %v4983_v22  ;;  %v948_v41 = vadd.f32 3.0, %v436_v31  ;;  %v447_v30 = vld [vmem:[%s4082_s24 + $0x9a0] sm:$0xff] }
 0x19d   : > { %3500 = vst [vmem:[%s4112_s17 + $0x908] sm:$0xff] %v2988_v37  ;;  %v2991_v50 = vmul.f32 %v2479_v42, %v431_v0  ;;  %v2992_v51 = vmul.f32 %v2480_v43, %v432_v1  ;;  %v2481_v52 = vmul.f32 0.16666667, %v1969_v44  ;;  %v949_v48 = vadd.f32 3.0, %v437_v38  ;;  %v449_v44 = vld [vmem:[%s4082_s24 + $0x9b0] sm:$0xff] }
 0x19e   : > { %3501 = vst [vmem:[%s4112_s17 + $0x910] sm:$0xff] %v2989_v39  ;;  %v1970_v53 = vmin.f32 %v1458_v36, 6.0  ;;  %v1459_v55 = vmax.f32 %v947_v40, 0.0  ;;  %v1460_v57 = vmax.f32 %v948_v41, 0.0  ;;  %v950_v59 = vadd.f32 3.0, %v438_v46  ;;  %v5026_v41 = vld [vmem:[%s4082_s24 + $0x9b8] sm:$0xff] }
 0x19f   : > { %3502 = vst [vmem:[%s4112_s17 + $0x918] sm:$0xff] %v2990_v47  ;;  %v2993_v61 = vmul.f32 %v2481_v52, %v433_v10  ;;  %v1461_v62 = vmax.f32 %v949_v48, 0.0  ;;  %v951_v58 = vadd.f32 3.0, %v439_v49  ;;  %v952_v56 = vadd.f32 3.0, %v440_v45 }
 0x1a0   : > { %3503 = vst [vmem:[%s4112_s17 + $0x920] sm:$0xff] %v2991_v50  ;;  %v2482_v0 = vmul.f32 0.16666667, %v1970_v53  ;;  %v1971_v1 = vmin.f32 %v1459_v55, 6.0  ;;  %v1972_v2 = vmin.f32 %v1460_v57, 6.0  ;;  %v1462_v3 = vmax.f32 %v950_v59, 0.0 }
 0x1a1   : > { %3504 = vst [vmem:[%s4112_s17 + $0x928] sm:$0xff] %v2992_v51  ;;  %v1973_v4 = vmin.f32 %v1461_v62, 6.0  ;;  %v1463_v54 = vmax.f32 %v951_v58, 0.0  ;;  %v1464_v5 = vmax.f32 %v952_v56, 0.0  ;;  %v953_v6 = vadd.f32 3.0, %v441_v60  ;;  %v5031_v57 = vld [vmem:[%s4082_s24 + $0x9c0] sm:$0xff] }
 0x1a2   : > { %3505 = vst [vmem:[%s4112_s17 + $0x930] sm:$0xff] %v2993_v61  ;;  %v2994_v9 = vmul.f32 %v2482_v0, %v4978_v16  ;;  %v2483_v10 = vmul.f32 0.16666667, %v1971_v1  ;;  %v2484_v11 = vmul.f32 0.16666667, %v1972_v2  ;;  %v1974_v14 = vmin.f32 %v1462_v3, 6.0 }
 0x1a3   : > { %v2485_v15 = vmul.f32 0.16666667, %v1973_v4  ;;  %v1975_v7 = vmin.f32 %v1463_v54, 6.0  ;;  %v1976_v13 = vmin.f32 %v1464_v5, 6.0  ;;  %v1465_v17 = vmax.f32 %v953_v6, 0.0  ;;  %v452_v2 = vld [vmem:[%s4082_s24 + $0x9c8] sm:$0xff] }
 0x1a4   : > { %3506 = vst [vmem:[%s4112_s17 + $0x938] sm:$0xff] %v2994_v9  ;;  %v2995_v19 = vmul.f32 %v2483_v10, %v4983_v22  ;;  %v2996_v20 = vmul.f32 %v2484_v11, %v436_v31  ;;  %v2486_v12 = vmul.f32 0.16666667, %v1974_v14  ;;  %v954_v16 = vadd.f32 3.0, %v5002_v63  ;;  %v448_v31 = vld [vmem:[%s4082_s24 + $0x9a8] sm:$0xff]  ;;  %v453_v5 = vld [vmem:[%s4082_s24 + $0x9d0] sm:$0xff] }
 0x1a5   : > { %v2997_v23 = vmul.f32 %v2485_v15, %v437_v38  ;;  %v2487_v25 = vmul.f32 0.16666667, %v1975_v7  ;;  %v2488_v26 = vmul.f32 0.16666667, %v1976_v13  ;;  %v1977_v27 = vmin.f32 %v1465_v17, 6.0  ;;  %v454_v14 = vld [vmem:[%s4082_s24 + $0x9d8] sm:$0xff] }
 0x1a6   : > { %3507 = vst [vmem:[%s4112_s17 + $0x940] sm:$0xff] %v2995_v19  ;;  %v2998_v29 = vmul.f32 %v2486_v12, %v438_v46  ;;  %v1466_v24 = vmax.f32 %v954_v16, 0.0  ;;  %v955_v22 = vadd.f32 3.0, %v5007_v8  ;;  %v956_v34 = vadd.f32 3.0, %v444_v18  ;;  %v455_v17 = vld [vmem:[%s4082_s24 + $0x9e0] sm:$0xff] }
 0x1a7   : > { %3508 = vst [vmem:[%s4112_s17 + $0x948] sm:$0xff] %v2996_v20  ;;  %v2999_v35 = vmul.f32 %v2487_v25, %v439_v49  ;;  %v3000_v37 = vmul.f32 %v2488_v26, %v440_v45  ;;  %v2489_v32 = vmul.f32 0.16666667, %v1977_v27  ;;  %v957_v33 = vadd.f32 3.0, %v445_v21  ;;  %v457_v27 = vld [vmem:[%s4082_s24 + $0x9f0] sm:$0xff] }
 0x1a8   : > { %3509 = vst [vmem:[%s4112_s17 + $0x950] sm:$0xff] %v2997_v23  ;;  %v1978_v38 = vmin.f32 %v1466_v24, 6.0  ;;  %v1467_v39 = vmax.f32 %v955_v22, 0.0  ;;  %v1468_v42 = vmax.f32 %v956_v34, 0.0  ;;  %v958_v43 = vadd.f32 3.0, %v446_v28  ;;  %v5050_v34 = vld [vmem:[%s4082_s24 + $0x9f8] sm:$0xff] }
 0x1a9   : > { %3510 = vst [vmem:[%s4112_s17 + $0x958] sm:$0xff] %v2998_v29  ;;  %v3001_v46 = vmul.f32 %v2489_v32, %v441_v60  ;;  %v1469_v47 = vmax.f32 %v957_v33, 0.0  ;;  %v959_v36 = vadd.f32 3.0, %v447_v30  ;;  %v960_v40 = vadd.f32 3.0, %v448_v31 }
 0x1aa   : > { %3511 = vst [vmem:[%s4112_s17 + $0x960] sm:$0xff] %v2999_v35  ;;  %v2490_v49 = vmul.f32 0.16666667, %v1978_v38  ;;  %v1979_v45 = vmin.f32 %v1467_v39, 6.0  ;;  %v1980_v50 = vmin.f32 %v1468_v42, 6.0  ;;  %v1470_v51 = vmax.f32 %v958_v43, 0.0 }
 0x1ab   : > { %3512 = vst [vmem:[%s4112_s17 + $0x968] sm:$0xff] %v3000_v37  ;;  %v1981_v52 = vmin.f32 %v1469_v47, 6.0  ;;  %v1471_v48 = vmax.f32 %v959_v36, 0.0  ;;  %v1472_v53 = vmax.f32 %v960_v40, 0.0  ;;  %v961_v55 = vadd.f32 3.0, %v449_v44  ;;  %v5055_v42 = vld [vmem:[%s4082_s24 + $0xa00] sm:$0xff] }
 0x1ac   : > { %3513 = vst [vmem:[%s4112_s17 + $0x970] sm:$0xff] %v3001_v46  ;;  %v3002_v59 = vmul.f32 %v2490_v49, %v5002_v63  ;;  %v2491_v60 = vmul.f32 0.16666667, %v1979_v45  ;;  %v2492_v61 = vmul.f32 0.16666667, %v1980_v50  ;;  %v1982_v62 = vmin.f32 %v1470_v51, 6.0 }
 0x1ad   : > { %v2493_v58 = vmul.f32 0.16666667, %v1981_v52  ;;  %v1983_v56 = vmin.f32 %v1471_v48, 6.0  ;;  %v1984_v0 = vmin.f32 %v1472_v53, 6.0  ;;  %v1473_v1 = vmax.f32 %v961_v55, 0.0  ;;  %v460_v50 = vld [vmem:[%s4082_s24 + $0xa08] sm:$0xff] }
 0x1ae   : > { %3514 = vst [vmem:[%s4112_s17 + $0x978] sm:$0xff] %v3002_v59  ;;  %v3003_v3 = vmul.f32 %v2491_v60, %v5007_v8  ;;  %v3004_v4 = vmul.f32 %v2492_v61, %v444_v18  ;;  %v2494_v54 = vmul.f32 0.16666667, %v1982_v62  ;;  %v962_v63 = vadd.f32 3.0, %v5026_v41  ;;  %v456_v18 = vld [vmem:[%s4082_s24 + $0x9e8] sm:$0xff]  ;;  %v461_v53 = vld [vmem:[%s4082_s24 + $0xa10] sm:$0xff] }
 0x1af   : > { %v3005_v6 = vmul.f32 %v2493_v58, %v445_v21  ;;  %v2495_v9 = vmul.f32 0.16666667, %v1983_v56  ;;  %v2496_v10 = vmul.f32 0.16666667, %v1984_v0  ;;  %v1985_v11 = vmin.f32 %v1473_v1, 6.0  ;;  %v462_v62 = vld [vmem:[%s4082_s24 + $0xa18] sm:$0xff] }
 0x1b0   : > { %3515 = vst [vmem:[%s4112_s17 + $0x980] sm:$0xff] %v3003_v3  ;;  %v3006_v15 = vmul.f32 %v2494_v54, %v446_v28  ;;  %v1474_v7 = vmax.f32 %v962_v63, 0.0  ;;  %v963_v8 = vadd.f32 3.0, %v5031_v57  ;;  %v964_v13 = vadd.f32 3.0, %v452_v2  ;;  %v463_v1 = vld [vmem:[%s4082_s24 + $0xa20] sm:$0xff] }
 0x1b1   : > { %3516 = vst [vmem:[%s4112_s17 + $0x988] sm:$0xff] %v3004_v4  ;;  %v3007_v19 = vmul.f32 %v2495_v9, %v447_v30  ;;  %v3008_v20 = vmul.f32 %v2496_v10, %v448_v31  ;;  %v2497_v12 = vmul.f32 0.16666667, %v1985_v11  ;;  %v965_v16 = vadd.f32 3.0, %v453_v5  ;;  %v465_v11 = vld [vmem:[%s4082_s24 + $0xa30] sm:$0xff] }
 0x1b2   : > { %3517 = vst [vmem:[%s4112_s17 + $0x990] sm:$0xff] %v3005_v6  ;;  %v1986_v21 = vmin.f32 %v1474_v7, 6.0  ;;  %v1475_v23 = vmax.f32 %v963_v8, 0.0  ;;  %v1476_v25 = vmax.f32 %v964_v13, 0.0  ;;  %v966_v26 = vadd.f32 3.0, %v454_v14  ;;  %v5074_v13 = vld [vmem:[%s4082_s24 + $0xa38] sm:$0xff] }
 0x1b3   : > { %3518 = vst [vmem:[%s4112_s17 + $0x998] sm:$0xff] %v3006_v15  ;;  %v3009_v28 = vmul.f32 %v2497_v12, %v449_v44  ;;  %v1477_v29 = vmax.f32 %v965_v16, 0.0  ;;  %v967_v24 = vadd.f32 3.0, %v455_v17  ;;  %v968_v22 = vadd.f32 3.0, %v456_v18 }
 0x1b4   : > { %3519 = vst [vmem:[%s4112_s17 + $0x9a0] sm:$0xff] %v3007_v19  ;;  %v2498_v30 = vmul.f32 0.16666667, %v1986_v21  ;;  %v1987_v31 = vmin.f32 %v1475_v23, 6.0  ;;  %v1988_v35 = vmin.f32 %v1476_v25, 6.0  ;;  %v1478_v37 = vmax.f32 %v966_v26, 0.0 }
 0x1b5   : > { %3520 = vst [vmem:[%s4112_s17 + $0x9a8] sm:$0xff] %v3008_v20  ;;  %v1989_v32 = vmin.f32 %v1477_v29, 6.0  ;;  %v1479_v33 = vmax.f32 %v967_v24, 0.0  ;;  %v1480_v38 = vmax.f32 %v968_v22, 0.0  ;;  %v969_v39 = vadd.f32 3.0, %v457_v27  ;;  %v5079_v25 = vld [vmem:[%s4082_s24 + $0xa40] sm:$0xff] }
 0x1b6   : > { %3521 = vst [vmem:[%s4112_s17 + $0x9b0] sm:$0xff] %v3009_v28  ;;  %v3010_v43 = vmul.f32 %v2498_v30, %v5026_v41  ;;  %v2499_v44 = vmul.f32 0.16666667, %v1987_v31  ;;  %v2500_v46 = vmul.f32 0.16666667, %v1988_v35  ;;  %v1990_v47 = vmin.f32 %v1478_v37, 6.0 }
 0x1b7   : > { %v2501_v36 = vmul.f32 0.16666667, %v1989_v32  ;;  %v1991_v40 = vmin.f32 %v1479_v33, 6.0  ;;  %v1992_v49 = vmin.f32 %v1480_v38, 6.0  ;;  %v1481_v45 = vmax.f32 %v969_v39, 0.0  ;;  %v468_v35 = vld [vmem:[%s4082_s24 + $0xa48] sm:$0xff] }
 0x1b8   : > { %3522 = vst [vmem:[%s4112_s17 + $0x9b8] sm:$0xff] %v3010_v43  ;;  %v3011_v51 = vmul.f32 %v2499_v44, %v5031_v57  ;;  %v3012_v52 = vmul.f32 %v2500_v46, %v452_v2  ;;  %v2502_v48 = vmul.f32 0.16666667, %v1990_v47  ;;  %v970_v41 = vadd.f32 3.0, %v5050_v34  ;;  %v464_v2 = vld [vmem:[%s4082_s24 + $0xa28] sm:$0xff]  ;;  %v469_v38 = vld [vmem:[%s4082_s24 + $0xa50] sm:$0xff] }
 0x1b9   : > { %v3013_v55 = vmul.f32 %v2501_v36, %v453_v5  ;;  %v2503_v59 = vmul.f32 0.16666667, %v1991_v40  ;;  %v2504_v60 = vmul.f32 0.16666667, %v1992_v49  ;;  %v1993_v61 = vmin.f32 %v1481_v45, 6.0  ;;  %v470_v47 = vld [vmem:[%s4082_s24 + $0xa58] sm:$0xff] }
 0x1ba   : > { %3523 = vst [vmem:[%s4112_s17 + $0x9c0] sm:$0xff] %v3011_v51  ;;  %v3014_v58 = vmul.f32 %v2502_v48, %v454_v14  ;;  %v1482_v56 = vmax.f32 %v970_v41, 0.0  ;;  %v971_v57 = vadd.f32 3.0, %v5055_v42  ;;  %v972_v0 = vadd.f32 3.0, %v460_v50  ;;  %v471_v45 = vld [vmem:[%s4082_s24 + $0xa60] sm:$0xff] }
 0x1bb   : > { %3524 = vst [vmem:[%s4112_s17 + $0x9c8] sm:$0xff] %v3012_v52  ;;  %v3015_v3 = vmul.f32 %v2503_v59, %v455_v17  ;;  %v3016_v4 = vmul.f32 %v2504_v60, %v456_v18  ;;  %v2505_v54 = vmul.f32 0.16666667, %v1993_v61  ;;  %v973_v63 = vadd.f32 3.0, %v461_v53  ;;  %v473_v61 = vld [vmem:[%s4082_s24 + $0xa70] sm:$0xff] }
 0x1bc   : > { %3525 = vst [vmem:[%s4112_s17 + $0x9d0] sm:$0xff] %v3013_v55  ;;  %v1994_v5 = vmin.f32 %v1482_v56, 6.0  ;;  %v1483_v6 = vmax.f32 %v971_v57, 0.0  ;;  %v1484_v9 = vmax.f32 %v972_v0, 0.0  ;;  %v974_v10 = vadd.f32 3.0, %v462_v62  ;;  %v5098_v0 = vld [vmem:[%s4082_s24 + $0xa78] sm:$0xff] }
 0x1bd   : > { %3526 = vst [vmem:[%s4112_s17 + $0x9d8] sm:$0xff] %v3014_v58  ;;  %v3017_v14 = vmul.f32 %v2505_v54, %v457_v27  ;;  %v1485_v15 = vmax.f32 %v973_v63, 0.0  ;;  %v975_v7 = vadd.f32 3.0, %v463_v1  ;;  %v976_v8 = vadd.f32 3.0, %v464_v2 }
 0x1be   : > { %3527 = vst [vmem:[%s4112_s17 + $0x9e0] sm:$0xff] %v3015_v3  ;;  %v2506_v17 = vmul.f32 0.16666667, %v1994_v5  ;;  %v1995_v18 = vmin.f32 %v1483_v6, 6.0  ;;  %v1996_v19 = vmin.f32 %v1484_v9, 6.0  ;;  %v1486_v20 = vmax.f32 %v974_v10, 0.0 }
 0x1bf   : > { %3528 = vst [vmem:[%s4112_s17 + $0x9e8] sm:$0xff] %v3016_v4  ;;  %v1997_v12 = vmin.f32 %v1485_v15, 6.0  ;;  %v1487_v16 = vmax.f32 %v975_v7, 0.0  ;;  %v1488_v21 = vmax.f32 %v976_v8, 0.0  ;;  %v977_v23 = vadd.f32 3.0, %v465_v11  ;;  %v5103_v9 = vld [vmem:[%s4082_s24 + $0xa80] sm:$0xff] }
 0x1c0   : > { %3529 = vst [vmem:[%s4112_s17 + $0x9f0] sm:$0xff] %v3017_v14  ;;  %v3018_v26 = vmul.f32 %v2506_v17, %v5050_v34  ;;  %v2507_v27 = vmul.f32 0.16666667, %v1995_v18  ;;  %v2508_v28 = vmul.f32 0.16666667, %v1996_v19  ;;  %v1998_v29 = vmin.f32 %v1486_v20, 6.0 }
 0x1c1   : > { %v2509_v24 = vmul.f32 0.16666667, %v1997_v12  ;;  %v1999_v22 = vmin.f32 %v1487_v16, 6.0  ;;  %v2000_v30 = vmin.f32 %v1488_v21, 6.0  ;;  %v1489_v31 = vmax.f32 %v977_v23, 0.0  ;;  %v476_v19 = vld [vmem:[%s4082_s24 + $0xa88] sm:$0xff] }
 0x1c2   : > { %3530 = vst [vmem:[%s4112_s17 + $0x9f8] sm:$0xff] %v3018_v26  ;;  %v3019_v37 = vmul.f32 %v2507_v27, %v5055_v42  ;;  %v3020_v32 = vmul.f32 %v2508_v28, %v460_v50  ;;  %v2510_v33 = vmul.f32 0.16666667, %v1998_v29  ;;  %v978_v34 = vadd.f32 3.0, %v5074_v13  ;;  %v472_v50 = vld [vmem:[%s4082_s24 + $0xa68] sm:$0xff]  ;;  %v477_v21 = vld [vmem:[%s4082_s24 + $0xa90] sm:$0xff] }
 0x1c3   : > { %v3021_v39 = vmul.f32 %v2509_v24, %v461_v53  ;;  %v2511_v43 = vmul.f32 0.16666667, %v1999_v22  ;;  %v2512_v44 = vmul.f32 0.16666667, %v2000_v30  ;;  %v2001_v46 = vmin.f32 %v1489_v31, 6.0  ;;  %v478_v29 = vld [vmem:[%s4082_s24 + $0xa98] sm:$0xff] }
 0x1c4   : > { %3531 = vst [vmem:[%s4112_s17 + $0xa00] sm:$0xff] %v3019_v37  ;;  %v3022_v36 = vmul.f32 %v2510_v33, %v462_v62  ;;  %v1490_v40 = vmax.f32 %v978_v34, 0.0  ;;  %v979_v42 = vadd.f32 3.0, %v5079_v25  ;;  %v980_v49 = vadd.f32 3.0, %v468_v35  ;;  %v479_v31 = vld [vmem:[%s4082_s24 + $0xaa0] sm:$0xff] }
 0x1c5   : > { %3532 = vst [vmem:[%s4112_s17 + $0xa08] sm:$0xff] %v3020_v32  ;;  %v3023_v51 = vmul.f32 %v2511_v43, %v463_v1  ;;  %v3024_v52 = vmul.f32 %v2512_v44, %v464_v2  ;;  %v2513_v48 = vmul.f32 0.16666667, %v2001_v46  ;;  %v981_v41 = vadd.f32 3.0, %v469_v38  ;;  %v481_v46 = vld [vmem:[%s4082_s24 + $0xab0] sm:$0xff] }
 0x1c6   : > { %3533 = vst [vmem:[%s4112_s17 + $0xa10] sm:$0xff] %v3021_v39  ;;  %v2002_v53 = vmin.f32 %v1490_v40, 6.0  ;;  %v1491_v55 = vmax.f32 %v979_v42, 0.0  ;;  %v1492_v59 = vmax.f32 %v980_v49, 0.0  ;;  %v982_v60 = vadd.f32 3.0, %v470_v47  ;;  %v5122_v49 = vld [vmem:[%s4082_s24 + $0xab8] sm:$0xff] }
 0x1c7   : > { %3534 = vst [vmem:[%s4112_s17 + $0xa18] sm:$0xff] %v3022_v36  ;;  %v3025_v62 = vmul.f32 %v2513_v48, %v465_v11  ;;  %v1493_v58 = vmax.f32 %v981_v41, 0.0  ;;  %v983_v56 = vadd.f32 3.0, %v471_v45  ;;  %v984_v57 = vadd.f32 3.0, %v472_v50 }
 0x1c8   : > { %3535 = vst [vmem:[%s4112_s17 + $0xa20] sm:$0xff] %v3023_v51  ;;  %v2514_v1 = vmul.f32 0.16666667, %v2002_v53  ;;  %v2003_v2 = vmin.f32 %v1491_v55, 6.0  ;;  %v2004_v3 = vmin.f32 %v1492_v59, 6.0  ;;  %v1494_v4 = vmax.f32 %v982_v60, 0.0 }
 0x1c9   : > { %3536 = vst [vmem:[%s4112_s17 + $0xa28] sm:$0xff] %v3024_v52  ;;  %v2005_v54 = vmin.f32 %v1493_v58, 6.0  ;;  %v1495_v63 = vmax.f32 %v983_v56, 0.0  ;;  %v1496_v5 = vmax.f32 %v984_v57, 0.0  ;;  %v985_v6 = vadd.f32 3.0, %v473_v61  ;;  %v5127_v59 = vld [vmem:[%s4082_s24 + $0xac0] sm:$0xff] }
 0x1ca   : > { %3537 = vst [vmem:[%s4112_s17 + $0xa30] sm:$0xff] %v3025_v62  ;;  %v3026_v10 = vmul.f32 %v2514_v1, %v5074_v13  ;;  %v2515_v11 = vmul.f32 0.16666667, %v2003_v2  ;;  %v2516_v14 = vmul.f32 0.16666667, %v2004_v3  ;;  %v2006_v15 = vmin.f32 %v1494_v4, 6.0 }
 0x1cb   : > { %v2517_v7 = vmul.f32 0.16666667, %v2005_v54  ;;  %v2007_v8 = vmin.f32 %v1495_v63, 6.0  ;;  %v2008_v17 = vmin.f32 %v1496_v5, 6.0  ;;  %v1497_v18 = vmax.f32 %v985_v6, 0.0  ;;  %v484_v3 = vld [vmem:[%s4082_s24 + $0xac8] sm:$0xff] }
 0x1cc   : > { %3538 = vst [vmem:[%s4112_s17 + $0xa38] sm:$0xff] %v3026_v10  ;;  %v3027_v20 = vmul.f32 %v2515_v11, %v5079_v25  ;;  %v3028_v12 = vmul.f32 %v2516_v14, %v468_v35  ;;  %v2518_v16 = vmul.f32 0.16666667, %v2006_v15  ;;  %v986_v13 = vadd.f32 3.0, %v5098_v0  ;;  %v480_v35 = vld [vmem:[%s4082_s24 + $0xaa8] sm:$0xff]  ;;  %v485_v5 = vld [vmem:[%s4082_s24 + $0xad0] sm:$0xff] }
 0x1cd   : > { %v3029_v23 = vmul.f32 %v2517_v7, %v469_v38  ;;  %v2519_v26 = vmul.f32 0.16666667, %v2007_v8  ;;  %v2520_v27 = vmul.f32 0.16666667, %v2008_v17  ;;  %v2009_v28 = vmin.f32 %v1497_v18, 6.0  ;;  %v486_v15 = vld [vmem:[%s4082_s24 + $0xad8] sm:$0xff] }
 0x1ce   : > { %3539 = vst [vmem:[%s4112_s17 + $0xa40] sm:$0xff] %v3027_v20  ;;  %v3030_v24 = vmul.f32 %v2518_v16, %v470_v47  ;;  %v1498_v22 = vmax.f32 %v986_v13, 0.0  ;;  %v987_v25 = vadd.f32 3.0, %v5103_v9  ;;  %v988_v30 = vadd.f32 3.0, %v476_v19  ;;  %v487_v18 = vld [vmem:[%s4082_s24 + $0xae0] sm:$0xff] }
 0x1cf   : > { %3540 = vst [vmem:[%s4112_s17 + $0xa48] sm:$0xff] %v3028_v12  ;;  %v3031_v37 = vmul.f32 %v2519_v26, %v471_v45  ;;  %v3032_v32 = vmul.f32 %v2520_v27, %v472_v50  ;;  %v2521_v33 = vmul.f32 0.16666667, %v2009_v28  ;;  %v989_v34 = vadd.f32 3.0, %v477_v21  ;;  %v489_v28 = vld [vmem:[%s4082_s24 + $0xaf0] sm:$0xff] }
 0x1d0   : > { %3541 = vst [vmem:[%s4112_s17 + $0xa50] sm:$0xff] %v3029_v23  ;;  %v2010_v38 = vmin.f32 %v1498_v22, 6.0  ;;  %v1499_v39 = vmax.f32 %v987_v25, 0.0  ;;  %v1500_v43 = vmax.f32 %v988_v30, 0.0  ;;  %v990_v44 = vadd.f32 3.0, %v478_v29  ;;  %v5146_v30 = vld [vmem:[%s4082_s24 + $0xaf8] sm:$0xff] }
 0x1d1   : > { %3542 = vst [vmem:[%s4112_s17 + $0xa58] sm:$0xff] %v3030_v24  ;;  %v3033_v47 = vmul.f32 %v2521_v33, %v473_v61  ;;  %v1501_v36 = vmax.f32 %v989_v34, 0.0  ;;  %v991_v40 = vadd.f32 3.0, %v479_v31  ;;  %v992_v42 = vadd.f32 3.0, %v480_v35 }
 0x1d2   : > { %3543 = vst [vmem:[%s4112_s17 + $0xa60] sm:$0xff] %v3031_v37  ;;  %v2522_v45 = vmul.f32 0.16666667, %v2010_v38  ;;  %v2011_v50 = vmin.f32 %v1499_v39, 6.0  ;;  %v2012_v51 = vmin.f32 %v1500_v43, 6.0  ;;  %v1502_v52 = vmax.f32 %v990_v44, 0.0 }
 0x1d3   : > { %3544 = vst [vmem:[%s4112_s17 + $0xa68] sm:$0xff] %v3032_v32  ;;  %v2013_v48 = vmin.f32 %v1501_v36, 6.0  ;;  %v1503_v41 = vmax.f32 %v991_v40, 0.0  ;;  %v1504_v53 = vmax.f32 %v992_v42, 0.0  ;;  %v993_v55 = vadd.f32 3.0, %v481_v46  ;;  %v5151_v43 = vld [vmem:[%s4082_s24 + $0xb00] sm:$0xff] }
 0x1d4   : > { %3545 = vst [vmem:[%s4112_s17 + $0xa70] sm:$0xff] %v3033_v47  ;;  %v3034_v60 = vmul.f32 %v2522_v45, %v5098_v0  ;;  %v2523_v61 = vmul.f32 0.16666667, %v2011_v50  ;;  %v2524_v62 = vmul.f32 0.16666667, %v2012_v51  ;;  %v2014_v58 = vmin.f32 %v1502_v52, 6.0 }
 0x1d5   : > { %v2525_v56 = vmul.f32 0.16666667, %v2013_v48  ;;  %v2015_v57 = vmin.f32 %v1503_v41, 6.0  ;;  %v2016_v1 = vmin.f32 %v1504_v53, 6.0  ;;  %v1505_v2 = vmax.f32 %v993_v55, 0.0  ;;  %v492_v51 = vld [vmem:[%s4082_s24 + $0xb08] sm:$0xff] }
 0x1d6   : > { %3546 = vst [vmem:[%s4112_s17 + $0xa78] sm:$0xff] %v3034_v60  ;;  %v3035_v4 = vmul.f32 %v2523_v61, %v5103_v9  ;;  %v3036_v54 = vmul.f32 %v2524_v62, %v476_v19  ;;  %v2526_v63 = vmul.f32 0.16666667, %v2014_v58  ;;  %v994_v0 = vadd.f32 3.0, %v5122_v49  ;;  %v488_v19 = vld [vmem:[%s4082_s24 + $0xae8] sm:$0xff]  ;;  %v493_v53 = vld [vmem:[%s4082_s24 + $0xb10] sm:$0xff] }
 0x1d7   : > { %v3037_v6 = vmul.f32 %v2525_v56, %v477_v21  ;;  %v2527_v10 = vmul.f32 0.16666667, %v2015_v57  ;;  %v2528_v11 = vmul.f32 0.16666667, %v2016_v1  ;;  %v2017_v14 = vmin.f32 %v1505_v2, 6.0  ;;  %v494_v58 = vld [vmem:[%s4082_s24 + $0xb18] sm:$0xff] }
 0x1d8   : > { %3547 = vst [vmem:[%s4112_s17 + $0xa80] sm:$0xff] %v3035_v4  ;;  %v3038_v7 = vmul.f32 %v2526_v63, %v478_v29  ;;  %v1506_v8 = vmax.f32 %v994_v0, 0.0  ;;  %v995_v9 = vadd.f32 3.0, %v5127_v59  ;;  %v996_v17 = vadd.f32 3.0, %v484_v3  ;;  %v495_v2 = vld [vmem:[%s4082_s24 + $0xb20] sm:$0xff] }
 0x1d9   : > { %3548 = vst [vmem:[%s4112_s17 + $0xa88] sm:$0xff] %v3036_v54  ;;  %v3039_v20 = vmul.f32 %v2527_v10, %v479_v31  ;;  %v3040_v12 = vmul.f32 %v2528_v11, %v480_v35  ;;  %v2529_v16 = vmul.f32 0.16666667, %v2017_v14  ;;  %v997_v13 = vadd.f32 3.0, %v485_v5  ;;  %v497_v14 = vld [vmem:[%s4082_s24 + $0xb30] sm:$0xff] }
 0x1da   : > { %3549 = vst [vmem:[%s4112_s17 + $0xa90] sm:$0xff] %v3037_v6  ;;  %v2018_v21 = vmin.f32 %v1506_v8, 6.0  ;;  %v1507_v23 = vmax.f32 %v995_v9, 0.0  ;;  %v1508_v26 = vmax.f32 %v996_v17, 0.0  ;;  %v998_v27 = vadd.f32 3.0, %v486_v15  ;;  %v5170_v17 = vld [vmem:[%s4082_s24 + $0xb38] sm:$0xff] }
 0x1db   : > { %3550 = vst [vmem:[%s4112_s17 + $0xa98] sm:$0xff] %v3038_v7  ;;  %v3041_v29 = vmul.f32 %v2529_v16, %v481_v46  ;;  %v1509_v24 = vmax.f32 %v997_v13, 0.0  ;;  %v999_v22 = vadd.f32 3.0, %v487_v18  ;;  %v1000_v25 = vadd.f32 3.0, %v488_v19 }
 0x1dc   : > { %3551 = vst [vmem:[%s4112_s17 + $0xaa0] sm:$0xff] %v3039_v20  ;;  %v2530_v31 = vmul.f32 0.16666667, %v2018_v21  ;;  %v2019_v35 = vmin.f32 %v1507_v23, 6.0  ;;  %v2020_v37 = vmin.f32 %v1508_v26, 6.0  ;;  %v1510_v32 = vmax.f32 %v998_v27, 0.0 }
 0x1dd   : > { %3552 = vst [vmem:[%s4112_s17 + $0xaa8] sm:$0xff] %v3040_v12  ;;  %v2021_v33 = vmin.f32 %v1509_v24, 6.0  ;;  %v1511_v34 = vmax.f32 %v999_v22, 0.0  ;;  %v1512_v38 = vmax.f32 %v1000_v25, 0.0  ;;  %v1001_v39 = vadd.f32 3.0, %v489_v28  ;;  %v5175_v26 = vld [vmem:[%s4082_s24 + $0xb40] sm:$0xff] }
 0x1de   : > { %3553 = vst [vmem:[%s4112_s17 + $0xab0] sm:$0xff] %v3041_v29  ;;  %v3042_v44 = vmul.f32 %v2530_v31, %v5122_v49  ;;  %v2531_v46 = vmul.f32 0.16666667, %v2019_v35  ;;  %v2532_v47 = vmul.f32 0.16666667, %v2020_v37  ;;  %v2022_v36 = vmin.f32 %v1510_v32, 6.0 }
 0x1df   : > { %v2533_v40 = vmul.f32 0.16666667, %v2021_v33  ;;  %v2023_v42 = vmin.f32 %v1511_v34, 6.0  ;;  %v2024_v45 = vmin.f32 %v1512_v38, 6.0  ;;  %v1513_v50 = vmax.f32 %v1001_v39, 0.0  ;;  %v500_v37 = vld [vmem:[%s4082_s24 + $0xb48] sm:$0xff] }
 0x1e0   : > { %3554 = vst [vmem:[%s4112_s17 + $0xab8] sm:$0xff] %v3042_v44  ;;  %v3043_v52 = vmul.f32 %v2531_v46, %v5127_v59  ;;  %v3044_v48 = vmul.f32 %v2532_v47, %v484_v3  ;;  %v2534_v41 = vmul.f32 0.16666667, %v2022_v36  ;;  %v1002_v49 = vadd.f32 3.0, %v5146_v30  ;;  %v496_v3 = vld [vmem:[%s4082_s24 + $0xb28] sm:$0xff]  ;;  %v501_v38 = vld [vmem:[%s4082_s24 + $0xb50] sm:$0xff] }
 0x1e1   : > { %v3045_v55 = vmul.f32 %v2533_v40, %v485_v5  ;;  %v2535_v60 = vmul.f32 0.16666667, %v2023_v42  ;;  %v2536_v61 = vmul.f32 0.16666667, %v2024_v45  ;;  %v2025_v62 = vmin.f32 %v1513_v50, 6.0  ;;  %v502_v36 = vld [vmem:[%s4082_s24 + $0xb58] sm:$0xff] }
 0x1e2   : > { %3555 = vst [vmem:[%s4112_s17 + $0xac0] sm:$0xff] %v3043_v52  ;;  %v3046_v56 = vmul.f32 %v2534_v41, %v486_v15  ;;  %v1514_v57 = vmax.f32 %v1002_v49, 0.0  ;;  %v1003_v59 = vadd.f32 3.0, %v5151_v43  ;;  %v1004_v1 = vadd.f32 3.0, %v492_v51  ;;  %v503_v50 = vld [vmem:[%s4082_s24 + $0xb60] sm:$0xff] }
 0x1e3   : > { %3556 = vst [vmem:[%s4112_s17 + $0xac8] sm:$0xff] %v3044_v48  ;;  %v3047_v4 = vmul.f32 %v2535_v60, %v487_v18  ;;  %v3048_v54 = vmul.f32 %v2536_v61, %v488_v19  ;;  %v2537_v63 = vmul.f32 0.16666667, %v2025_v62  ;;  %v1005_v0 = vadd.f32 3.0, %v493_v53  ;;  %v505_v62 = vld [vmem:[%s4082_s24 + $0xb70] sm:$0xff] }
 0x1e4   : > { %3557 = vst [vmem:[%s4112_s17 + $0xad0] sm:$0xff] %v3045_v55  ;;  %v2026_v5 = vmin.f32 %v1514_v57, 6.0  ;;  %v1515_v6 = vmax.f32 %v1003_v59, 0.0  ;;  %v1516_v10 = vmax.f32 %v1004_v1, 0.0  ;;  %v1006_v11 = vadd.f32 3.0, %v494_v58  ;;  %v5194_v1 = vld [vmem:[%s4082_s24 + $0xb78] sm:$0xff] }
 0x1e5   : > { %3558 = vst [vmem:[%s4112_s17 + $0xad8] sm:$0xff] %v3046_v56  ;;  %v3049_v15 = vmul.f32 %v2537_v63, %v489_v28  ;;  %v1517_v7 = vmax.f32 %v1005_v0, 0.0  ;;  %v1007_v8 = vadd.f32 3.0, %v495_v2  ;;  %v1008_v9 = vadd.f32 3.0, %v496_v3 }
 0x1e6   : > { %3559 = vst [vmem:[%s4112_s17 + $0xae0] sm:$0xff] %v3047_v4  ;;  %v2538_v18 = vmul.f32 0.16666667, %v2026_v5  ;;  %v2027_v19 = vmin.f32 %v1515_v6, 6.0  ;;  %v2028_v20 = vmin.f32 %v1516_v10, 6.0  ;;  %v1518_v12 = vmax.f32 %v1006_v11, 0.0 }
 0x1e7   : > { %3560 = vst [vmem:[%s4112_s17 + $0xae8] sm:$0xff] %v3048_v54  ;;  %v2029_v16 = vmin.f32 %v1517_v7, 6.0  ;;  %v1519_v13 = vmax.f32 %v1007_v8, 0.0  ;;  %v1520_v21 = vmax.f32 %v1008_v9, 0.0  ;;  %v1009_v23 = vadd.f32 3.0, %v497_v14  ;;  %v5199_v10 = vld [vmem:[%s4082_s24 + $0xb80] sm:$0xff] }
 0x1e8   : > { %3561 = vst [vmem:[%s4112_s17 + $0xaf0] sm:$0xff] %v3049_v15  ;;  %v3050_v27 = vmul.f32 %v2538_v18, %v5146_v30  ;;  %v2539_v28 = vmul.f32 0.16666667, %v2027_v19  ;;  %v2540_v29 = vmul.f32 0.16666667, %v2028_v20  ;;  %v2030_v24 = vmin.f32 %v1518_v12, 6.0 }
 0x1e9   : > { %v2541_v22 = vmul.f32 0.16666667, %v2029_v16  ;;  %v2031_v25 = vmin.f32 %v1519_v13, 6.0  ;;  %v2032_v31 = vmin.f32 %v1520_v21, 6.0  ;;  %v1521_v35 = vmax.f32 %v1009_v23, 0.0  ;;  %v508_v20 = vld [vmem:[%s4082_s24 + $0xb88] sm:$0xff] }
 0x1ea   : > { %3562 = vst [vmem:[%s4112_s17 + $0xaf8] sm:$0xff] %v3050_v27  ;;  %v3051_v32 = vmul.f32 %v2539_v28, %v5151_v43  ;;  %v3052_v33 = vmul.f32 %v2540_v29, %v492_v51  ;;  %v2542_v34 = vmul.f32 0.16666667, %v2030_v24  ;;  %v1010_v30 = vadd.f32 3.0, %v5170_v17  ;;  %v504_v51 = vld [vmem:[%s4082_s24 + $0xb68] sm:$0xff]  ;;  %v509_v21 = vld [vmem:[%s4082_s24 + $0xb90] sm:$0xff] }
 0x1eb   : > { %v3053_v39 = vmul.f32 %v2541_v22, %v493_v53  ;;  %v2543_v44 = vmul.f32 0.16666667, %v2031_v25  ;;  %v2544_v46 = vmul.f32 0.16666667, %v2032_v31  ;;  %v2033_v47 = vmin.f32 %v1521_v35, 6.0  ;;  %v510_v24 = vld [vmem:[%s4082_s24 + $0xb98] sm:$0xff] }
 0x1ec   : > { %3563 = vst [vmem:[%s4112_s17 + $0xb00] sm:$0xff] %v3051_v32  ;;  %v3054_v40 = vmul.f32 %v2542_v34, %v494_v58  ;;  %v1522_v42 = vmax.f32 %v1010_v30, 0.0  ;;  %v1011_v43 = vadd.f32 3.0, %v5175_v26  ;;  %v1012_v45 = vadd.f32 3.0, %v500_v37  ;;  %v511_v35 = vld [vmem:[%s4082_s24 + $0xba0] sm:$0xff] }
 0x1ed   : > { %3564 = vst [vmem:[%s4112_s17 + $0xb08] sm:$0xff] %v3052_v33  ;;  %v3055_v52 = vmul.f32 %v2543_v44, %v495_v2  ;;  %v3056_v48 = vmul.f32 %v2544_v46, %v496_v3  ;;  %v2545_v41 = vmul.f32 0.16666667, %v2033_v47  ;;  %v1013_v49 = vadd.f32 3.0, %v501_v38  ;;  %v513_v47 = vld [vmem:[%s4082_s24 + $0xbb0] sm:$0xff] }
 0x1ee   : > { %3565 = vst [vmem:[%s4112_s17 + $0xb10] sm:$0xff] %v3053_v39  ;;  %v2034_v53 = vmin.f32 %v1522_v42, 6.0  ;;  %v1523_v55 = vmax.f32 %v1011_v43, 0.0  ;;  %v1524_v60 = vmax.f32 %v1012_v45, 0.0  ;;  %v1014_v61 = vadd.f32 3.0, %v502_v36  ;;  %v5218_v45 = vld [vmem:[%s4082_s24 + $0xbb8] sm:$0xff] }
 0x1ef   : > { %3566 = vst [vmem:[%s4112_s17 + $0xb18] sm:$0xff] %v3054_v40  ;;  %v3057_v58 = vmul.f32 %v2545_v41, %v497_v14  ;;  %v1525_v56 = vmax.f32 %v1013_v49, 0.0  ;;  %v1015_v57 = vadd.f32 3.0, %v503_v50  ;;  %v1016_v59 = vadd.f32 3.0, %v504_v51 }
 0x1f0   : > { %3567 = vst [vmem:[%s4112_s17 + $0xb20] sm:$0xff] %v3055_v52  ;;  %v2546_v2 = vmul.f32 0.16666667, %v2034_v53  ;;  %v2035_v3 = vmin.f32 %v1523_v55, 6.0  ;;  %v2036_v4 = vmin.f32 %v1524_v60, 6.0  ;;  %v1526_v54 = vmax.f32 %v1014_v61, 0.0 }
 0x1f1   : > { %3568 = vst [vmem:[%s4112_s17 + $0xb28] sm:$0xff] %v3056_v48  ;;  %v2037_v63 = vmin.f32 %v1525_v56, 6.0  ;;  %v1527_v0 = vmax.f32 %v1015_v57, 0.0  ;;  %v1528_v5 = vmax.f32 %v1016_v59, 0.0  ;;  %v1017_v6 = vadd.f32 3.0, %v505_v62  ;;  %v5223_v60 = vld [vmem:[%s4082_s24 + $0xbc0] sm:$0xff] }
 0x1f2   : > { %3569 = vst [vmem:[%s4112_s17 + $0xb30] sm:$0xff] %v3057_v58  ;;  %v3058_v11 = vmul.f32 %v2546_v2, %v5170_v17  ;;  %v2547_v14 = vmul.f32 0.16666667, %v2035_v3  ;;  %v2548_v15 = vmul.f32 0.16666667, %v2036_v4  ;;  %v2038_v7 = vmin.f32 %v1526_v54, 6.0 }
 0x1f3   : > { %v2549_v8 = vmul.f32 0.16666667, %v2037_v63  ;;  %v2039_v9 = vmin.f32 %v1527_v0, 6.0  ;;  %v2040_v18 = vmin.f32 %v1528_v5, 6.0  ;;  %v1529_v19 = vmax.f32 %v1017_v6, 0.0  ;;  %v516_v4 = vld [vmem:[%s4082_s24 + $0xbc8] sm:$0xff] }
 0x1f4   : > { %3570 = vst [vmem:[%s4112_s17 + $0xb38] sm:$0xff] %v3058_v11  ;;  %v3059_v12 = vmul.f32 %v2547_v14, %v5175_v26  ;;  %v3060_v16 = vmul.f32 %v2548_v15, %v500_v37  ;;  %v2550_v13 = vmul.f32 0.16666667, %v2038_v7  ;;  %v1018_v17 = vadd.f32 3.0, %v5194_v1  ;;  %v512_v37 = vld [vmem:[%s4082_s24 + $0xba8] sm:$0xff]  ;;  %v517_v5 = vld [vmem:[%s4082_s24 + $0xbd0] sm:$0xff] }
 0x1f5   : > { %v3061_v23 = vmul.f32 %v2549_v8, %v501_v38  ;;  %v2551_v27 = vmul.f32 0.16666667, %v2039_v9  ;;  %v2552_v28 = vmul.f32 0.16666667, %v2040_v18  ;;  %v2041_v29 = vmin.f32 %v1529_v19, 6.0  ;;  %v518_v7 = vld [vmem:[%s4082_s24 + $0xbd8] sm:$0xff] }
 0x1f6   : > { %3571 = vst [vmem:[%s4112_s17 + $0xb40] sm:$0xff] %v3059_v12  ;;  %v3062_v22 = vmul.f32 %v2550_v13, %v502_v36  ;;  %v1530_v25 = vmax.f32 %v1018_v17, 0.0  ;;  %v1019_v26 = vadd.f32 3.0, %v5199_v10  ;;  %v1020_v31 = vadd.f32 3.0, %v508_v20  ;;  %v519_v19 = vld [vmem:[%s4082_s24 + $0xbe0] sm:$0xff] }
 0x1f7   : > { %3572 = vst [vmem:[%s4112_s17 + $0xb48] sm:$0xff] %v3060_v16  ;;  %v3063_v32 = vmul.f32 %v2551_v27, %v503_v50  ;;  %v3064_v33 = vmul.f32 %v2552_v28, %v504_v51  ;;  %v2553_v34 = vmul.f32 0.16666667, %v2041_v29  ;;  %v1021_v30 = vadd.f32 3.0, %v509_v21  ;;  %v521_v29 = vld [vmem:[%s4082_s24 + $0xbf0] sm:$0xff] }
 0x1f8   : > { %3573 = vst [vmem:[%s4112_s17 + $0xb50] sm:$0xff] %v3061_v23  ;;  %v2042_v38 = vmin.f32 %v1530_v25, 6.0  ;;  %v1531_v39 = vmax.f32 %v1019_v26, 0.0  ;;  %v1532_v44 = vmax.f32 %v1020_v31, 0.0  ;;  %v1022_v46 = vadd.f32 3.0, %v510_v24  ;;  %v5242_v31 = vld [vmem:[%s4082_s24 + $0xbf8] sm:$0xff] }
 0x1f9   : > { %3574 = vst [vmem:[%s4112_s17 + $0xb58] sm:$0xff] %v3062_v22  ;;  %v3065_v36 = vmul.f32 %v2553_v34, %v505_v62  ;;  %v1533_v40 = vmax.f32 %v1021_v30, 0.0  ;;  %v1023_v42 = vadd.f32 3.0, %v511_v35  ;;  %v1024_v43 = vadd.f32 3.0, %v512_v37 }
 0x1fa   : > { %3575 = vst [vmem:[%s4112_s17 + $0xb60] sm:$0xff] %v3063_v32  ;;  %v2554_v50 = vmul.f32 0.16666667, %v2042_v38  ;;  %v2043_v51 = vmin.f32 %v1531_v39, 6.0  ;;  %v2044_v52 = vmin.f32 %v1532_v44, 6.0  ;;  %v1534_v48 = vmax.f32 %v1022_v46, 0.0 }
 0x1fb   : > { %3576 = vst [vmem:[%s4112_s17 + $0xb68] sm:$0xff] %v3064_v33  ;;  %v2045_v41 = vmin.f32 %v1533_v40, 6.0  ;;  %v1535_v49 = vmax.f32 %v1023_v42, 0.0  ;;  %v1536_v53 = vmax.f32 %v1024_v43, 0.0  ;;  %v1025_v55 = vadd.f32 3.0, %v513_v47  ;;  %v5247_v44 = vld [vmem:[%s4082_s24 + $0xc00] sm:$0xff] }
 0x1fc   : > { %3577 = vst [vmem:[%s4112_s17 + $0xb70] sm:$0xff] %v3065_v36  ;;  %v3066_v61 = vmul.f32 %v2554_v50, %v5194_v1  ;;  %v2555_v62 = vmul.f32 0.16666667, %v2043_v51  ;;  %v2556_v58 = vmul.f32 0.16666667, %v2044_v52  ;;  %v2046_v56 = vmin.f32 %v1534_v48, 6.0 }
 0x1fd   : > { %v2557_v57 = vmul.f32 0.16666667, %v2045_v41  ;;  %v2047_v59 = vmin.f32 %v1535_v49, 6.0  ;;  %v2048_v2 = vmin.f32 %v1536_v53, 6.0  ;;  %v1537_v3 = vmax.f32 %v1025_v55, 0.0  ;;  %v524_v52 = vld [vmem:[%s4082_s24 + $0xc08] sm:$0xff] }
 0x1fe   : > { %3578 = vst [vmem:[%s4112_s17 + $0xb78] sm:$0xff] %v3066_v61  ;;  %v3067_v54 = vmul.f32 %v2555_v62, %v5199_v10  ;;  %v3068_v63 = vmul.f32 %v2556_v58, %v508_v20  ;;  %v2558_v0 = vmul.f32 0.16666667, %v2046_v56  ;;  %v1026_v1 = vadd.f32 3.0, %v5218_v45  ;;  %v520_v20 = vld [vmem:[%s4082_s24 + $0xbe8] sm:$0xff]  ;;  %v525_v53 = vld [vmem:[%s4082_s24 + $0xc10] sm:$0xff] }
 0x1ff   : > { %v3069_v6 = vmul.f32 %v2557_v57, %v509_v21  ;;  %v2559_v11 = vmul.f32 0.16666667, %v2047_v59  ;;  %v2560_v14 = vmul.f32 0.16666667, %v2048_v2  ;;  %v2049_v15 = vmin.f32 %v1537_v3, 6.0  ;;  %v526_v56 = vld [vmem:[%s4082_s24 + $0xc18] sm:$0xff] }
 0x200   : > { %3579 = vst [vmem:[%s4112_s17 + $0xb80] sm:$0xff] %v3067_v54  ;;  %v3070_v8 = vmul.f32 %v2558_v0, %v510_v24  ;;  %v1538_v9 = vmax.f32 %v1026_v1, 0.0  ;;  %v1027_v10 = vadd.f32 3.0, %v5223_v60  ;;  %v1028_v18 = vadd.f32 3.0, %v516_v4  ;;  %v527_v3 = vld [vmem:[%s4082_s24 + $0xc20] sm:$0xff] }
 0x201   : > { %3580 = vst [vmem:[%s4112_s17 + $0xb88] sm:$0xff] %v3068_v63  ;;  %v3071_v12 = vmul.f32 %v2559_v11, %v511_v35  ;;  %v3072_v16 = vmul.f32 %v2560_v14, %v512_v37  ;;  %v2561_v13 = vmul.f32 0.16666667, %v2049_v15  ;;  %v1029_v17 = vadd.f32 3.0, %v517_v5  ;;  %v529_v15 = vld [vmem:[%s4082_s24 + $0xc30] sm:$0xff] }
 0x202   : > { %3581 = vst [vmem:[%s4112_s17 + $0xb90] sm:$0xff] %v3069_v6  ;;  %v2050_v21 = vmin.f32 %v1538_v9, 6.0  ;;  %v1539_v23 = vmax.f32 %v1027_v10, 0.0  ;;  %v1540_v27 = vmax.f32 %v1028_v18, 0.0  ;;  %v1030_v28 = vadd.f32 3.0, %v518_v7  ;;  %v5266_v18 = vld [vmem:[%s4082_s24 + $0xc38] sm:$0xff] }
 0x203   : > { %3582 = vst [vmem:[%s4112_s17 + $0xb98] sm:$0xff] %v3070_v8  ;;  %v3073_v24 = vmul.f32 %v2561_v13, %v513_v47  ;;  %v1541_v22 = vmax.f32 %v1029_v17, 0.0  ;;  %v1031_v25 = vadd.f32 3.0, %v519_v19  ;;  %v1032_v26 = vadd.f32 3.0, %v520_v20 }
 0x204   : > { %3583 = vst [vmem:[%s4112_s17 + $0xba0] sm:$0xff] %v3071_v12  ;;  %v2562_v35 = vmul.f32 0.16666667, %v2050_v21  ;;  %v2051_v37 = vmin.f32 %v1539_v23, 6.0  ;;  %v2052_v32 = vmin.f32 %v1540_v27, 6.0  ;;  %v1542_v33 = vmax.f32 %v1030_v28, 0.0 }
 0x205   : > { %3584 = vst [vmem:[%s4112_s17 + $0xba8] sm:$0xff] %v3072_v16  ;;  %v2053_v34 = vmin.f32 %v1541_v22, 6.0  ;;  %v1543_v30 = vmax.f32 %v1031_v25, 0.0  ;;  %v1544_v38 = vmax.f32 %v1032_v26, 0.0  ;;  %v1033_v39 = vadd.f32 3.0, %v521_v29  ;;  %v5271_v27 = vld [vmem:[%s4082_s24 + $0xc40] sm:$0xff] }
 0x206   : > { %3585 = vst [vmem:[%s4112_s17 + $0xbb0] sm:$0xff] %v3073_v24  ;;  %v3074_v46 = vmul.f32 %v2562_v35, %v5218_v45  ;;  %v2563_v47 = vmul.f32 0.16666667, %v2051_v37  ;;  %v2564_v36 = vmul.f32 0.16666667, %v2052_v32  ;;  %v2054_v40 = vmin.f32 %v1542_v33, 6.0 }
 0x207   : > { %v2565_v42 = vmul.f32 0.16666667, %v2053_v34  ;;  %v2055_v43 = vmin.f32 %v1543_v30, 6.0  ;;  %v2056_v50 = vmin.f32 %v1544_v38, 6.0  ;;  %v1545_v51 = vmax.f32 %v1033_v39, 0.0  ;;  %v532_v32 = vld [vmem:[%s4082_s24 + $0xc48] sm:$0xff] }
 0x208   : > { %3586 = vst [vmem:[%s4112_s17 + $0xbb8] sm:$0xff] %v3074_v46  ;;  %v3075_v48 = vmul.f32 %v2563_v47, %v5223_v60  ;;  %v3076_v41 = vmul.f32 %v2564_v36, %v516_v4  ;;  %v2566_v49 = vmul.f32 0.16666667, %v2054_v40  ;;  %v1034_v45 = vadd.f32 3.0, %v5242_v31  ;;  %v528_v4 = vld [vmem:[%s4082_s24 + $0xc28] sm:$0xff]  ;;  %v533_v38 = vld [vmem:[%s4082_s24 + $0xc50] sm:$0xff] }
 0x209   : > { %v3077_v55 = vmul.f32 %v2565_v42, %v517_v5  ;;  %v2567_v61 = vmul.f32 0.16666667, %v2055_v43  ;;  %v2568_v62 = vmul.f32 0.16666667, %v2056_v50  ;;  %v2057_v58 = vmin.f32 %v1545_v51, 6.0  ;;  %v534_v40 = vld [vmem:[%s4082_s24 + $0xc58] sm:$0xff] }
 0x20a   : > { %3587 = vst [vmem:[%s4112_s17 + $0xbc0] sm:$0xff] %v3075_v48  ;;  %v3078_v57 = vmul.f32 %v2566_v49, %v518_v7  ;;  %v1546_v59 = vmax.f32 %v1034_v45, 0.0  ;;  %v1035_v60 = vadd.f32 3.0, %v5247_v44  ;;  %v1036_v2 = vadd.f32 3.0, %v524_v52  ;;  %v535_v51 = vld [vmem:[%s4082_s24 + $0xc60] sm:$0xff] }
 0x20b   : > { %3588 = vst [vmem:[%s4112_s17 + $0xbc8] sm:$0xff] %v3076_v41  ;;  %v3079_v54 = vmul.f32 %v2567_v61, %v519_v19  ;;  %v3080_v63 = vmul.f32 %v2568_v62, %v520_v20  ;;  %v2569_v0 = vmul.f32 0.16666667, %v2057_v58  ;;  %v1037_v1 = vadd.f32 3.0, %v525_v53  ;;  %v537_v58 = vld [vmem:[%s4082_s24 + $0xc70] sm:$0xff] }
 0x20c   : > { %3589 = vst [vmem:[%s4112_s17 + $0xbd0] sm:$0xff] %v3077_v55  ;;  %v2058_v5 = vmin.f32 %v1546_v59, 6.0  ;;  %v1547_v6 = vmax.f32 %v1035_v60, 0.0  ;;  %v1548_v11 = vmax.f32 %v1036_v2, 0.0  ;;  %v1038_v14 = vadd.f32 3.0, %v526_v56  ;;  %v5290_v2 = vld [vmem:[%s4082_s24 + $0xc78] sm:$0xff] }
 0x20d   : > { %3590 = vst [vmem:[%s4112_s17 + $0xbd8] sm:$0xff] %v3078_v57  ;;  %v3081_v7 = vmul.f32 %v2569_v0, %v521_v29  ;;  %v1549_v8 = vmax.f32 %v1037_v1, 0.0  ;;  %v1039_v9 = vadd.f32 3.0, %v527_v3  ;;  %v1040_v10 = vadd.f32 3.0, %v528_v4 }
 0x20e   : > { %3591 = vst [vmem:[%s4112_s17 + $0xbe0] sm:$0xff] %v3079_v54  ;;  %v2570_v19 = vmul.f32 0.16666667, %v2058_v5  ;;  %v2059_v20 = vmin.f32 %v1547_v6, 6.0  ;;  %v2060_v12 = vmin.f32 %v1548_v11, 6.0  ;;  %v1550_v16 = vmax.f32 %v1038_v14, 0.0 }
 0x20f   : > { %3592 = vst [vmem:[%s4112_s17 + $0xbe8] sm:$0xff] %v3080_v63  ;;  %v2061_v13 = vmin.f32 %v1549_v8, 6.0  ;;  %v1551_v17 = vmax.f32 %v1039_v9, 0.0  ;;  %v1552_v21 = vmax.f32 %v1040_v10, 0.0  ;;  %v1041_v23 = vadd.f32 3.0, %v529_v15  ;;  %v5295_v11 = vld [vmem:[%s4082_s24 + $0xc80] sm:$0xff] }
 0x210   : > { %3593 = vst [vmem:[%s4112_s17 + $0xbf0] sm:$0xff] %v3081_v7  ;;  %v3082_v28 = vmul.f32 %v2570_v19, %v5242_v31  ;;  %v2571_v29 = vmul.f32 0.16666667, %v2059_v20  ;;  %v2572_v24 = vmul.f32 0.16666667, %v2060_v12  ;;  %v2062_v22 = vmin.f32 %v1550_v16, 6.0 }
 0x211   : > { %v2573_v25 = vmul.f32 0.16666667, %v2061_v13  ;;  %v2063_v26 = vmin.f32 %v1551_v17, 6.0  ;;  %v2064_v35 = vmin.f32 %v1552_v21, 6.0  ;;  %v1553_v37 = vmax.f32 %v1041_v23, 0.0  ;;  %v540_v12 = vld [vmem:[%s4082_s24 + $0xc88] sm:$0xff] }
 0x212   : > { %3594 = vst [vmem:[%s4112_s17 + $0xbf8] sm:$0xff] %v3082_v28  ;;  %v3083_v33 = vmul.f32 %v2571_v29, %v5247_v44  ;;  %v3084_v34 = vmul.f32 %v2572_v24, %v524_v52  ;;  %v2574_v30 = vmul.f32 0.16666667, %v2062_v22  ;;  %v1042_v31 = vadd.f32 3.0, %v5266_v18  ;;  %v536_v52 = vld [vmem:[%s4082_s24 + $0xc68] sm:$0xff]  ;;  %v541_v21 = vld [vmem:[%s4082_s24 + $0xc90] sm:$0xff] }
 0x213   : > { %v3085_v39 = vmul.f32 %v2573_v25, %v525_v53  ;;  %v2575_v46 = vmul.f32 0.16666667, %v2063_v26  ;;  %v2576_v47 = vmul.f32 0.16666667, %v2064_v35  ;;  %v2065_v36 = vmin.f32 %v1553_v37, 6.0  ;;  %v542_v22 = vld [vmem:[%s4082_s24 + $0xc98] sm:$0xff] }
 0x214   : > { %3595 = vst [vmem:[%s4112_s17 + $0xc00] sm:$0xff] %v3083_v33  ;;  %v3086_v42 = vmul.f32 %v2574_v30, %v526_v56  ;;  %v1554_v43 = vmax.f32 %v1042_v31, 0.0  ;;  %v1043_v44 = vadd.f32 3.0, %v5271_v27  ;;  %v1044_v50 = vadd.f32 3.0, %v532_v32  ;;  %v543_v37 = vld [vmem:[%s4082_s24 + $0xca0] sm:$0xff] }
 0x215   : > { %3596 = vst [vmem:[%s4112_s17 + $0xc08] sm:$0xff] %v3084_v34  ;;  %v3087_v48 = vmul.f32 %v2575_v46, %v527_v3  ;;  %v3088_v41 = vmul.f32 %v2576_v47, %v528_v4  ;;  %v2577_v49 = vmul.f32 0.16666667, %v2065_v36  ;;  %v1045_v45 = vadd.f32 3.0, %v533_v38  ;;  %v545_v36 = vld [vmem:[%s4082_s24 + $0xcb0] sm:$0xff] }
 0x216   : > { %3597 = vst [vmem:[%s4112_s17 + $0xc10] sm:$0xff] %v3085_v39  ;;  %v2066_v53 = vmin.f32 %v1554_v43, 6.0  ;;  %v1555_v55 = vmax.f32 %v1043_v44, 0.0  ;;  %v1556_v61 = vmax.f32 %v1044_v50, 0.0  ;;  %v1046_v62 = vadd.f32 3.0, %v534_v40  ;;  %v5314_v50 = vld [vmem:[%s4082_s24 + $0xcb8] sm:$0xff] }
 0x217   : > { %3598 = vst [vmem:[%s4112_s17 + $0xc18] sm:$0xff] %v3086_v42  ;;  %v3089_v56 = vmul.f32 %v2577_v49, %v529_v15  ;;  %v1557_v57 = vmax.f32 %v1045_v45, 0.0  ;;  %v1047_v59 = vadd.f32 3.0, %v535_v51  ;;  %v1048_v60 = vadd.f32 3.0, %v536_v52 }
 0x218   : > { %3599 = vst [vmem:[%s4112_s17 + $0xc20] sm:$0xff] %v3087_v48  ;;  %v2578_v3 = vmul.f32 0.16666667, %v2066_v53  ;;  %v2067_v4 = vmin.f32 %v1555_v55, 6.0  ;;  %v2068_v54 = vmin.f32 %v1556_v61, 6.0  ;;  %v1558_v63 = vmax.f32 %v1046_v62, 0.0 }
 0x219   : > { %3600 = vst [vmem:[%s4112_s17 + $0xc28] sm:$0xff] %v3088_v41  ;;  %v2069_v0 = vmin.f32 %v1557_v57, 6.0  ;;  %v1559_v1 = vmax.f32 %v1047_v59, 0.0  ;;  %v1560_v5 = vmax.f32 %v1048_v60, 0.0  ;;  %v1049_v6 = vadd.f32 3.0, %v537_v58  ;;  %v5319_v61 = vld [vmem:[%s4082_s24 + $0xcc0] sm:$0xff] }
 0x21a   : > { %3601 = vst [vmem:[%s4112_s17 + $0xc30] sm:$0xff] %v3089_v56  ;;  %v3090_v14 = vmul.f32 %v2578_v3, %v5266_v18  ;;  %v2579_v15 = vmul.f32 0.16666667, %v2067_v4  ;;  %v2580_v7 = vmul.f32 0.16666667, %v2068_v54  ;;  %v2070_v8 = vmin.f32 %v1558_v63, 6.0 }
 0x21b   : > { %v2581_v9 = vmul.f32 0.16666667, %v2069_v0  ;;  %v2071_v10 = vmin.f32 %v1559_v1, 6.0  ;;  %v2072_v19 = vmin.f32 %v1560_v5, 6.0  ;;  %v1561_v20 = vmax.f32 %v1049_v6, 0.0  ;;  %v548_v54 = vld [vmem:[%s4082_s24 + $0xcc8] sm:$0xff] }
 0x21c   : > { %3602 = vst [vmem:[%s4112_s17 + $0xc38] sm:$0xff] %v3090_v14  ;;  %v3091_v16 = vmul.f32 %v2579_v15, %v5271_v27  ;;  %v3092_v13 = vmul.f32 %v2580_v7, %v532_v32  ;;  %v2582_v17 = vmul.f32 0.16666667, %v2070_v8  ;;  %v1050_v18 = vadd.f32 3.0, %v5290_v2  ;;  %v544_v32 = vld [vmem:[%s4082_s24 + $0xca8] sm:$0xff]  ;;  %v549_v5 = vld [vmem:[%s4082_s24 + $0xcd0] sm:$0xff] }
 0x21d   : > { %v3093_v23 = vmul.f32 %v2581_v9, %v533_v38  ;;  %v2583_v28 = vmul.f32 0.16666667, %v2071_v10  ;;  %v2584_v29 = vmul.f32 0.16666667, %v2072_v19  ;;  %v2073_v24 = vmin.f32 %v1561_v20, 6.0  ;;  %v550_v8 = vld [vmem:[%s4082_s24 + $0xcd8] sm:$0xff] }
 0x21e   : > { %3603 = vst [vmem:[%s4112_s17 + $0xc40] sm:$0xff] %v3091_v16  ;;  %v3094_v25 = vmul.f32 %v2582_v17, %v534_v40  ;;  %v1562_v26 = vmax.f32 %v1050_v18, 0.0  ;;  %v1051_v27 = vadd.f32 3.0, %v5295_v11  ;;  %v1052_v35 = vadd.f32 3.0, %v540_v12  ;;  %v551_v20 = vld [vmem:[%s4082_s24 + $0xce0] sm:$0xff] }
 0x21f   : > { %3604 = vst [vmem:[%s4112_s17 + $0xc48] sm:$0xff] %v3092_v13  ;;  %v3095_v33 = vmul.f32 %v2583_v28, %v535_v51  ;;  %v3096_v34 = vmul.f32 %v2584_v29, %v536_v52  ;;  %v2585_v30 = vmul.f32 0.16666667, %v2073_v24  ;;  %v1053_v31 = vadd.f32 3.0, %v541_v21  ;;  %v553_v24 = vld [vmem:[%s4082_s24 + $0xcf0] sm:$0xff] }
 0x220   : > { %3605 = vst [vmem:[%s4112_s17 + $0xc50] sm:$0xff] %v3093_v23  ;;  %v2074_v38 = vmin.f32 %v1562_v26, 6.0  ;;  %v1563_v39 = vmax.f32 %v1051_v27, 0.0  ;;  %v1564_v46 = vmax.f32 %v1052_v35, 0.0  ;;  %v1054_v47 = vadd.f32 3.0, %v542_v22  ;;  %v5338_v35 = vld [vmem:[%s4082_s24 + $0xcf8] sm:$0xff] }
 0x221   : > { %3606 = vst [vmem:[%s4112_s17 + $0xc58] sm:$0xff] %v3094_v25  ;;  %v3097_v40 = vmul.f32 %v2585_v30, %v537_v58  ;;  %v1565_v42 = vmax.f32 %v1053_v31, 0.0  ;;  %v1055_v43 = vadd.f32 3.0, %v543_v37  ;;  %v1056_v44 = vadd.f32 3.0, %v544_v32 }
 0x222   : > { %3607 = vst [vmem:[%s4112_s17 + $0xc60] sm:$0xff] %v3095_v33  ;;  %v2586_v51 = vmul.f32 0.16666667, %v2074_v38  ;;  %v2075_v52 = vmin.f32 %v1563_v39, 6.0  ;;  %v2076_v48 = vmin.f32 %v1564_v46, 6.0  ;;  %v1566_v41 = vmax.f32 %v1054_v47, 0.0 }
 0x223   : > { %3608 = vst [vmem:[%s4112_s17 + $0xc68] sm:$0xff] %v3096_v34  ;;  %v2077_v49 = vmin.f32 %v1565_v42, 6.0  ;;  %v1567_v45 = vmax.f32 %v1055_v43, 0.0  ;;  %v1568_v53 = vmax.f32 %v1056_v44, 0.0  ;;  %v1057_v55 = vadd.f32 3.0, %v545_v36  ;;  %v5343_v46 = vld [vmem:[%s4082_s24 + $0xd00] sm:$0xff] }
 0x224   : > { %3609 = vst [vmem:[%s4112_s17 + $0xc70] sm:$0xff] %v3097_v40  ;;  %v3098_v62 = vmul.f32 %v2586_v51, %v5290_v2  ;;  %v2587_v58 = vmul.f32 0.16666667, %v2075_v52  ;;  %v2588_v56 = vmul.f32 0.16666667, %v2076_v48  ;;  %v2078_v57 = vmin.f32 %v1566_v41, 6.0 }
 0x225   : > { %v2589_v59 = vmul.f32 0.16666667, %v2077_v49  ;;  %v2079_v60 = vmin.f32 %v1567_v45, 6.0  ;;  %v2080_v3 = vmin.f32 %v1568_v53, 6.0  ;;  %v1569_v4 = vmax.f32 %v1057_v55, 0.0  ;;  %v556_v48 = vld [vmem:[%s4082_s24 + $0xd08] sm:$0xff] }
 0x226   : > { %3610 = vst [vmem:[%s4112_s17 + $0xc78] sm:$0xff] %v3098_v62  ;;  %v3099_v63 = vmul.f32 %v2587_v58, %v5295_v11  ;;  %v3100_v0 = vmul.f32 %v2588_v56, %v540_v12  ;;  %v2590_v1 = vmul.f32 0.16666667, %v2078_v57  ;;  %v1058_v2 = vadd.f32 3.0, %v5314_v50  ;;  %v552_v12 = vld [vmem:[%s4082_s24 + $0xce8] sm:$0xff]  ;;  %v557_v53 = vld [vmem:[%s4082_s24 + $0xd10] sm:$0xff] }
 0x227   : > { %v3101_v6 = vmul.f32 %v2589_v59, %v541_v21  ;;  %v2591_v14 = vmul.f32 0.16666667, %v2079_v60  ;;  %v2592_v15 = vmul.f32 0.16666667, %v2080_v3  ;;  %v2081_v7 = vmin.f32 %v1569_v4, 6.0  ;;  %v558_v57 = vld [vmem:[%s4082_s24 + $0xd18] sm:$0xff] }
 0x228   : > { %3611 = vst [vmem:[%s4112_s17 + $0xc80] sm:$0xff] %v3099_v63  ;;  %v3102_v9 = vmul.f32 %v2590_v1, %v542_v22  ;;  %v1570_v10 = vmax.f32 %v1058_v2, 0.0  ;;  %v1059_v11 = vadd.f32 3.0, %v5319_v61  ;;  %v1060_v19 = vadd.f32 3.0, %v548_v54  ;;  %v559_v4 = vld [vmem:[%s4082_s24 + $0xd20] sm:$0xff] }
 0x229   : > { %3612 = vst [vmem:[%s4112_s17 + $0xc88] sm:$0xff] %v3100_v0  ;;  %v3103_v16 = vmul.f32 %v2591_v14, %v543_v37  ;;  %v3104_v13 = vmul.f32 %v2592_v15, %v544_v32  ;;  %v2593_v17 = vmul.f32 0.16666667, %v2081_v7  ;;  %v1061_v18 = vadd.f32 3.0, %v549_v5  ;;  %v561_v7 = vld [vmem:[%s4082_s24 + $0xd30] sm:$0xff] }
 0x22a   : > { %3613 = vst [vmem:[%s4112_s17 + $0xc90] sm:$0xff] %v3101_v6  ;;  %v2082_v21 = vmin.f32 %v1570_v10, 6.0  ;;  %v1571_v23 = vmax.f32 %v1059_v11, 0.0  ;;  %v1572_v28 = vmax.f32 %v1060_v19, 0.0  ;;  %v1062_v29 = vadd.f32 3.0, %v550_v8  ;;  %v5362_v19 = vld [vmem:[%s4082_s24 + $0xd38] sm:$0xff] }
 0x22b   : > { %3614 = vst [vmem:[%s4112_s17 + $0xc98] sm:$0xff] %v3102_v9  ;;  %v3105_v22 = vmul.f32 %v2593_v17, %v545_v36  ;;  %v1573_v25 = vmax.f32 %v1061_v18, 0.0  ;;  %v1063_v26 = vadd.f32 3.0, %v551_v20  ;;  %v1064_v27 = vadd.f32 3.0, %v552_v12 }
 0x22c   : > { %3615 = vst [vmem:[%s4112_s17 + $0xca0] sm:$0xff] %v3103_v16  ;;  %v2594_v37 = vmul.f32 0.16666667, %v2082_v21  ;;  %v2083_v32 = vmin.f32 %v1571_v23, 6.0  ;;  %v2084_v33 = vmin.f32 %v1572_v28, 6.0  ;;  %v1574_v34 = vmax.f32 %v1062_v29, 0.0 }
 0x22d   : > { %3616 = vst [vmem:[%s4112_s17 + $0xca8] sm:$0xff] %v3104_v13  ;;  %v2085_v30 = vmin.f32 %v1573_v25, 6.0  ;;  %v1575_v31 = vmax.f32 %v1063_v26, 0.0  ;;  %v1576_v38 = vmax.f32 %v1064_v27, 0.0  ;;  %v1065_v39 = vadd.f32 3.0, %v553_v24  ;;  %v5367_v28 = vld [vmem:[%s4082_s24 + $0xd40] sm:$0xff] }
 0x22e   : > { %3617 = vst [vmem:[%s4112_s17 + $0xcb0] sm:$0xff] %v3105_v22  ;;  %v3106_v47 = vmul.f32 %v2594_v37, %v5314_v50  ;;  %v2595_v36 = vmul.f32 0.16666667, %v2083_v32  ;;  %v2596_v40 = vmul.f32 0.16666667, %v2084_v33  ;;  %v2086_v42 = vmin.f32 %v1574_v34, 6.0 }
 0x22f   : > { %v2597_v43 = vmul.f32 0.16666667, %v2085_v30  ;;  %v2087_v44 = vmin.f32 %v1575_v31, 6.0  ;;  %v2088_v51 = vmin.f32 %v1576_v38, 6.0  ;;  %v1577_v52 = vmax.f32 %v1065_v39, 0.0  ;;  %v564_v33 = vld [vmem:[%s4082_s24 + $0xd48] sm:$0xff] }
 0x230   : > { %3618 = vst [vmem:[%s4112_s17 + $0xcb8] sm:$0xff] %v3106_v47  ;;  %v3107_v41 = vmul.f32 %v2595_v36, %v5319_v61  ;;  %v3108_v49 = vmul.f32 %v2596_v40, %v548_v54  ;;  %v2598_v45 = vmul.f32 0.16666667, %v2086_v42  ;;  %v1066_v50 = vadd.f32 3.0, %v5338_v35  ;;  %v560_v54 = vld [vmem:[%s4082_s24 + $0xd28] sm:$0xff]  ;;  %v565_v38 = vld [vmem:[%s4082_s24 + $0xd50] sm:$0xff] }
 0x231   : > { %v3109_v55 = vmul.f32 %v2597_v43, %v549_v5  ;;  %v2599_v62 = vmul.f32 0.16666667, %v2087_v44  ;;  %v2600_v58 = vmul.f32 0.16666667, %v2088_v51  ;;  %v2089_v56 = vmin.f32 %v1577_v52, 6.0  ;;  %v566_v42 = vld [vmem:[%s4082_s24 + $0xd58] sm:$0xff] }
 0x232   : > { %3619 = vst [vmem:[%s4112_s17 + $0xcc0] sm:$0xff] %v3107_v41  ;;  %v3110_v59 = vmul.f32 %v2598_v45, %v550_v8  ;;  %v1578_v60 = vmax.f32 %v1066_v50, 0.0  ;;  %v1067_v61 = vadd.f32 3.0, %v5343_v46  ;;  %v1068_v3 = vadd.f32 3.0, %v556_v48  ;;  %v567_v52 = vld [vmem:[%s4082_s24 + $0xd60] sm:$0xff] }
 0x233   : > { %3620 = vst [vmem:[%s4112_s17 + $0xcc8] sm:$0xff] %v3108_v49  ;;  %v3111_v63 = vmul.f32 %v2599_v62, %v551_v20  ;;  %v3112_v0 = vmul.f32 %v2600_v58, %v552_v12  ;;  %v2601_v1 = vmul.f32 0.16666667, %v2089_v56  ;;  %v1069_v2 = vadd.f32 3.0, %v557_v53  ;;  %v569_v56 = vld [vmem:[%s4082_s24 + $0xd70] sm:$0xff] }
 0x234   : > { %3621 = vst [vmem:[%s4112_s17 + $0xcd0] sm:$0xff] %v3109_v55  ;;  %v2090_v5 = vmin.f32 %v1578_v60, 6.0  ;;  %v1579_v6 = vmax.f32 %v1067_v61, 0.0  ;;  %v1580_v14 = vmax.f32 %v1068_v3, 0.0  ;;  %v1070_v15 = vadd.f32 3.0, %v558_v57  ;;  %v5386_v3 = vld [vmem:[%s4082_s24 + $0xd78] sm:$0xff] }
 0x235   : > { %3622 = vst [vmem:[%s4112_s17 + $0xcd8] sm:$0xff] %v3110_v59  ;;  %v3113_v8 = vmul.f32 %v2601_v1, %v553_v24  ;;  %v1581_v9 = vmax.f32 %v1069_v2, 0.0  ;;  %v1071_v10 = vadd.f32 3.0, %v559_v4  ;;  %v1072_v11 = vadd.f32 3.0, %v560_v54 }
 0x236   : > { %3623 = vst [vmem:[%s4112_s17 + $0xce0] sm:$0xff] %v3111_v63  ;;  %v2602_v20 = vmul.f32 0.16666667, %v2090_v5  ;;  %v2091_v12 = vmin.f32 %v1579_v6, 6.0  ;;  %v2092_v16 = vmin.f32 %v1580_v14, 6.0  ;;  %v1582_v13 = vmax.f32 %v1070_v15, 0.0 }
 0x237   : > { %3624 = vst [vmem:[%s4112_s17 + $0xce8] sm:$0xff] %v3112_v0  ;;  %v2093_v17 = vmin.f32 %v1581_v9, 6.0  ;;  %v1583_v18 = vmax.f32 %v1071_v10, 0.0  ;;  %v1584_v21 = vmax.f32 %v1072_v11, 0.0  ;;  %v1073_v23 = vadd.f32 3.0, %v561_v7  ;;  %v5391_v14 = vld [vmem:[%s4082_s24 + $0xd80] sm:$0xff] }
 0x238   : > { %3625 = vst [vmem:[%s4112_s17 + $0xcf0] sm:$0xff] %v3113_v8  ;;  %v3114_v29 = vmul.f32 %v2602_v20, %v5338_v35  ;;  %v2603_v24 = vmul.f32 0.16666667, %v2091_v12  ;;  %v2604_v22 = vmul.f32 0.16666667, %v2092_v16  ;;  %v2094_v25 = vmin.f32 %v1582_v13, 6.0 }
 0x239   : > { %v2605_v26 = vmul.f32 0.16666667, %v2093_v17  ;;  %v2095_v27 = vmin.f32 %v1583_v18, 6.0  ;;  %v2096_v37 = vmin.f32 %v1584_v21, 6.0  ;;  %v1585_v32 = vmax.f32 %v1073_v23, 0.0  ;;  %v572_v16 = vld [vmem:[%s4082_s24 + $0xd88] sm:$0xff] }
 0x23a   : > { %3626 = vst [vmem:[%s4112_s17 + $0xcf8] sm:$0xff] %v3114_v29  ;;  %v3115_v34 = vmul.f32 %v2603_v24, %v5343_v46  ;;  %v3116_v30 = vmul.f32 %v2604_v22, %v556_v48  ;;  %v2606_v31 = vmul.f32 0.16666667, %v2094_v25  ;;  %v1074_v35 = vadd.f32 3.0, %v5362_v19  ;;  %v568_v48 = vld [vmem:[%s4082_s24 + $0xd68] sm:$0xff]  ;;  %v573_v21 = vld [vmem:[%s4082_s24 + $0xd90] sm:$0xff] }
 0x23b   : > { %v3117_v39 = vmul.f32 %v2605_v26, %v557_v53  ;;  %v2607_v47 = vmul.f32 0.16666667, %v2095_v27  ;;  %v2608_v36 = vmul.f32 0.16666667, %v2096_v37  ;;  %v2097_v40 = vmin.f32 %v1585_v32, 6.0  ;;  %v574_v25 = vld [vmem:[%s4082_s24 + $0xd98] sm:$0xff] }
 0x23c   : > { %3627 = vst [vmem:[%s4112_s17 + $0xd00] sm:$0xff] %v3115_v34  ;;  %v3118_v43 = vmul.f32 %v2606_v31, %v558_v57  ;;  %v1586_v44 = vmax.f32 %v1074_v35, 0.0  ;;  %v1075_v46 = vadd.f32 3.0, %v5367_v28  ;;  %v1076_v51 = vadd.f32 3.0, %v564_v33  ;;  %v575_v32 = vld [vmem:[%s4082_s24 + $0xda0] sm:$0xff] }
 0x23d   : > { %3628 = vst [vmem:[%s4112_s17 + $0xd08] sm:$0xff] %v3116_v30  ;;  %v3119_v41 = vmul.f32 %v2607_v47, %v559_v4  ;;  %v3120_v49 = vmul.f32 %v2608_v36, %v560_v54  ;;  %v2609_v45 = vmul.f32 0.16666667, %v2097_v40  ;;  %v1077_v50 = vadd.f32 3.0, %v565_v38  ;;  %v577_v40 = vld [vmem:[%s4082_s24 + $0xdb0] sm:$0xff] }
 0x23e   : > { %3629 = vst [vmem:[%s4112_s17 + $0xd10] sm:$0xff] %v3117_v39  ;;  %v2098_v53 = vmin.f32 %v1586_v44, 6.0  ;;  %v1587_v55 = vmax.f32 %v1075_v46, 0.0  ;;  %v1588_v62 = vmax.f32 %v1076_v51, 0.0  ;;  %v1078_v58 = vadd.f32 3.0, %v566_v42  ;;  %v5410_v51 = vld [vmem:[%s4082_s24 + $0xdb8] sm:$0xff] }
 0x23f   : > { %3630 = vst [vmem:[%s4112_s17 + $0xd18] sm:$0xff] %v3118_v43  ;;  %v3121_v57 = vmul.f32 %v2609_v45, %v561_v7  ;;  %v1589_v59 = vmax.f32 %v1077_v50, 0.0  ;;  %v1079_v60 = vadd.f32 3.0, %v567_v52  ;;  %v1080_v61 = vadd.f32 3.0, %v568_v48 }
 0x240   : > { %3631 = vst [vmem:[%s4112_s17 + $0xd20] sm:$0xff] %v3119_v41  ;;  %v2610_v4 = vmul.f32 0.16666667, %v2098_v53  ;;  %v2099_v54 = vmin.f32 %v1587_v55, 6.0  ;;  %v2100_v63 = vmin.f32 %v1588_v62, 6.0  ;;  %v1590_v0 = vmax.f32 %v1078_v58, 0.0 }
 0x241   : > { %3632 = vst [vmem:[%s4112_s17 + $0xd28] sm:$0xff] %v3120_v49  ;;  %v2101_v1 = vmin.f32 %v1589_v59, 6.0  ;;  %v1591_v2 = vmax.f32 %v1079_v60, 0.0  ;;  %v1592_v5 = vmax.f32 %v1080_v61, 0.0  ;;  %v1081_v6 = vadd.f32 3.0, %v569_v56  ;;  %v5415_v62 = vld [vmem:[%s4082_s24 + $0xdc0] sm:$0xff] }
 0x242   : > { %3633 = vst [vmem:[%s4112_s17 + $0xd30] sm:$0xff] %v3121_v57  ;;  %v3122_v15 = vmul.f32 %v2610_v4, %v5362_v19  ;;  %v2611_v7 = vmul.f32 0.16666667, %v2099_v54  ;;  %v2612_v8 = vmul.f32 0.16666667, %v2100_v63  ;;  %v2102_v9 = vmin.f32 %v1590_v0, 6.0 }
 0x243   : > { %v2613_v10 = vmul.f32 0.16666667, %v2101_v1  ;;  %v2103_v11 = vmin.f32 %v1591_v2, 6.0  ;;  %v2104_v20 = vmin.f32 %v1592_v5, 6.0  ;;  %v1593_v12 = vmax.f32 %v1081_v6, 0.0  ;;  %v580_v63 = vld [vmem:[%s4082_s24 + $0xdc8] sm:$0xff] }
 0x244   : > { %3634 = vst [vmem:[%s4112_s17 + $0xd38] sm:$0xff] %v3122_v15  ;;  %v3123_v13 = vmul.f32 %v2611_v7, %v5367_v28  ;;  %v3124_v17 = vmul.f32 %v2612_v8, %v564_v33  ;;  %v2614_v18 = vmul.f32 0.16666667, %v2102_v9  ;;  %v1082_v19 = vadd.f32 3.0, %v5386_v3  ;;  %v576_v33 = vld [vmem:[%s4082_s24 + $0xda8] sm:$0xff]  ;;  %v581_v5 = vld [vmem:[%s4082_s24 + $0xdd0] sm:$0xff] }
 0x245   : > { %v3125_v23 = vmul.f32 %v2613_v10, %v565_v38  ;;  %v2615_v29 = vmul.f32 0.16666667, %v2103_v11  ;;  %v2616_v24 = vmul.f32 0.16666667, %v2104_v20  ;;  %v2105_v22 = vmin.f32 %v1593_v12, 6.0  ;;  %v582_v9 = vld [vmem:[%s4082_s24 + $0xdd8] sm:$0xff] }
 0x246   : > { %3635 = vst [vmem:[%s4112_s17 + $0xd40] sm:$0xff] %v3123_v13  ;;  %v3126_v26 = vmul.f32 %v2614_v18, %v566_v42  ;;  %v1594_v27 = vmax.f32 %v1082_v19, 0.0  ;;  %v1083_v28 = vadd.f32 3.0, %v5391_v14  ;;  %v1084_v37 = vadd.f32 3.0, %v572_v16  ;;  %v583_v12 = vld [vmem:[%s4082_s24 + $0xde0] sm:$0xff] }
 0x247   : > { %3636 = vst [vmem:[%s4112_s17 + $0xd48] sm:$0xff] %v3124_v17  ;;  %v3127_v34 = vmul.f32 %v2615_v29, %v567_v52  ;;  %v3128_v30 = vmul.f32 %v2616_v24, %v568_v48  ;;  %v2617_v31 = vmul.f32 0.16666667, %v2105_v22  ;;  %v1085_v35 = vadd.f32 3.0, %v573_v21  ;;  %v585_v22 = vld [vmem:[%s4082_s24 + $0xdf0] sm:$0xff] }
 0x248   : > { %3637 = vst [vmem:[%s4112_s17 + $0xd50] sm:$0xff] %v3125_v23  ;;  %v2106_v38 = vmin.f32 %v1594_v27, 6.0  ;;  %v1595_v39 = vmax.f32 %v1083_v28, 0.0  ;;  %v1596_v47 = vmax.f32 %v1084_v37, 0.0  ;;  %v1086_v36 = vadd.f32 3.0, %v574_v25  ;;  %v5434_v37 = vld [vmem:[%s4082_s24 + $0xdf8] sm:$0xff] }
 0x249   : > { %3638 = vst [vmem:[%s4112_s17 + $0xd58] sm:$0xff] %v3126_v26  ;;  %v3129_v42 = vmul.f32 %v2617_v31, %v569_v56  ;;  %v1597_v43 = vmax.f32 %v1085_v35, 0.0  ;;  %v1087_v44 = vadd.f32 3.0, %v575_v32  ;;  %v1088_v46 = vadd.f32 3.0, %v576_v33 }
 0x24a   : > { %3639 = vst [vmem:[%s4112_s17 + $0xd60] sm:$0xff] %v3127_v34  ;;  %v2618_v52 = vmul.f32 0.16666667, %v2106_v38  ;;  %v2107_v48 = vmin.f32 %v1595_v39, 6.0  ;;  %v2108_v41 = vmin.f32 %v1596_v47, 6.0  ;;  %v1598_v49 = vmax.f32 %v1086_v36, 0.0 }
 0x24b   : > { %3640 = vst [vmem:[%s4112_s17 + $0xd68] sm:$0xff] %v3128_v30  ;;  %v2109_v45 = vmin.f32 %v1597_v43, 6.0  ;;  %v1599_v50 = vmax.f32 %v1087_v44, 0.0  ;;  %v1600_v53 = vmax.f32 %v1088_v46, 0.0  ;;  %v1089_v55 = vadd.f32 3.0, %v577_v40  ;;  %v5439_v47 = vld [vmem:[%s4082_s24 + $0xe00] sm:$0xff] }
 0x24c   : > { %3641 = vst [vmem:[%s4112_s17 + $0xd70] sm:$0xff] %v3129_v42  ;;  %v3130_v58 = vmul.f32 %v2618_v52, %v5386_v3  ;;  %v2619_v56 = vmul.f32 0.16666667, %v2107_v48  ;;  %v2620_v57 = vmul.f32 0.16666667, %v2108_v41  ;;  %v2110_v59 = vmin.f32 %v1598_v49, 6.0 }
 0x24d   : > { %v2621_v60 = vmul.f32 0.16666667, %v2109_v45  ;;  %v2111_v61 = vmin.f32 %v1599_v50, 6.0  ;;  %v2112_v4 = vmin.f32 %v1600_v53, 6.0  ;;  %v1601_v54 = vmax.f32 %v1089_v55, 0.0  ;;  %v588_v41 = vld [vmem:[%s4082_s24 + $0xe08] sm:$0xff] }
 0x24e   : > { %3642 = vst [vmem:[%s4112_s17 + $0xd78] sm:$0xff] %v3130_v58  ;;  %v3131_v0 = vmul.f32 %v2619_v56, %v5391_v14  ;;  %v3132_v1 = vmul.f32 %v2620_v57, %v572_v16  ;;  %v2622_v2 = vmul.f32 0.16666667, %v2110_v59  ;;  %v1090_v3 = vadd.f32 3.0, %v5410_v51  ;;  %v584_v16 = vld [vmem:[%s4082_s24 + $0xde8] sm:$0xff]  ;;  %v589_v53 = vld [vmem:[%s4082_s24 + $0xe10] sm:$0xff] }
 0x24f   : > { %v3133_v6 = vmul.f32 %v2621_v60, %v573_v21  ;;  %v2623_v15 = vmul.f32 0.16666667, %v2111_v61  ;;  %v2624_v7 = vmul.f32 0.16666667, %v2112_v4  ;;  %v2113_v8 = vmin.f32 %v1601_v54, 6.0  ;;  %v590_v59 = vld [vmem:[%s4082_s24 + $0xe18] sm:$0xff] }
 0x250   : > { %3643 = vst [vmem:[%s4112_s17 + $0xd80] sm:$0xff] %v3131_v0  ;;  %v3134_v10 = vmul.f32 %v2622_v2, %v574_v25  ;;  %v1602_v11 = vmax.f32 %v1090_v3, 0.0  ;;  %v1091_v14 = vadd.f32 3.0, %v5415_v62  ;;  %v1092_v20 = vadd.f32 3.0, %v580_v63  ;;  %v591_v54 = vld [vmem:[%s4082_s24 + $0xe20] sm:$0xff] }
 0x251   : > { %3644 = vst [vmem:[%s4112_s17 + $0xd88] sm:$0xff] %v3132_v1  ;;  %v3135_v13 = vmul.f32 %v2623_v15, %v575_v32  ;;  %v3136_v17 = vmul.f32 %v2624_v7, %v576_v33  ;;  %v2625_v18 = vmul.f32 0.16666667, %v2113_v8  ;;  %v1093_v19 = vadd.f32 3.0, %v581_v5  ;;  %v593_v8 = vld [vmem:[%s4082_s24 + $0xe30] sm:$0xff] }
 0x252   : > { %3645 = vst [vmem:[%s4112_s17 + $0xd90] sm:$0xff] %v3133_v6  ;;  %v2114_v21 = vmin.f32 %v1602_v11, 6.0  ;;  %v1603_v23 = vmax.f32 %v1091_v14, 0.0  ;;  %v1604_v29 = vmax.f32 %v1092_v20, 0.0  ;;  %v1094_v24 = vadd.f32 3.0, %v582_v9  ;;  %v5458_v20 = vld [vmem:[%s4082_s24 + $0xe38] sm:$0xff] }
 0x253   : > { %3646 = vst [vmem:[%s4112_s17 + $0xd98] sm:$0xff] %v3134_v10  ;;  %v3137_v25 = vmul.f32 %v2625_v18, %v577_v40  ;;  %v1605_v26 = vmax.f32 %v1093_v19, 0.0  ;;  %v1095_v27 = vadd.f32 3.0, %v583_v12  ;;  %v1096_v28 = vadd.f32 3.0, %v584_v16 }
 0x254   : > { %3647 = vst [vmem:[%s4112_s17 + $0xda0] sm:$0xff] %v3135_v13  ;;  %v2626_v32 = vmul.f32 0.16666667, %v2114_v21  ;;  %v2115_v33 = vmin.f32 %v1603_v23, 6.0  ;;  %v2116_v34 = vmin.f32 %v1604_v29, 6.0  ;;  %v1606_v30 = vmax.f32 %v1094_v24, 0.0 }
 0x255   : > { %3648 = vst [vmem:[%s4112_s17 + $0xda8] sm:$0xff] %v3136_v17  ;;  %v2117_v31 = vmin.f32 %v1605_v26, 6.0  ;;  %v1607_v35 = vmax.f32 %v1095_v27, 0.0  ;;  %v1608_v38 = vmax.f32 %v1096_v28, 0.0  ;;  %v1097_v39 = vadd.f32 3.0, %v585_v22  ;;  %v5463_v29 = vld [vmem:[%s4082_s24 + $0xe40] sm:$0xff] }
 0x256   : > { %3649 = vst [vmem:[%s4112_s17 + $0xdb0] sm:$0xff] %v3137_v25  ;;  %v3138_v36 = vmul.f32 %v2626_v32, %v5410_v51  ;;  %v2627_v40 = vmul.f32 0.16666667, %v2115_v33  ;;  %v2628_v42 = vmul.f32 0.16666667, %v2116_v34  ;;  %v2118_v43 = vmin.f32 %v1606_v30, 6.0 }
 0x257   : > { %v2629_v44 = vmul.f32 0.16666667, %v2117_v31  ;;  %v2119_v46 = vmin.f32 %v1607_v35, 6.0  ;;  %v2120_v52 = vmin.f32 %v1608_v38, 6.0  ;;  %v1609_v48 = vmax.f32 %v1097_v39, 0.0  ;;  %v596_v34 = vld [vmem:[%s4082_s24 + $0xe48] sm:$0xff] }
 0x258   : > { %3650 = vst [vmem:[%s4112_s17 + $0xdb8] sm:$0xff] %v3138_v36  ;;  %v3139_v49 = vmul.f32 %v2627_v40, %v5415_v62  ;;  %v3140_v45 = vmul.f32 %v2628_v42, %v580_v63  ;;  %v2630_v50 = vmul.f32 0.16666667, %v2118_v43  ;;  %v1098_v51 = vadd.f32 3.0, %v5434_v37  ;;  %v592_v63 = vld [vmem:[%s4082_s24 + $0xe28] sm:$0xff]  ;;  %v597_v38 = vld [vmem:[%s4082_s24 + $0xe50] sm:$0xff] }
 0x259   : > { %v3141_v55 = vmul.f32 %v2629_v44, %v581_v5  ;;  %v2631_v58 = vmul.f32 0.16666667, %v2119_v46  ;;  %v2632_v56 = vmul.f32 0.16666667, %v2120_v52  ;;  %v2121_v57 = vmin.f32 %v1609_v48, 6.0  ;;  %v598_v43 = vld [vmem:[%s4082_s24 + $0xe58] sm:$0xff] }
 0x25a   : > { %3651 = vst [vmem:[%s4112_s17 + $0xdc0] sm:$0xff] %v3139_v49  ;;  %v3142_v60 = vmul.f32 %v2630_v50, %v582_v9  ;;  %v1610_v61 = vmax.f32 %v1098_v51, 0.0  ;;  %v1099_v62 = vadd.f32 3.0, %v5439_v47  ;;  %v1100_v4 = vadd.f32 3.0, %v588_v41  ;;  %v599_v48 = vld [vmem:[%s4082_s24 + $0xe60] sm:$0xff] }
 0x25b   : > { %3652 = vst [vmem:[%s4112_s17 + $0xdc8] sm:$0xff] %v3140_v45  ;;  %v3143_v0 = vmul.f32 %v2631_v58, %v583_v12  ;;  %v3144_v1 = vmul.f32 %v2632_v56, %v584_v16  ;;  %v2633_v2 = vmul.f32 0.16666667, %v2121_v57  ;;  %v1101_v3 = vadd.f32 3.0, %v589_v53  ;;  %v601_v57 = vld [vmem:[%s4082_s24 + $0xe70] sm:$0xff] }
 0x25c   : > { %3653 = vst [vmem:[%s4112_s17 + $0xdd0] sm:$0xff] %v3141_v55  ;;  %v2122_v5 = vmin.f32 %v1610_v61, 6.0  ;;  %v1611_v6 = vmax.f32 %v1099_v62, 0.0  ;;  %v1612_v15 = vmax.f32 %v1100_v4, 0.0  ;;  %v1102_v7 = vadd.f32 3.0, %v590_v59  ;;  %v5482_v4 = vld [vmem:[%s4082_s24 + $0xe78] sm:$0xff] }
 0x25d   : > { %3654 = vst [vmem:[%s4112_s17 + $0xdd8] sm:$0xff] %v3142_v60  ;;  %v3145_v9 = vmul.f32 %v2633_v2, %v585_v22  ;;  %v1613_v10 = vmax.f32 %v1101_v3, 0.0  ;;  %v1103_v11 = vadd.f32 3.0, %v591_v54  ;;  %v1104_v14 = vadd.f32 3.0, %v592_v63 }
 0x25e   : > { %3655 = vst [vmem:[%s4112_s17 + $0xde0] sm:$0xff] %v3143_v0  ;;  %v2634_v12 = vmul.f32 0.16666667, %v2122_v5  ;;  %v2123_v16 = vmin.f32 %v1611_v6, 6.0  ;;  %v2124_v13 = vmin.f32 %v1612_v15, 6.0  ;;  %v1614_v17 = vmax.f32 %v1102_v7, 0.0 }
 0x25f   : > { %3656 = vst [vmem:[%s4112_s17 + $0xde8] sm:$0xff] %v3144_v1  ;;  %v2125_v18 = vmin.f32 %v1613_v10, 6.0  ;;  %v1615_v19 = vmax.f32 %v1103_v11, 0.0  ;;  %v1616_v21 = vmax.f32 %v1104_v14, 0.0  ;;  %v1105_v23 = vadd.f32 3.0, %v593_v8  ;;  %v5487_v15 = vld [vmem:[%s4082_s24 + $0xe80] sm:$0xff] }
 0x260   : > { %3657 = vst [vmem:[%s4112_s17 + $0xdf0] sm:$0xff] %v3145_v9  ;;  %v3146_v24 = vmul.f32 %v2634_v12, %v5434_v37  ;;  %v2635_v22 = vmul.f32 0.16666667, %v2123_v16  ;;  %v2636_v25 = vmul.f32 0.16666667, %v2124_v13  ;;  %v2126_v26 = vmin.f32 %v1614_v17, 6.0 }
 0x261   : > { %v2637_v27 = vmul.f32 0.16666667, %v2125_v18  ;;  %v2127_v28 = vmin.f32 %v1615_v19, 6.0  ;;  %v2128_v32 = vmin.f32 %v1616_v21, 6.0  ;;  %v1617_v33 = vmax.f32 %v1105_v23, 0.0  ;;  %v604_v13 = vld [vmem:[%s4082_s24 + $0xe88] sm:$0xff] }
 0x262   : > { %3658 = vst [vmem:[%s4112_s17 + $0xdf8] sm:$0xff] %v3146_v24  ;;  %v3147_v30 = vmul.f32 %v2635_v22, %v5439_v47  ;;  %v3148_v31 = vmul.f32 %v2636_v25, %v588_v41  ;;  %v2638_v35 = vmul.f32 0.16666667, %v2126_v26  ;;  %v1106_v37 = vadd.f32 3.0, %v5458_v20  ;;  %v600_v41 = vld [vmem:[%s4082_s24 + $0xe68] sm:$0xff]  ;;  %v605_v21 = vld [vmem:[%s4082_s24 + $0xe90] sm:$0xff] }
 0x263   : > { %v3149_v39 = vmul.f32 %v2637_v27, %v589_v53  ;;  %v2639_v36 = vmul.f32 0.16666667, %v2127_v28  ;;  %v2640_v40 = vmul.f32 0.16666667, %v2128_v32  ;;  %v2129_v42 = vmin.f32 %v1617_v33, 6.0  ;;  %v606_v26 = vld [vmem:[%s4082_s24 + $0xe98] sm:$0xff] }
 0x264   : > { %3659 = vst [vmem:[%s4112_s17 + $0xe00] sm:$0xff] %v3147_v30  ;;  %v3150_v44 = vmul.f32 %v2638_v35, %v590_v59  ;;  %v1618_v46 = vmax.f32 %v1106_v37, 0.0  ;;  %v1107_v47 = vadd.f32 3.0, %v5463_v29  ;;  %v1108_v52 = vadd.f32 3.0, %v596_v34  ;;  %v607_v33 = vld [vmem:[%s4082_s24 + $0xea0] sm:$0xff] }
 0x265   : > { %3660 = vst [vmem:[%s4112_s17 + $0xe08] sm:$0xff] %v3148_v31  ;;  %v3151_v49 = vmul.f32 %v2639_v36, %v591_v54  ;;  %v3152_v45 = vmul.f32 %v2640_v40, %v592_v63  ;;  %v2641_v50 = vmul.f32 0.16666667, %v2129_v42  ;;  %v1109_v51 = vadd.f32 3.0, %v597_v38  ;;  %v609_v42 = vld [vmem:[%s4082_s24 + $0xeb0] sm:$0xff] }
 0x266   : > { %3661 = vst [vmem:[%s4112_s17 + $0xe10] sm:$0xff] %v3149_v39  ;;  %v2130_v53 = vmin.f32 %v1618_v46, 6.0  ;;  %v1619_v55 = vmax.f32 %v1107_v47, 0.0  ;;  %v1620_v58 = vmax.f32 %v1108_v52, 0.0  ;;  %v1110_v56 = vadd.f32 3.0, %v598_v43  ;;  %v5506_v52 = vld [vmem:[%s4082_s24 + $0xeb8] sm:$0xff] }
 0x267   : > { %3662 = vst [vmem:[%s4112_s17 + $0xe18] sm:$0xff] %v3150_v44  ;;  %v3153_v59 = vmul.f32 %v2641_v50, %v593_v8  ;;  %v1621_v60 = vmax.f32 %v1109_v51, 0.0  ;;  %v1111_v61 = vadd.f32 3.0, %v599_v48  ;;  %v1112_v62 = vadd.f32 3.0, %v600_v41 }
 0x268   : > { %3663 = vst [vmem:[%s4112_s17 + $0xe20] sm:$0xff] %v3151_v49  ;;  %v2642_v54 = vmul.f32 0.16666667, %v2130_v53  ;;  %v2131_v63 = vmin.f32 %v1619_v55, 6.0  ;;  %v2132_v0 = vmin.f32 %v1620_v58, 6.0  ;;  %v1622_v1 = vmax.f32 %v1110_v56, 0.0 }
 0x269   : > { %3664 = vst [vmem:[%s4112_s17 + $0xe28] sm:$0xff] %v3152_v45  ;;  %v2133_v2 = vmin.f32 %v1621_v60, 6.0  ;;  %v1623_v3 = vmax.f32 %v1111_v61, 0.0  ;;  %v1624_v5 = vmax.f32 %v1112_v62, 0.0  ;;  %v1113_v6 = vadd.f32 3.0, %v601_v57  ;;  %v5511_v58 = vld [vmem:[%s4082_s24 + $0xec0] sm:$0xff] }
 0x26a   : > { %3665 = vst [vmem:[%s4112_s17 + $0xe30] sm:$0xff] %v3153_v59  ;;  %v3154_v7 = vmul.f32 %v2642_v54, %v5458_v20  ;;  %v2643_v8 = vmul.f32 0.16666667, %v2131_v63  ;;  %v2644_v9 = vmul.f32 0.16666667, %v2132_v0  ;;  %v2134_v10 = vmin.f32 %v1622_v1, 6.0 }
 0x26b   : > { %v2645_v11 = vmul.f32 0.16666667, %v2133_v2  ;;  %v2135_v14 = vmin.f32 %v1623_v3, 6.0  ;;  %v2136_v12 = vmin.f32 %v1624_v5, 6.0  ;;  %v1625_v16 = vmax.f32 %v1113_v6, 0.0  ;;  %v612_v0 = vld [vmem:[%s4082_s24 + $0xec8] sm:$0xff] }
 0x26c   : > { %3666 = vst [vmem:[%s4112_s17 + $0xe38] sm:$0xff] %v3154_v7  ;;  %v3155_v17 = vmul.f32 %v2643_v8, %v5463_v29  ;;  %v3156_v18 = vmul.f32 %v2644_v9, %v596_v34  ;;  %v2646_v19 = vmul.f32 0.16666667, %v2134_v10  ;;  %v1114_v20 = vadd.f32 3.0, %v5482_v4  ;;  %v608_v34 = vld [vmem:[%s4082_s24 + $0xea8] sm:$0xff]  ;;  %v613_v5 = vld [vmem:[%s4082_s24 + $0xed0] sm:$0xff] }
 0x26d   : > { %v3157_v23 = vmul.f32 %v2645_v11, %v597_v38  ;;  %v2647_v24 = vmul.f32 0.16666667, %v2135_v14  ;;  %v2648_v22 = vmul.f32 0.16666667, %v2136_v12  ;;  %v2137_v25 = vmin.f32 %v1625_v16, 6.0  ;;  %v614_v10 = vld [vmem:[%s4082_s24 + $0xed8] sm:$0xff] }
 0x26e   : > { %3667 = vst [vmem:[%s4112_s17 + $0xe40] sm:$0xff] %v3155_v17  ;;  %v3158_v27 = vmul.f32 %v2646_v19, %v598_v43  ;;  %v1626_v28 = vmax.f32 %v1114_v20, 0.0  ;;  %v1115_v29 = vadd.f32 3.0, %v5487_v15  ;;  %v1116_v32 = vadd.f32 3.0, %v604_v13  ;;  %v615_v16 = vld [vmem:[%s4082_s24 + $0xee0] sm:$0xff] }
 0x26f   : > { %3668 = vst [vmem:[%s4112_s17 + $0xe48] sm:$0xff] %v3156_v18  ;;  %v3159_v30 = vmul.f32 %v2647_v24, %v599_v48  ;;  %v3160_v31 = vmul.f32 %v2648_v22, %v600_v41  ;;  %v2649_v35 = vmul.f32 0.16666667, %v2137_v25  ;;  %v1117_v37 = vadd.f32 3.0, %v605_v21  ;;  %v617_v25 = vld [vmem:[%s4082_s24 + $0xef0] sm:$0xff] }
 0x270   : > { %3669 = vst [vmem:[%s4112_s17 + $0xe50] sm:$0xff] %v3157_v23  ;;  %v2138_v38 = vmin.f32 %v1626_v28, 6.0  ;;  %v1627_v39 = vmax.f32 %v1115_v29, 0.0  ;;  %v1628_v36 = vmax.f32 %v1116_v32, 0.0  ;;  %v1118_v40 = vadd.f32 3.0, %v606_v26  ;;  %v5530_v32 = vld [vmem:[%s4082_s24 + $0xef8] sm:$0xff] }
 0x271   : > { %3670 = vst [vmem:[%s4112_s17 + $0xe58] sm:$0xff] %v3158_v27  ;;  %v3161_v43 = vmul.f32 %v2649_v35, %v601_v57  ;;  %v1629_v44 = vmax.f32 %v1117_v37, 0.0  ;;  %v1119_v46 = vadd.f32 3.0, %v607_v33  ;;  %v1120_v47 = vadd.f32 3.0, %v608_v34 }
 0x272   : > { %3671 = vst [vmem:[%s4112_s17 + $0xe60] sm:$0xff] %v3159_v30  ;;  %v2650_v48 = vmul.f32 0.16666667, %v2138_v38  ;;  %v2139_v41 = vmin.f32 %v1627_v39, 6.0  ;;  %v2140_v49 = vmin.f32 %v1628_v36, 6.0  ;;  %v1630_v45 = vmax.f32 %v1118_v40, 0.0 }
 0x273   : > { %3672 = vst [vmem:[%s4112_s17 + $0xe68] sm:$0xff] %v3160_v31  ;;  %v2141_v50 = vmin.f32 %v1629_v44, 6.0  ;;  %v1631_v51 = vmax.f32 %v1119_v46, 0.0  ;;  %v1632_v53 = vmax.f32 %v1120_v47, 0.0  ;;  %v1121_v55 = vadd.f32 3.0, %v609_v42  ;;  %v5535_v36 = vld [vmem:[%s4082_s24 + $0xf00] sm:$0xff] }
 0x274   : > { %3673 = vst [vmem:[%s4112_s17 + $0xe70] sm:$0xff] %v3161_v43  ;;  %v3162_v56 = vmul.f32 %v2650_v48, %v5482_v4  ;;  %v2651_v57 = vmul.f32 0.16666667, %v2139_v41  ;;  %v2652_v59 = vmul.f32 0.16666667, %v2140_v49  ;;  %v2142_v60 = vmin.f32 %v1630_v45, 6.0 }
 0x275   : > { %v2653_v61 = vmul.f32 0.16666667, %v2141_v50  ;;  %v2143_v62 = vmin.f32 %v1631_v51, 6.0  ;;  %v2144_v54 = vmin.f32 %v1632_v53, 6.0  ;;  %v1633_v63 = vmax.f32 %v1121_v55, 0.0  ;;  %v620_v49 = vld [vmem:[%s4082_s24 + $0xf08] sm:$0xff] }
 0x276   : > { %3674 = vst [vmem:[%s4112_s17 + $0xe78] sm:$0xff] %v3162_v56  ;;  %v3163_v1 = vmul.f32 %v2651_v57, %v5487_v15  ;;  %v3164_v2 = vmul.f32 %v2652_v59, %v604_v13  ;;  %v2654_v3 = vmul.f32 0.16666667, %v2142_v60  ;;  %v1122_v4 = vadd.f32 3.0, %v5506_v52  ;;  %v616_v13 = vld [vmem:[%s4082_s24 + $0xee8] sm:$0xff]  ;;  %v621_v53 = vld [vmem:[%s4082_s24 + $0xf10] sm:$0xff] }
 0x277   : > { %v3165_v6 = vmul.f32 %v2653_v61, %v605_v21  ;;  %v2655_v7 = vmul.f32 0.16666667, %v2143_v62  ;;  %v2656_v8 = vmul.f32 0.16666667, %v2144_v54  ;;  %v2145_v9 = vmin.f32 %v1633_v63, 6.0  ;;  %v622_v60 = vld [vmem:[%s4082_s24 + $0xf18] sm:$0xff] }
 0x278   : > { %3675 = vst [vmem:[%s4112_s17 + $0xe80] sm:$0xff] %v3163_v1  ;;  %v3166_v11 = vmul.f32 %v2654_v3, %v606_v26  ;;  %v1634_v14 = vmax.f32 %v1122_v4, 0.0  ;;  %v1123_v15 = vadd.f32 3.0, %v5511_v58  ;;  %v1124_v12 = vadd.f32 3.0, %v612_v0  ;;  %v623_v63 = vld [vmem:[%s4082_s24 + $0xf20] sm:$0xff] }
 0x279   : > { %3676 = vst [vmem:[%s4112_s17 + $0xe88] sm:$0xff] %v3164_v2  ;;  %v3167_v17 = vmul.f32 %v2655_v7, %v607_v33  ;;  %v3168_v18 = vmul.f32 %v2656_v8, %v608_v34  ;;  %v2657_v19 = vmul.f32 0.16666667, %v2145_v9  ;;  %v1125_v20 = vadd.f32 3.0, %v613_v5  ;;  %v625_v9 = vld [vmem:[%s4082_s24 + $0xf30] sm:$0xff] }
 0x27a   : > { %3677 = vst [vmem:[%s4112_s17 + $0xe90] sm:$0xff] %v3165_v6  ;;  %v2146_v21 = vmin.f32 %v1634_v14, 6.0  ;;  %v1635_v23 = vmax.f32 %v1123_v15, 0.0  ;;  %v1636_v24 = vmax.f32 %v1124_v12, 0.0  ;;  %v1126_v22 = vadd.f32 3.0, %v614_v10  ;;  %v5554_v12 = vld [vmem:[%s4082_s24 + $0xf38] sm:$0xff] }
 0x27b   : > { %3678 = vst [vmem:[%s4112_s17 + $0xe98] sm:$0xff] %v3166_v11  ;;  %v3169_v26 = vmul.f32 %v2657_v19, %v609_v42  ;;  %v1637_v27 = vmax.f32 %v1125_v20, 0.0  ;;  %v1127_v28 = vadd.f32 3.0, %v615_v16  ;;  %v1128_v29 = vadd.f32 3.0, %v616_v13 }
 0x27c   : > { %3679 = vst [vmem:[%s4112_s17 + $0xea0] sm:$0xff] %v3167_v17  ;;  %v2658_v33 = vmul.f32 0.16666667, %v2146_v21  ;;  %v2147_v34 = vmin.f32 %v1635_v23, 6.0  ;;  %v2148_v30 = vmin.f32 %v1636_v24, 6.0  ;;  %v1638_v31 = vmax.f32 %v1126_v22, 0.0 }
 0x27d   : > { %3680 = vst [vmem:[%s4112_s17 + $0xea8] sm:$0xff] %v3168_v18  ;;  %v2149_v35 = vmin.f32 %v1637_v27, 6.0  ;;  %v1639_v37 = vmax.f32 %v1127_v28, 0.0  ;;  %v1640_v38 = vmax.f32 %v1128_v29, 0.0  ;;  %v1129_v39 = vadd.f32 3.0, %v617_v25  ;;  %v5559_v24 = vld [vmem:[%s4082_s24 + $0xf40] sm:$0xff] }
 0x27e   : > { %3681 = vst [vmem:[%s4112_s17 + $0xeb0] sm:$0xff] %v3169_v26  ;;  %v3170_v40 = vmul.f32 %v2658_v33, %v5506_v52  ;;  %v2659_v42 = vmul.f32 0.16666667, %v2147_v34  ;;  %v2660_v43 = vmul.f32 0.16666667, %v2148_v30  ;;  %v2150_v44 = vmin.f32 %v1638_v31, 6.0 }
 0x27f   : > { %v2661_v46 = vmul.f32 0.16666667, %v2149_v35  ;;  %v2151_v47 = vmin.f32 %v1639_v37, 6.0  ;;  %v2152_v48 = vmin.f32 %v1640_v38, 6.0  ;;  %v1641_v41 = vmax.f32 %v1129_v39, 0.0  ;;  %v628_v30 = vld [vmem:[%s4082_s24 + $0xf48] sm:$0xff] }
 0x280   : > { %3682 = vst [vmem:[%s4112_s17 + $0xeb8] sm:$0xff] %v3170_v40  ;;  %v3171_v45 = vmul.f32 %v2659_v42, %v5511_v58  ;;  %v3172_v50 = vmul.f32 %v2660_v43, %v612_v0  ;;  %v2662_v51 = vmul.f32 0.16666667, %v2150_v44  ;;  %v1130_v52 = vadd.f32 3.0, %v5530_v32  ;;  %v624_v0 = vld [vmem:[%s4082_s24 + $0xf28] sm:$0xff]  ;;  %v629_v38 = vld [vmem:[%s4082_s24 + $0xf50] sm:$0xff] }
 0x281   : > { %v3173_v55 = vmul.f32 %v2661_v46, %v613_v5  ;;  %v2663_v56 = vmul.f32 0.16666667, %v2151_v47  ;;  %v2664_v57 = vmul.f32 0.16666667, %v2152_v48  ;;  %v2153_v59 = vmin.f32 %v1641_v41, 6.0  ;;  %v630_v44 = vld [vmem:[%s4082_s24 + $0xf58] sm:$0xff] }
 0x282   : > { %3683 = vst [vmem:[%s4112_s17 + $0xec0] sm:$0xff] %v3171_v45  ;;  %v3174_v61 = vmul.f32 %v2662_v51, %v614_v10  ;;  %v1642_v62 = vmax.f32 %v1130_v52, 0.0  ;;  %v1131_v58 = vadd.f32 3.0, %v5535_v36  ;;  %v1132_v54 = vadd.f32 3.0, %v620_v49  ;;  %v631_v41 = vld [vmem:[%s4082_s24 + $0xf60] sm:$0xff] }
 0x283   : > { %3684 = vst [vmem:[%s4112_s17 + $0xec8] sm:$0xff] %v3172_v50  ;;  %v3175_v1 = vmul.f32 %v2663_v56, %v615_v16  ;;  %v3176_v2 = vmul.f32 %v2664_v57, %v616_v13  ;;  %v2665_v3 = vmul.f32 0.16666667, %v2153_v59  ;;  %v1133_v4 = vadd.f32 3.0, %v621_v53  ;;  %v633_v59 = vld [vmem:[%s4082_s24 + $0xf70] sm:$0xff] }
 0x284   : > { %3685 = vst [vmem:[%s4112_s17 + $0xed0] sm:$0xff] %v3173_v55  ;;  %v2154_v5 = vmin.f32 %v1642_v62, 6.0  ;;  %v1643_v6 = vmax.f32 %v1131_v58, 0.0  ;;  %v1644_v7 = vmax.f32 %v1132_v54, 0.0  ;;  %v1134_v8 = vadd.f32 3.0, %v622_v60  ;;  %v5578_v54 = vld [vmem:[%s4082_s24 + $0xf78] sm:$0xff] }
 0x285   : > { %3686 = vst [vmem:[%s4112_s17 + $0xed8] sm:$0xff] %v3174_v61  ;;  %v3177_v10 = vmul.f32 %v2665_v3, %v617_v25  ;;  %v1645_v11 = vmax.f32 %v1133_v4, 0.0  ;;  %v1135_v14 = vadd.f32 3.0, %v623_v63  ;;  %v1136_v15 = vadd.f32 3.0, %v624_v0 }
 0x286   : > { %3687 = vst [vmem:[%s4112_s17 + $0xee0] sm:$0xff] %v3175_v1  ;;  %v2666_v16 = vmul.f32 0.16666667, %v2154_v5  ;;  %v2155_v13 = vmin.f32 %v1643_v6, 6.0  ;;  %v2156_v17 = vmin.f32 %v1644_v7, 6.0  ;;  %v1646_v18 = vmax.f32 %v1134_v8, 0.0 }
 0x287   : > { %3688 = vst [vmem:[%s4112_s17 + $0xee8] sm:$0xff] %v3176_v2  ;;  %v2157_v19 = vmin.f32 %v1645_v11, 6.0  ;;  %v1647_v20 = vmax.f32 %v1135_v14, 0.0  ;;  %v1648_v21 = vmax.f32 %v1136_v15, 0.0  ;;  %v1137_v23 = vadd.f32 3.0, %v625_v9  ;;  %v5583_v7 = vld [vmem:[%s4082_s24 + $0xf80] sm:$0xff] }
 0x288   : > { %3689 = vst [vmem:[%s4112_s17 + $0xef0] sm:$0xff] %v3177_v10  ;;  %v3178_v22 = vmul.f32 %v2666_v16, %v5530_v32  ;;  %v2667_v25 = vmul.f32 0.16666667, %v2155_v13  ;;  %v2668_v26 = vmul.f32 0.16666667, %v2156_v17  ;;  %v2158_v27 = vmin.f32 %v1646_v18, 6.0 }
 0x289   : > { %v2669_v28 = vmul.f32 0.16666667, %v2157_v19  ;;  %v2159_v29 = vmin.f32 %v1647_v20, 6.0  ;;  %v2160_v33 = vmin.f32 %v1648_v21, 6.0  ;;  %v1649_v34 = vmax.f32 %v1137_v23, 0.0  ;;  %v636_v17 = vld [vmem:[%s4082_s24 + $0xf88] sm:$0xff] }
 0x28a   : > { %3690 = vst [vmem:[%s4112_s17 + $0xef8] sm:$0xff] %v3178_v22  ;;  %v3179_v31 = vmul.f32 %v2667_v25, %v5535_v36  ;;  %v3180_v35 = vmul.f32 %v2668_v26, %v620_v49  ;;  %v2670_v37 = vmul.f32 0.16666667, %v2158_v27  ;;  %v1138_v32 = vadd.f32 3.0, %v5554_v12  ;;  %v632_v49 = vld [vmem:[%s4082_s24 + $0xf68] sm:$0xff]  ;;  %v637_v21 = vld [vmem:[%s4082_s24 + $0xf90] sm:$0xff] }
 0x28b   : > { %v3181_v39 = vmul.f32 %v2669_v28, %v621_v53  ;;  %v2671_v40 = vmul.f32 0.16666667, %v2159_v29  ;;  %v2672_v42 = vmul.f32 0.16666667, %v2160_v33  ;;  %v2161_v43 = vmin.f32 %v1649_v34, 6.0  ;;  %v638_v27 = vld [vmem:[%s4082_s24 + $0xf98] sm:$0xff] }
 0x28c   : > { %3691 = vst [vmem:[%s4112_s17 + $0xf00] sm:$0xff] %v3179_v31  ;;  %v3182_v46 = vmul.f32 %v2670_v37, %v622_v60  ;;  %v1650_v47 = vmax.f32 %v1138_v32, 0.0  ;;  %v1139_v36 = vadd.f32 3.0, %v5559_v24  ;;  %v1140_v48 = vadd.f32 3.0, %v628_v30  ;;  %v639_v34 = vld [vmem:[%s4082_s24 + $0xfa0] sm:$0xff] }
 0x28d   : > { %3692 = vst [vmem:[%s4112_s17 + $0xf08] sm:$0xff] %v3180_v35  ;;  %v3183_v45 = vmul.f32 %v2671_v40, %v623_v63  ;;  %v3184_v50 = vmul.f32 %v2672_v42, %v624_v0  ;;  %v2673_v51 = vmul.f32 0.16666667, %v2161_v43  ;;  %v1141_v52 = vadd.f32 3.0, %v629_v38  ;;  %v641_v43 = vld [vmem:[%s4082_s24 + $0xfb0] sm:$0xff] }
 0x28e   : > { %3693 = vst [vmem:[%s4112_s17 + $0xf10] sm:$0xff] %v3181_v39  ;;  %v2162_v53 = vmin.f32 %v1650_v47, 6.0  ;;  %v1651_v55 = vmax.f32 %v1139_v36, 0.0  ;;  %v1652_v56 = vmax.f32 %v1140_v48, 0.0  ;;  %v1142_v57 = vadd.f32 3.0, %v630_v44  ;;  %v5602_v48 = vld [vmem:[%s4082_s24 + $0xfb8] sm:$0xff] }
 0x28f   : > { %3694 = vst [vmem:[%s4112_s17 + $0xf18] sm:$0xff] %v3182_v46  ;;  %v3185_v60 = vmul.f32 %v2673_v51, %v625_v9  ;;  %v1653_v61 = vmax.f32 %v1141_v52, 0.0  ;;  %v1143_v62 = vadd.f32 3.0, %v631_v41  ;;  %v1144_v58 = vadd.f32 3.0, %v632_v49 }
 0x290   : > { %3695 = vst [vmem:[%s4112_s17 + $0xf20] sm:$0xff] %v3183_v45  ;;  %v2674_v63 = vmul.f32 0.16666667, %v2162_v53  ;;  %v2163_v0 = vmin.f32 %v1651_v55, 6.0  ;;  %v2164_v1 = vmin.f32 %v1652_v56, 6.0  ;;  %v1654_v2 = vmax.f32 %v1142_v57, 0.0 }
 0x291   : > { %3696 = vst [vmem:[%s4112_s17 + $0xf28] sm:$0xff] %v3184_v50  ;;  %v2165_v3 = vmin.f32 %v1653_v61, 6.0  ;;  %v1655_v4 = vmax.f32 %v1143_v62, 0.0  ;;  %v1656_v5 = vmax.f32 %v1144_v58, 0.0  ;;  %v1145_v6 = vadd.f32 3.0, %v633_v59  ;;  %v5607_v56 = vld [vmem:[%s4082_s24 + $0xfc0] sm:$0xff] }
 0x292   : > { %3697 = vst [vmem:[%s4112_s17 + $0xf30] sm:$0xff] %v3185_v60  ;;  %v3186_v8 = vmul.f32 %v2674_v63, %v5554_v12  ;;  %v2675_v9 = vmul.f32 0.16666667, %v2163_v0  ;;  %v2676_v10 = vmul.f32 0.16666667, %v2164_v1  ;;  %v2166_v11 = vmin.f32 %v1654_v2, 6.0 }
 0x293   : > { %v2677_v14 = vmul.f32 0.16666667, %v2165_v3  ;;  %v2167_v15 = vmin.f32 %v1655_v4, 6.0  ;;  %v2168_v16 = vmin.f32 %v1656_v5, 6.0  ;;  %v1657_v13 = vmax.f32 %v1145_v6, 0.0  ;;  %v644_v1 = vld [vmem:[%s4082_s24 + $0xfc8] sm:$0xff] }
 0x294   : > { %3698 = vst [vmem:[%s4112_s17 + $0xf38] sm:$0xff] %v3186_v8  ;;  %v3187_v18 = vmul.f32 %v2675_v9, %v5559_v24  ;;  %v3188_v19 = vmul.f32 %v2676_v10, %v628_v30  ;;  %v2678_v20 = vmul.f32 0.16666667, %v2166_v11  ;;  %v1146_v12 = vadd.f32 3.0, %v5578_v54  ;;  %v640_v30 = vld [vmem:[%s4082_s24 + $0xfa8] sm:$0xff]  ;;  %v645_v5 = vld [vmem:[%s4082_s24 + $0xfd0] sm:$0xff] }
 0x295   : > { %v3189_v23 = vmul.f32 %v2677_v14, %v629_v38  ;;  %v2679_v22 = vmul.f32 0.16666667, %v2167_v15  ;;  %v2680_v25 = vmul.f32 0.16666667, %v2168_v16  ;;  %v2169_v26 = vmin.f32 %v1657_v13, 6.0  ;;  %v646_v11 = vld [vmem:[%s4082_s24 + $0xfd8] sm:$0xff] }
 0x296   : > { %3699 = vst [vmem:[%s4112_s17 + $0xf40] sm:$0xff] %v3187_v18  ;;  %v3190_v28 = vmul.f32 %v2678_v20, %v630_v44  ;;  %v1658_v29 = vmax.f32 %v1146_v12, 0.0  ;;  %v1147_v24 = vadd.f32 3.0, %v5583_v7  ;;  %v1148_v33 = vadd.f32 3.0, %v636_v17  ;;  %v647_v13 = vld [vmem:[%s4082_s24 + $0xfe0] sm:$0xff] }
 0x297   : > { %3700 = vst [vmem:[%s4112_s17 + $0xf48] sm:$0xff] %v3188_v19  ;;  %v3191_v31 = vmul.f32 %v2679_v22, %v631_v41  ;;  %v3192_v35 = vmul.f32 %v2680_v25, %v632_v49  ;;  %v2681_v37 = vmul.f32 0.16666667, %v2169_v26  ;;  %v1149_v32 = vadd.f32 3.0, %v637_v21  ;;  %v649_v26 = vld [vmem:[%s4082_s24 + $0xff0] sm:$0xff] }
 0x298   : > { %3701 = vst [vmem:[%s4112_s17 + $0xf50] sm:$0xff] %v3189_v23  ;;  %v2170_v38 = vmin.f32 %v1658_v29, 6.0  ;;  %v1659_v39 = vmax.f32 %v1147_v24, 0.0  ;;  %v1660_v40 = vmax.f32 %v1148_v33, 0.0  ;;  %v1150_v42 = vadd.f32 3.0, %v638_v27 }
 0x299   : > { %3702 = vst [vmem:[%s4112_s17 + $0xf58] sm:$0xff] %v3190_v28  ;;  %v3193_v44 = vmul.f32 %v2681_v37, %v633_v59  ;;  %v1661_v46 = vmax.f32 %v1149_v32, 0.0  ;;  %v1151_v47 = vadd.f32 3.0, %v639_v34  ;;  %v1152_v36 = vadd.f32 3.0, %v640_v30 }
 0x29a   : > { %3703 = vst [vmem:[%s4112_s17 + $0xf60] sm:$0xff] %v3191_v31  ;;  %v2682_v41 = vmul.f32 0.16666667, %v2170_v38  ;;  %v2171_v49 = vmin.f32 %v1659_v39, 6.0  ;;  %v2172_v45 = vmin.f32 %v1660_v40, 6.0  ;;  %v1662_v50 = vmax.f32 %v1150_v42, 0.0 }
 0x29b   : > { %3704 = vst [vmem:[%s4112_s17 + $0xf68] sm:$0xff] %v3192_v35  ;;  %v2173_v51 = vmin.f32 %v1661_v46, 6.0  ;;  %v1663_v52 = vmax.f32 %v1151_v47, 0.0  ;;  %v1664_v53 = vmax.f32 %v1152_v36, 0.0  ;;  %v1153_v55 = vadd.f32 3.0, %v641_v43  ;;  %v650_v39 = vld [vmem:[%s4082_s24 + $0xff8] sm:$0xff] }
 0x29c   : > { %3705 = vst [vmem:[%s4112_s17 + $0xf70] sm:$0xff] %v3193_v44  ;;  %v3194_v57 = vmul.f32 %v2682_v41, %v5578_v54  ;;  %v2683_v59 = vmul.f32 0.16666667, %v2171_v49  ;;  %v2684_v60 = vmul.f32 0.16666667, %v2172_v45  ;;  %v2174_v61 = vmin.f32 %v1662_v50, 6.0 }
 0x29d   : > { %v2685_v62 = vmul.f32 0.16666667, %v2173_v51  ;;  %v2175_v58 = vmin.f32 %v1663_v52, 6.0  ;;  %v2176_v63 = vmin.f32 %v1664_v53, 6.0  ;;  %v1665_v0 = vmax.f32 %v1153_v55, 0.0 }
 0x29e   : > { %3706 = vst [vmem:[%s4112_s17 + $0xf78] sm:$0xff] %v3194_v57  ;;  %v3195_v2 = vmul.f32 %v2683_v59, %v5583_v7  ;;  %v3196_v3 = vmul.f32 %v2684_v60, %v636_v17  ;;  %v2686_v4 = vmul.f32 0.16666667, %v2174_v61  ;;  %v1154_v54 = vadd.f32 3.0, %v5602_v48  ;;  %v648_v17 = vld [vmem:[%s4082_s24 + $0xfe8] sm:$0xff] }
 0x29f   : > { %v3197_v6 = vmul.f32 %v2685_v62, %v637_v21  ;;  %v2687_v8 = vmul.f32 0.16666667, %v2175_v58  ;;  %v2688_v9 = vmul.f32 0.16666667, %v2176_v63  ;;  %v2177_v10 = vmin.f32 %v1665_v0, 6.0 }
 0x2a0   : > { %3707 = vst [vmem:[%s4112_s17 + $0xf80] sm:$0xff] %v3195_v2  ;;  %v3198_v14 = vmul.f32 %v2686_v4, %v638_v27  ;;  %v1666_v15 = vmax.f32 %v1154_v54, 0.0  ;;  %v1155_v7 = vadd.f32 3.0, %v5607_v56  ;;  %v1156_v16 = vadd.f32 3.0, %v644_v1 }
 0x2a1   : > { %3708 = vst [vmem:[%s4112_s17 + $0xf88] sm:$0xff] %v3196_v3  ;;  %v3199_v18 = vmul.f32 %v2687_v8, %v639_v34  ;;  %v3200_v19 = vmul.f32 %v2688_v9, %v640_v30  ;;  %v2689_v20 = vmul.f32 0.16666667, %v2177_v10  ;;  %v1157_v12 = vadd.f32 3.0, %v645_v5 }
 0x2a2   : > { %3709 = vst [vmem:[%s4112_s17 + $0xf90] sm:$0xff] %v3197_v6  ;;  %v2178_v21 = vmin.f32 %v1666_v15, 6.0  ;;  %v1667_v23 = vmax.f32 %v1155_v7, 0.0  ;;  %v1668_v22 = vmax.f32 %v1156_v16, 0.0  ;;  %v1158_v25 = vadd.f32 3.0, %v646_v11 }
 0x2a3   : > { %3710 = vst [vmem:[%s4112_s17 + $0xf98] sm:$0xff] %v3198_v14  ;;  %v3201_v27 = vmul.f32 %v2689_v20, %v641_v43  ;;  %v1669_v28 = vmax.f32 %v1157_v12, 0.0  ;;  %v1159_v29 = vadd.f32 3.0, %v647_v13  ;;  %v1160_v24 = vadd.f32 3.0, %v648_v17 }
 0x2a4   : > { %3711 = vst [vmem:[%s4112_s17 + $0xfa0] sm:$0xff] %v3199_v18  ;;  %v2690_v33 = vmul.f32 0.16666667, %v2178_v21  ;;  %v2179_v34 = vmin.f32 %v1667_v23, 6.0  ;;  %v2180_v30 = vmin.f32 %v1668_v22, 6.0  ;;  %v1670_v31 = vmax.f32 %v1158_v25, 0.0 }
 0x2a5   : > { %3712 = vst [vmem:[%s4112_s17 + $0xfa8] sm:$0xff] %v3200_v19  ;;  %v2181_v35 = vmin.f32 %v1669_v28, 6.0  ;;  %v1671_v37 = vmax.f32 %v1159_v29, 0.0  ;;  %v1672_v32 = vmax.f32 %v1160_v24, 0.0  ;;  %v1161_v38 = vadd.f32 3.0, %v649_v26 }
 0x2a6   : > { %3713 = vst [vmem:[%s4112_s17 + $0xfb0] sm:$0xff] %v3201_v27  ;;  %v3202_v40 = vmul.f32 %v2690_v33, %v5602_v48  ;;  %v2691_v42 = vmul.f32 0.16666667, %v2179_v34  ;;  %v2692_v43 = vmul.f32 0.16666667, %v2180_v30  ;;  %v2182_v44 = vmin.f32 %v1670_v31, 6.0 }
 0x2a7   : > { %v2693_v46 = vmul.f32 0.16666667, %v2181_v35  ;;  %v2183_v47 = vmin.f32 %v1671_v37, 6.0  ;;  %v2184_v36 = vmin.f32 %v1672_v32, 6.0  ;;  %v1673_v41 = vmax.f32 %v1161_v38, 0.0 }
 0x2a8   : > { %3714 = vst [vmem:[%s4112_s17 + $0xfb8] sm:$0xff] %v3202_v40  ;;  %v3203_v49 = vmul.f32 %v2691_v42, %v5607_v56  ;;  %v3204_v45 = vmul.f32 %v2692_v43, %v644_v1  ;;  %v2694_v50 = vmul.f32 0.16666667, %v2182_v44  ;;  %v1162_v51 = vadd.f32 3.0, %v650_v39 }
 0x2a9   : > { %v3205_v52 = vmul.f32 %v2693_v46, %v645_v5  ;;  %v2695_v48 = vmul.f32 0.16666667, %v2183_v47  ;;  %v2696_v53 = vmul.f32 0.16666667, %v2184_v36  ;;  %v2185_v55 = vmin.f32 %v1673_v41, 6.0 }
 0x2aa   : > { %3715 = vst [vmem:[%s4112_s17 + $0xfc0] sm:$0xff] %v3203_v49  ;;  %v3206_v57 = vmul.f32 %v2694_v50, %v646_v11  ;;  %v1674_v56 = vmax.f32 %v1162_v51, 0.0 }
 0x2ab   : > { %3716 = vst [vmem:[%s4112_s17 + $0xfc8] sm:$0xff] %v3204_v45  ;;  %v3207_v59 = vmul.f32 %v2695_v48, %v647_v13  ;;  %v3208_v60 = vmul.f32 %v2696_v53, %v648_v17  ;;  %v2697_v61 = vmul.f32 0.16666667, %v2185_v55 }
 0x2ac   : > { %3717 = vst [vmem:[%s4112_s17 + $0xfd0] sm:$0xff] %v3205_v52  ;;  %v2186_v62 = vmin.f32 %v1674_v56, 6.0 }
 0x2ad   : > { %3718 = vst [vmem:[%s4112_s17 + $0xfd8] sm:$0xff] %v3206_v57  ;;  %v3209_v58 = vmul.f32 %v2697_v61, %v649_v26 }
 0x2ae   : > { %3719 = vst [vmem:[%s4112_s17 + $0xfe0] sm:$0xff] %v3207_v59  ;;  %v2698_v63 = vmul.f32 0.16666667, %v2186_v62 }
 0x2af   : > { %3720 = vst [vmem:[%s4112_s17 + $0xfe8] sm:$0xff] %v3208_v60 }
 0x2b0   : > { %3721 = vst [vmem:[%s4112_s17 + $0xff0] sm:$0xff] %v3209_v58  ;;  %v3210_v0 = vmul.f32 %v2698_v63, %v650_v39 }
 0x2b2   : > { %3722 = vst [vmem:[%s4112_s17 + $0xff8] sm:$0xff] %v3210_v0 }
 0x2b3   : > { %3935 = shalt.err (!%p3932_p4)
}
 0x2b4   : > { %s3978_s16 = smov 128   ;;  %s3979_s20 = smov 8  }
 0x2b5   : > { %3830 = dma.vmem_to_hbm [thread:$0]  (%p4040_p11), %s3737_s29, 65536, %s3739_s30, %s3724_s10, %s3978_s16, %s3978_s16, %s3979_s20  }
 0x2b6 PF: > { %s3753_s21 = sand.u32 1, %s3962_s6   ;;  %p5683_p7 = scmp.ge.s32.totalorder %s3974_s9, 2 }
 0x2b7   : > { %s3754_s22 = scalar_lea.sflag [#allocation4], %s3753_s21 }
 0x2b8   : > { %p3837_p5 = pnand %p5683_p7, %p4044_p12 }
 0x2ba   : > { %p3838_p8 = pneg %p3837_p5 }
 0x2bc   : > { %3957 = dma.done.wait (%p3838_p8), %s3754_s22, 65536  }
 0x2bd   : > { %3959 = vsyncadd (%p3838_p8), %s3754_s22, 4294901760  ;;  %p14_p10 = scmp.ge.s32.totalorder %s4015_s12, 4   ;;  %s5684_s6 = smov %s3966_s7 }
 0x2be   : > { %s5685_s7 = smov %s3970_s8  ;;  %s5686_s8 = smov %s4027_s15 }
 0x2bf   : > { %s5687_s9 = smov %s4015_s12  ;;  %16 = sbr.rel (!%p14_p10) target bundleno = 5 (0x5), region = 69 }
 0x2c4   :  { %3760 = vsyncpa [#allocation3], 1 }
 0x2c5   :  { %3762 = vsyncpa [#allocation3 + $0x1], 1 }
 0x2c6   :  { %3763 = vsyncpa [#allocation4], 1 }
 0x2c7   :  { %3765 = vsyncpa [#allocation4 + $0x1], 1 }

</bundles_post_ra>
